<compile_context>
chip_gen: v7x
topology: tpu7x:2x2x1
jax: 0.10.0
libtpu: 0.0.40
codegen_flags: <defaults>
</compile_context>

<pallas_src>
import functools

import numpy as np
import jax
import jax.numpy as jnp
from jax.experimental import pallas as pl
from jax.experimental.pallas import tpu as pltpu

COMPUTE_DTYPE = jnp.bfloat16   # MXU operand dtype (accumulation/epilogue stay f32)
ALPHA = 0.05                   # nn.LeakyReLU(0.05) in the reference module


def _round_up(x, m):
    return ((x + m - 1) // m) * m


# ----------------------------------------------------------------------------
# Static plan: frame widths + constant 0/1 layout matrices for a given (H, W).
# Trace-time only (numpy); matrices become constants feeding the fused kernel.
# ----------------------------------------------------------------------------
@functools.lru_cache(maxsize=None)
def _build_plan(H, W):
    # Spatial sizes along the reference forward pass.
    H1, W1 = H - 2, W - 2            # conv1 (k=3) valid output  == size1
    Hp1, Wp1 = H1 // 2, W1 // 2      # maxpool1
    H2, W2 = Hp1 - 2, Wp1 - 2        # conv2 (k=3) valid output  == size2
    Hp2, Wp2 = H2 // 2, W2 // 2      # maxpool2
    H3, W3 = Hp2 - 1, Wp2 - 1        # conv3 (k=2)
    assert H3 >= 1 and W3 >= 1, "input too small for this architecture"

    # Flat row-major frames (lane = h*frame_w + w).  `wout` of every conv stage
    # is the number of leading frame positions actually consumed downstream,
    # chosen so each tap slice [d : d + wout] stays inside the input width.
    fw1, win1 = W, H * W
    wout1 = (2 * (Hp1 - 1) + 1) * fw1 + (2 * (Wp1 - 1) + 1) + 1
    pw1 = Hp1 * Wp1

    fw2, win2 = Wp1, pw1
    wout2 = (2 * (Hp2 - 1) + 1) * fw2 + (2 * (Wp2 - 1) + 1) + 1
    pw2 = Hp2 * Wp2

    fw3, win3 = Wp2, pw2
    wout3 = (H3 - 1) * fw3 + W3

    fwd1 = W3 + 2                    # deconv1 (k=2): halo-padded conv3 frame
    area1 = (H3 + 2) * fwd1
    Hd1, Wd1 = H3 + 1, W3 + 1        # == (Hp2, Wp2)
    woutd1 = (Hd1 - 1) * fwd1 + Wd1

    fwd2 = W2 + 4                    # deconv2 (k=3): halo-padded unpool1 frame
    area2 = (H2 + 4) * fwd2
    Hd2, Wd2 = H2 + 2, W2 + 2        # == (Hp1, Wp1)
    woutd2 = (Hd2 - 1) * fwd2 + Wd2

    fwd3 = W1 + 4                    # deconv3 (k=3): halo-padded unpool2 frame
    area3 = (H1 + 4) * fwd3
    woutd3 = (H - 1) * fwd3 + W

    # Every tap slice must fit inside its input frame (no clamping path).
    assert 2 * fw1 + 2 + wout1 <= win1
    assert 2 * fw2 + 2 + wout2 <= win2
    assert 1 * fw3 + 1 + wout3 <= win3
    assert 1 * fwd1 + 1 + woutd1 <= area1
    assert 2 * fwd2 + 2 + woutd2 <= area2
    assert 2 * fwd3 + 2 + woutd3 <= area3

    def pool_mats(Hp, Wp, frame_w, valid_w, src_w):
        """2x2-phase extraction matrix + PyTorch-style flat argmax index map."""
        pw = Hp * Wp
        S = np.zeros((src_w, 4 * pw), np.float32)
        im = np.zeros((4, pw), np.float32)
        for k, (di, dj) in enumerate(((0, 0), (0, 1), (1, 0), (1, 1))):
            for hp in range(Hp):
                for wp in range(Wp):
                    q = hp * Wp + wp
                    S[(2 * hp + di) * frame_w + (2 * wp + dj), k * pw + q] = 1.0
                    im[k, q] = (2 * hp + di) * valid_w + (2 * wp + dj)
        return S, im

    def unpool_mats(Hp, Wp, valid_w, src_stride, src_w, pad, out_stride, out_w):
        """Value/index upsample matrices emitting the next deconv's halo frame."""
        Uv = np.zeros((src_w, out_w), np.float32)
        Ui = np.zeros((Hp * Wp, out_w), np.float32)
        tgt = np.full((1, out_w), -1.0, np.float32)
        for hp in range(Hp):
            for wp in range(Wp):
                for di in (0, 1):
                    for dj in (0, 1):
                        h, w = 2 * hp + di, 2 * wp + dj
                        p = (h + pad) * out_stride + (w + pad)
                        Uv[hp * src_stride + wp, p] = 1.0
                        Ui[hp * Wp + wp, p] = 1.0
                        tgt[0, p] = h * valid_w + w
        return Uv, Ui, tgt

    S1, IM1 = pool_mats(Hp1, Wp1, fw1, W1, wout1)
    S2, IM2 = pool_mats(Hp2, Wp2, fw2, W2, wout2)

    # Embed conv3's (H3, W3) valid output into the halo-padded deconv1 frame.
    P3 = np.zeros((wout3, area1), np.float32)
    for h in range(H3):
        for w in range(W3):
            P3[h * fw3 + w, (h + 1) * fwd1 + (w + 1)] = 1.0

    UV1, UI1, T1 = unpool_mats(Hp2, Wp2, W2, fwd1, woutd1, 2, fwd2, area2)
    UV2, UI2, T2 = unpool_mats(Hp1, Wp1, W1, fwd2, woutd2, 2, fwd3, area3)

    # Extract the valid (H, W) frame out of deconv3's padded-frame output.
    EF = np.zeros((woutd3, H * W), np.float32)
    for h in range(H):
        for w in range(W):
            EF[h * fwd3 + w, h * W + w] = 1.0

    cfg = dict(
        fw1=fw1, wout1=wout1, pw1=pw1,
        fw2=fw2, wout2=wout2, pw2=pw2,
        fw3=fw3, wout3=wout3,
        fwd1=fwd1, woutd1=woutd1,
        fwd2=fwd2, woutd2=woutd2,
        fwd3=fwd3, woutd3=woutd3,
        # max kh*kw*Cin over the 6 layers (channel counts fixed by the module)
        patch_rows=_round_up(max(9, 36, 32, 64, 72, 36), 8),
        patch_cols=_round_up(max(wout1, wout2, wout3, woutd1, woutd2, woutd3), 128),
    )
    consts = dict(S1=S1, IM1=IM1, S2=S2, IM2=IM2, P3=P3,
                  UV1=UV1, UI1=UI1, T1=T1, UV2=UV2, UI2=UI2, T2=T2, EF=EF)
    return cfg, consts


# ----------------------------------------------------------------------------
# The single fused kernel: whole forward pass for one image.
# ----------------------------------------------------------------------------
def _fused_forward_kernel(
        x_ref,
        w1_ref, b1_ref, w2_ref, b2_ref, w3_ref, b3_ref,
        wd1_ref, bd1_ref, wd2_ref, bd2_ref, wd3_ref, bd3_ref,
        s1_ref, im1_ref, s2_ref, im2_ref, p3_ref,
        uv1_ref, ui1_ref, t1_ref, uv2_ref, ui2_ref, t2_ref, ef_ref,
        o_ref,
        patch_ref,
        *, cfg):

    def conv(x, w_ref, b_ref, kh, kw, fw, wout, act):
        # Fused im2col: stack the kh*kw tap slices of the flat frame along K in
        # the shared VMEM scratch, then one (Cout, K) x (K, wout) MXU dot with
        # bf16 operands, f32 accumulation and f32 bias/activation epilogue.
        cin = x.shape[0]
        tk = kh * kw * cin
        t = 0
        for i in range(kh):
            for j in range(kw):
                d = i * fw + j
                patch_ref[t * cin:(t + 1) * cin, 0:wout] = x[:, d:d + wout]
                t += 1
        xk = patch_ref[0:tk, 0:wout].astype(COMPUTE_DTYPE)
        acc = jnp.dot(w_ref[...], xk, preferred_element_type=jnp.float32)
        acc = acc + b_ref[...]                       # (Cout, 1) broadcast
        if act == "relu":
            return jnp.maximum(acc, 0.0)
        return jnp.where(acc >= 0.0, acc, ALPHA * acc)

    def pool(v, s_ref, im_ref, pw):
        # 2x2 max + PyTorch-compatible flat argmax (first max in row-major
        # window order) via an exact 0/1 phase-extraction matmul.
        ph = jnp.dot(v, s_ref[...], preferred_element_type=jnp.float32)
        pa, pb = ph[:, 0:pw], ph[:, pw:2 * pw]
        pc, pd = ph[:, 2 * pw:3 * pw], ph[:, 3 * pw:4 * pw]
        m = jnp.maximum(jnp.maximum(pa, pb), jnp.maximum(pc, pd))
        im = im_ref[...]
        idx = jnp.where(pa == m, im[0:1],
                        jnp.where(pb == m, im[1:2],
                                  jnp.where(pc == m, im[2:3], im[3:4])))
        return m, idx

    def unpool(v, idx, uv_ref, ui_ref, tgt_ref):
        # Scatter each value to its recorded argmax position, emitted directly
        # into the next deconv's halo-padded frame (zeros elsewhere).  Indices
        # are small exact integers, so the f32 compare is exact.
        v_up = jnp.dot(v, uv_ref[...], preferred_element_type=jnp.float32)
        i_up = jnp.dot(idx, ui_ref[...], preferred_element_type=jnp.float32)
        return jnp.where(i_up == tgt_ref[...], v_up, 0.0)

    x = x_ref[0]                                                     # (1, H*W)
    h = conv(x, w1_ref, b1_ref, 3, 3, cfg["fw1"], cfg["wout1"], "relu")
    h, idx1 = pool(h, s1_ref, im1_ref, cfg["pw1"])
    h = conv(h, w2_ref, b2_ref, 3, 3, cfg["fw2"], cfg["wout2"], "leaky")
    h, idx2 = pool(h, s2_ref, im2_ref, cfg["pw2"])
    h = conv(h, w3_ref, b3_ref, 2, 2, cfg["fw3"], cfg["wout3"], "leaky")

    emb = p3_ref[...]                     # embed conv3 output into halo frame
    if emb.shape[0] == 1:                 # K == 1: broadcast 0/1 mask, no matmul
        h = h * emb
    else:
        h = jnp.dot(h, emb, preferred_element_type=jnp.float32)

    h = conv(h, wd1_ref, bd1_ref, 2, 2, cfg["fwd1"], cfg["woutd1"], "leaky")
    h = unpool(h, idx2, uv1_ref, ui1_ref, t1_ref)
    h = conv(h, wd2_ref, bd2_ref, 3, 3, cfg["fwd2"], cfg["woutd2"], "leaky")
    h = unpool(h, idx1, uv2_ref, ui2_ref, t2_ref)
    h = conv(h, wd3_ref, bd3_ref, 3, 3, cfg["fwd3"], cfg["woutd3"], "relu")

    # Lane-dense final store: extract the valid (H, W) frame in-kernel.
    o_ref[0] = jnp.dot(h, ef_ref[...], preferred_element_type=jnp.float32)


# ----------------------------------------------------------------------------
# Wrapper: one pallas_call for the whole forward pass.
# ----------------------------------------------------------------------------
def conv_deconv_forward(params, x):
    N, C, H, W = x.shape
    assert C == 1
    cfg, consts = _build_plan(H, W)

    x_flat = x.reshape(N, 1, H * W)
    weight_args = [params[k] for k in
                   ("w1", "b1", "w2", "b2", "w3", "b3",
                    "wd1", "bd1", "wd2", "bd2", "wd3", "bd3")]
    const_args = [jnp.asarray(consts[k]) for k in
                  ("S1", "IM1", "S2", "IM2", "P3",
                   "UV1", "UI1", "T1", "UV2", "UI2", "T2", "EF")]
    args = [x_flat] + weight_args + const_args

    def full_spec(a):
        return pl.BlockSpec(a.shape, lambda n: (0,) * a.ndim)

    in_specs = ([pl.BlockSpec((1, 1, H * W), lambda n: (n, 0, 0))] +
                [full_spec(a) for a in args[1:]])

    out = pl.pallas_call(
        functools.partial(_fused_forward_kernel, cfg=cfg),
        out_shape=jax.ShapeDtypeStruct((N, 1, H * W), jnp.float32),
        grid=(N,),
        in_specs=in_specs,
        out_specs=pl.BlockSpec((1, 1, H * W), lambda n: (n, 0, 0)),
        scratch_shapes=[pltpu.VMEM((cfg["patch_rows"], cfg["patch_cols"]),
                                   jnp.float32)],
        compiler_params=pltpu.CompilerParams(
            dimension_semantics=("parallel",)),
    )(*args)
    return out.reshape(N, 1, H, W)


# ----------------------------------------------------------------------------
# Parameter init (deterministic; mirrors nn.init.xavier_uniform_ + default
# bias init).  Weight layout conversion (tap-stacked K, deconv flip/transpose)
# is hoisted here so the jitted graph never re-lays-out weights.
# ----------------------------------------------------------------------------
def _xavier_uniform(key, shape):
    rf = shape[2] * shape[3]
    fan_in, fan_out = shape[1] * rf, shape[0] * rf
    bound = (6.0 / (fan_in + fan_out)) ** 0.5
    return jax.random.uniform(key, shape, jnp.float32, -bound, bound)


def _bias_init(key, n_out, w_shape):
    fan_in = w_shape[1] * w_shape[2] * w_shape[3]
    bound = 1.0 / (fan_in ** 0.5)
    return jax.random.uniform(key, (n_out, 1), jnp.float32, -bound, bound)


def _conv_weight_mat(w):
    """Conv2d weight (Cout, Cin, kh, kw) -> (Cout, kh*kw*Cin) bf16,
    K ordered tap-major / Cin-minor to match the kernel's patch stacking."""
    cout, cin, kh, kw = w.shape
    return (jnp.transpose(w, (0, 2, 3, 1))
            .reshape(cout, kh * kw * cin).astype(COMPUTE_DTYPE))


def _deconv_weight_mat(w_t):
    """ConvTranspose2d weight (Cin, Cout, kh, kw) -> weight matrix of the
    equivalent valid conv over the halo-padded input (spatial flip + swap)."""
    w_conv = jnp.transpose(jnp.flip(w_t, axis=(2, 3)), (1, 0, 2, 3))
    return _conv_weight_mat(w_conv)


def init_params(key):
    ks = jax.random.split(key, 12)
    # PyTorch layouts: Conv2d (Cout,Cin,kh,kw); ConvTranspose2d (Cin,Cout,kh,kw)
    w1 = _xavier_uniform(ks[0], (4, 1, 3, 3))
    w2 = _xavier_uniform(ks[1], (8, 4, 3, 3))
    w3 = _xavier_uniform(ks[2], (16, 8, 2, 2))
    wd1 = _xavier_uniform(ks[3], (16, 8, 2, 2))
    wd2 = _xavier_uniform(ks[4], (8, 4, 3, 3))
    wd3 = _xavier_uniform(ks[5], (4, 1, 3, 3))
    return {
        "w1": _conv_weight_mat(w1),     "b1": _bias_init(ks[6], 4, w1.shape),
        "w2": _conv_weight_mat(w2),     "b2": _bias_init(ks[7], 8, w2.shape),
        "w3": _conv_weight_mat(w3),     "b3": _bias_init(ks[8], 16, w3.shape),
        "wd1": _deconv_weight_mat(wd1), "bd1": _bias_init(ks[9], 8, wd1.shape),
        "wd2": _deconv_weight_mat(wd2), "bd2": _bias_init(ks[10], 4, wd2.shape),
        "wd3": _deconv_weight_mat(wd3), "bd3": _bias_init(ks[11], 1, wd3.shape),
    }


if __name__ == "__main__":
    key = jax.random.PRNGKey(0)
    pkey, xkey = jax.random.split(key)
    params = init_params(pkey)
    # NCHW input, single channel (16x16 keeps every pool/unpool size valid).
    x = jax.random.normal(xkey, (2, 1, 16, 16), jnp.float32)

    fwd = jax.jit(conv_deconv_forward)
    out = fwd(params, x)
    jax.block_until_ready(out)
    assert out.shape == (2, 1, 16, 16), out.shape
    assert out.dtype == jnp.float32
    assert bool(jnp.all(jnp.isfinite(out)))
    print("KERNEL_OK")
</pallas_src>

<mosaic_0001>
module attributes {stable_mosaic.version = 11 : i64} {
  func.func @_fused_forward_kernel(%arg0: i32, %arg1: memref<1x1x256xf32, #tpu.memory_space<vmem>>, %arg2: memref<4x9xbf16, #tpu.memory_space<vmem>>, %arg3: memref<4x1xf32, #tpu.memory_space<vmem>>, %arg4: memref<8x36xbf16, #tpu.memory_space<vmem>>, %arg5: memref<8x1xf32, #tpu.memory_space<vmem>>, %arg6: memref<16x32xbf16, #tpu.memory_space<vmem>>, %arg7: memref<16x1xf32, #tpu.memory_space<vmem>>, %arg8: memref<8x64xbf16, #tpu.memory_space<vmem>>, %arg9: memref<8x1xf32, #tpu.memory_space<vmem>>, %arg10: memref<4x72xbf16, #tpu.memory_space<vmem>>, %arg11: memref<4x1xf32, #tpu.memory_space<vmem>>, %arg12: memref<1x36xbf16, #tpu.memory_space<vmem>>, %arg13: memref<1x1xf32, #tpu.memory_space<vmem>>, %arg14: memref<222x196xf32, #tpu.memory_space<vmem>>, %arg15: memref<4x49xf32, #tpu.memory_space<vmem>>, %arg16: memref<25x16xf32, #tpu.memory_space<vmem>>, %arg17: memref<4x4xf32, #tpu.memory_space<vmem>>, %arg18: memref<1x9xf32, #tpu.memory_space<vmem>>, %arg19: memref<5x81xf32, #tpu.memory_space<vmem>>, %arg20: memref<4x81xf32, #tpu.memory_space<vmem>>, %arg21: memref<1x81xf32, #tpu.memory_space<vmem>>, %arg22: memref<61x324xf32, #tpu.memory_space<vmem>>, %arg23: memref<49x324xf32, #tpu.memory_space<vmem>>, %arg24: memref<1x324xf32, #tpu.memory_space<vmem>>, %arg25: memref<286x256xf32, #tpu.memory_space<vmem>>, %arg26: memref<1x1x256xf32, #tpu.memory_space<vmem>>, %arg27: memref<72x384xf32, #tpu.memory_space<vmem>>) attributes {dimension_semantics = [#tpu.dimension_semantics<parallel>], iteration_bounds = array<i64: 2>, scalar_prefetch = 0 : i64, scratch_operands = 1 : i64, tpu.core_type = #tpu.core_type<tc>, window_params = [{transform_indices = @transform_0, window_bounds = array<i64: 1, 1, 256>}, {pipeline_mode = #tpu.pipeline_mode<synchronous>, transform_indices = @transform_1, window_bounds = array<i64: 4, 9>}, {pipeline_mode = #tpu.pipeline_mode<synchronous>, transform_indices = @transform_2, window_bounds = array<i64: 4, 1>}, {pipeline_mode = #tpu.pipeline_mode<synchronous>, transform_indices = @transform_3, window_bounds = array<i64: 8, 36>}, {pipeline_mode = #tpu.pipeline_mode<synchronous>, transform_indices = @transform_4, window_bounds = array<i64: 8, 1>}, {pipeline_mode = #tpu.pipeline_mode<synchronous>, transform_indices = @transform_5, window_bounds = array<i64: 16, 32>}, {pipeline_mode = #tpu.pipeline_mode<synchronous>, transform_indices = @transform_6, window_bounds = array<i64: 16, 1>}, {pipeline_mode = #tpu.pipeline_mode<synchronous>, transform_indices = @transform_7, window_bounds = array<i64: 8, 64>}, {pipeline_mode = #tpu.pipeline_mode<synchronous>, transform_indices = @transform_8, window_bounds = array<i64: 8, 1>}, {pipeline_mode = #tpu.pipeline_mode<synchronous>, transform_indices = @transform_9, window_bounds = array<i64: 4, 72>}, {pipeline_mode = #tpu.pipeline_mode<synchronous>, transform_indices = @transform_10, window_bounds = array<i64: 4, 1>}, {pipeline_mode = #tpu.pipeline_mode<synchronous>, transform_indices = @transform_11, window_bounds = array<i64: 1, 36>}, {pipeline_mode = #tpu.pipeline_mode<synchronous>, transform_indices = @transform_12, window_bounds = array<i64: 1, 1>}, {pipeline_mode = #tpu.pipeline_mode<synchronous>, transform_indices = @transform_13, window_bounds = array<i64: 222, 196>}, {pipeline_mode = #tpu.pipeline_mode<synchronous>, transform_indices = @transform_14, window_bounds = array<i64: 4, 49>}, {pipeline_mode = #tpu.pipeline_mode<synchronous>, transform_indices = @transform_15, window_bounds = array<i64: 25, 16>}, {pipeline_mode = #tpu.pipeline_mode<synchronous>, transform_indices = @transform_16, window_bounds = array<i64: 4, 4>}, {pipeline_mode = #tpu.pipeline_mode<synchronous>, transform_indices = @transform_17, window_bounds = array<i64: 1, 9>}, {pipeline_mode = #tpu.pipeline_mode<synchronous>, transform_indices = @transform_18, window_bounds = array<i64: 5, 81>}, {pipeline_mode = #tpu.pipeline_mode<synchronous>, transform_indices = @transform_19, window_bounds = array<i64: 4, 81>}, {pipeline_mode = #tpu.pipeline_mode<synchronous>, transform_indices = @transform_20, window_bounds = array<i64: 1, 81>}, {pipeline_mode = #tpu.pipeline_mode<synchronous>, transform_indices = @transform_21, window_bounds = array<i64: 61, 324>}, {pipeline_mode = #tpu.pipeline_mode<synchronous>, transform_indices = @transform_22, window_bounds = array<i64: 49, 324>}, {pipeline_mode = #tpu.pipeline_mode<synchronous>, transform_indices = @transform_23, window_bounds = array<i64: 1, 324>}, {pipeline_mode = #tpu.pipeline_mode<synchronous>, transform_indices = @transform_24, window_bounds = array<i64: 286, 256>}, {transform_indices = @transform_25, window_bounds = array<i64: 1, 1, 256>}]} {
    %c0 = arith.constant 0 : index
    %c0_0 = arith.constant 0 : index
    %c0_1 = arith.constant 0 : index
    %0 = vector.load %arg1[%c0, %c0_0, %c0_1] : memref<1x1x256xf32, #tpu.memory_space<vmem>>, vector<1x1x256xf32>
    %1 = vector.shape_cast %0 : vector<1x1x256xf32> to vector<1x256xf32>
    %2 = vector.extract_strided_slice %1 {offsets = [0, 0], sizes = [1, 222], strides = [1, 1]} : vector<1x256xf32> to vector<1x222xf32>
    %c0_2 = arith.constant 0 : index
    %c0_3 = arith.constant 0 : index
    %3 = vector.load %arg27[%c0_2, %c0_3] : memref<72x384xf32, #tpu.memory_space<vmem>>, vector<1x222xf32>
    tpu.vector_store %arg27[%c0_2, %c0_3], %2 {strides = array<i32>} : memref<72x384xf32, #tpu.memory_space<vmem>>, vector<1x222xf32>,
    %4 = vector.extract_strided_slice %1 {offsets = [0, 1], sizes = [1, 222], strides = [1, 1]} : vector<1x256xf32> to vector<1x222xf32>
    %c1 = arith.constant 1 : index
    %c0_4 = arith.constant 0 : index
    %5 = vector.load %arg27[%c1, %c0_4] : memref<72x384xf32, #tpu.memory_space<vmem>>, vector<1x222xf32>
    tpu.vector_store %arg27[%c1, %c0_4], %4 {strides = array<i32>} : memref<72x384xf32, #tpu.memory_space<vmem>>, vector<1x222xf32>,
    %6 = vector.extract_strided_slice %1 {offsets = [0, 2], sizes = [1, 222], strides = [1, 1]} : vector<1x256xf32> to vector<1x222xf32>
    %c2 = arith.constant 2 : index
    %c0_5 = arith.constant 0 : index
    %7 = vector.load %arg27[%c2, %c0_5] : memref<72x384xf32, #tpu.memory_space<vmem>>, vector<1x222xf32>
    tpu.vector_store %arg27[%c2, %c0_5], %6 {strides = array<i32>} : memref<72x384xf32, #tpu.memory_space<vmem>>, vector<1x222xf32>,
    %8 = vector.extract_strided_slice %1 {offsets = [0, 16], sizes = [1, 222], strides = [1, 1]} : vector<1x256xf32> to vector<1x222xf32>
    %c3 = arith.constant 3 : index
    %c0_6 = arith.constant 0 : index
    %9 = vector.load %arg27[%c3, %c0_6] : memref<72x384xf32, #tpu.memory_space<vmem>>, vector<1x222xf32>
    tpu.vector_store %arg27[%c3, %c0_6], %8 {strides = array<i32>} : memref<72x384xf32, #tpu.memory_space<vmem>>, vector<1x222xf32>,
    %10 = vector.extract_strided_slice %1 {offsets = [0, 17], sizes = [1, 222], strides = [1, 1]} : vector<1x256xf32> to vector<1x222xf32>
    %c4 = arith.constant 4 : index
    %c0_7 = arith.constant 0 : index
    %11 = vector.load %arg27[%c4, %c0_7] : memref<72x384xf32, #tpu.memory_space<vmem>>, vector<1x222xf32>
    tpu.vector_store %arg27[%c4, %c0_7], %10 {strides = array<i32>} : memref<72x384xf32, #tpu.memory_space<vmem>>, vector<1x222xf32>,
    %12 = vector.extract_strided_slice %1 {offsets = [0, 18], sizes = [1, 222], strides = [1, 1]} : vector<1x256xf32> to vector<1x222xf32>
    %c5 = arith.constant 5 : index
    %c0_8 = arith.constant 0 : index
    %13 = vector.load %arg27[%c5, %c0_8] : memref<72x384xf32, #tpu.memory_space<vmem>>, vector<1x222xf32>
    tpu.vector_store %arg27[%c5, %c0_8], %12 {strides = array<i32>} : memref<72x384xf32, #tpu.memory_space<vmem>>, vector<1x222xf32>,
    %14 = vector.extract_strided_slice %1 {offsets = [0, 32], sizes = [1, 222], strides = [1, 1]} : vector<1x256xf32> to vector<1x222xf32>
    %c6 = arith.constant 6 : index
    %c0_9 = arith.constant 0 : index
    %15 = vector.load %arg27[%c6, %c0_9] : memref<72x384xf32, #tpu.memory_space<vmem>>, vector<1x222xf32>
    tpu.vector_store %arg27[%c6, %c0_9], %14 {strides = array<i32>} : memref<72x384xf32, #tpu.memory_space<vmem>>, vector<1x222xf32>,
    %16 = vector.extract_strided_slice %1 {offsets = [0, 33], sizes = [1, 222], strides = [1, 1]} : vector<1x256xf32> to vector<1x222xf32>
    %c7 = arith.constant 7 : index
    %c0_10 = arith.constant 0 : index
    %17 = vector.load %arg27[%c7, %c0_10] : memref<72x384xf32, #tpu.memory_space<vmem>>, vector<1x222xf32>
    tpu.vector_store %arg27[%c7, %c0_10], %16 {strides = array<i32>} : memref<72x384xf32, #tpu.memory_space<vmem>>, vector<1x222xf32>,
    %18 = vector.extract_strided_slice %1 {offsets = [0, 34], sizes = [1, 222], strides = [1, 1]} : vector<1x256xf32> to vector<1x222xf32>
    %c8 = arith.constant 8 : index
    %c0_11 = arith.constant 0 : index
    %19 = vector.load %arg27[%c8, %c0_11] : memref<72x384xf32, #tpu.memory_space<vmem>>, vector<1x222xf32>
    tpu.vector_store %arg27[%c8, %c0_11], %18 {strides = array<i32>} : memref<72x384xf32, #tpu.memory_space<vmem>>, vector<1x222xf32>,
    %c0_12 = arith.constant 0 : index
    %c0_13 = arith.constant 0 : index
    %20 = vector.load %arg27[%c0_12, %c0_13] : memref<72x384xf32, #tpu.memory_space<vmem>>, vector<9x222xf32>
    %21 = arith.truncf %20 : vector<9x222xf32> to vector<9x222xbf16>
    %c0_14 = arith.constant 0 : index
    %c0_15 = arith.constant 0 : index
    %22 = vector.load %arg2[%c0_14, %c0_15] : memref<4x9xbf16, #tpu.memory_space<vmem>>, vector<4x9xbf16>
    %cst = arith.constant dense<0.000000e+00> : vector<4x222xf32>
    %23 = tpu.matmul %22, %21, %cst {dimension_numbers = #tpu.dot_dimension_numbers<[1], [0], [0], [1], [0, 0, 1, 1], [], []>} : vector<4x9xbf16>, vector<9x222xbf16>, vector<4x222xf32> -> vector<4x222xf32>
    %c0_16 = arith.constant 0 : index
    %c0_17 = arith.constant 0 : index
    %24 = vector.load %arg3[%c0_16, %c0_17] : memref<4x1xf32, #tpu.memory_space<vmem>>, vector<4x1xf32>
    %25 = vector.broadcast %24 : vector<4x1xf32> to vector<4x222xf32>
    %26 = arith.addf %23, %25 : vector<4x222xf32>
    %cst_18 = arith.constant 0.000000e+00 : f32
    %27 = vector.broadcast %cst_18 : f32 to vector<4x222xf32>
    %28 = arith.maximumf %26, %27 : vector<4x222xf32>
    %c0_19 = arith.constant 0 : index
    %c0_20 = arith.constant 0 : index
    %29 = vector.load %arg14[%c0_19, %c0_20] : memref<222x196xf32, #tpu.memory_space<vmem>>, vector<222x196xf32>
    %cst_21 = arith.constant dense<0.000000e+00> : vector<4x196xf32>
    %30 = tpu.matmul %28, %29, %cst_21 {dimension_numbers = #tpu.dot_dimension_numbers<[1], [0], [0], [1], [0, 0, 1, 1], [], []>} : vector<4x222xf32>, vector<222x196xf32>, vector<4x196xf32> -> vector<4x196xf32>
    %31 = vector.extract_strided_slice %30 {offsets = [0, 0], sizes = [4, 49], strides = [1, 1]} : vector<4x196xf32> to vector<4x49xf32>
    %32 = vector.extract_strided_slice %30 {offsets = [0, 49], sizes = [4, 49], strides = [1, 1]} : vector<4x196xf32> to vector<4x49xf32>
    %33 = vector.extract_strided_slice %30 {offsets = [0, 98], sizes = [4, 49], strides = [1, 1]} : vector<4x196xf32> to vector<4x49xf32>
    %34 = vector.extract_strided_slice %30 {offsets = [0, 147], sizes = [4, 49], strides = [1, 1]} : vector<4x196xf32> to vector<4x49xf32>
    %35 = arith.maximumf %31, %32 : vector<4x49xf32>
    %36 = arith.maximumf %33, %34 : vector<4x49xf32>
    %37 = arith.maximumf %35, %36 : vector<4x49xf32>
    %c0_22 = arith.constant 0 : index
    %c0_23 = arith.constant 0 : index
    %38 = vector.load %arg15[%c0_22, %c0_23] : memref<4x49xf32, #tpu.memory_space<vmem>>, vector<4x49xf32>
    %39 = arith.cmpf oeq, %31, %37 : vector<4x49xf32>
    %40 = vector.extract_strided_slice %38 {offsets = [0, 0], sizes = [1, 49], strides = [1, 1]} : vector<4x49xf32> to vector<1x49xf32>
    %41 = arith.cmpf oeq, %32, %37 : vector<4x49xf32>
    %42 = vector.extract_strided_slice %38 {offsets = [1, 0], sizes = [1, 49], strides = [1, 1]} : vector<4x49xf32> to vector<1x49xf32>
    %43 = arith.cmpf oeq, %33, %37 : vector<4x49xf32>
    %44 = vector.extract_strided_slice %38 {offsets = [2, 0], sizes = [1, 49], strides = [1, 1]} : vector<4x49xf32> to vector<1x49xf32>
    %45 = vector.extract_strided_slice %38 {offsets = [3, 0], sizes = [1, 49], strides = [1, 1]} : vector<4x49xf32> to vector<1x49xf32>
    %46 = vector.shape_cast %44 : vector<1x49xf32> to vector<1x49xf32>
    %47 = vector.broadcast %46 : vector<1x49xf32> to vector<4x49xf32>
    %48 = vector.shape_cast %45 : vector<1x49xf32> to vector<1x49xf32>
    %49 = vector.broadcast %48 : vector<1x49xf32> to vector<4x49xf32>
    %50 = arith.select %43, %47, %49 : vector<4x49xi1>, vector<4x49xf32>
    %51 = vector.shape_cast %42 : vector<1x49xf32> to vector<1x49xf32>
    %52 = vector.broadcast %51 : vector<1x49xf32> to vector<4x49xf32>
    %53 = arith.select %41, %52, %50 : vector<4x49xi1>, vector<4x49xf32>
    %54 = vector.shape_cast %40 : vector<1x49xf32> to vector<1x49xf32>
    %55 = vector.broadcast %54 : vector<1x49xf32> to vector<4x49xf32>
    %56 = arith.select %39, %55, %53 : vector<4x49xi1>, vector<4x49xf32>
    %57 = vector.extract_strided_slice %37 {offsets = [0, 0], sizes = [4, 25], strides = [1, 1]} : vector<4x49xf32> to vector<4x25xf32>
    %c0_24 = arith.constant 0 : index
    %c0_25 = arith.constant 0 : index
    %58 = vector.load %arg27[%c0_24, %c0_25] : memref<72x384xf32, #tpu.memory_space<vmem>>, vector<4x25xf32>
    tpu.vector_store %arg27[%c0_24, %c0_25], %57 {strides = array<i32>} : memref<72x384xf32, #tpu.memory_space<vmem>>, vector<4x25xf32>,
    %59 = vector.extract_strided_slice %37 {offsets = [0, 1], sizes = [4, 25], strides = [1, 1]} : vector<4x49xf32> to vector<4x25xf32>
    %c4_26 = arith.constant 4 : index
    %c0_27 = arith.constant 0 : index
    %60 = vector.load %arg27[%c4_26, %c0_27] : memref<72x384xf32, #tpu.memory_space<vmem>>, vector<4x25xf32>
    tpu.vector_store %arg27[%c4_26, %c0_27], %59 {strides = array<i32>} : memref<72x384xf32, #tpu.memory_space<vmem>>, vector<4x25xf32>,
    %61 = vector.extract_strided_slice %37 {offsets = [0, 2], sizes = [4, 25], strides = [1, 1]} : vector<4x49xf32> to vector<4x25xf32>
    %c8_28 = arith.constant 8 : index
    %c0_29 = arith.constant 0 : index
    %62 = vector.load %arg27[%c8_28, %c0_29] : memref<72x384xf32, #tpu.memory_space<vmem>>, vector<4x25xf32>
    tpu.vector_store %arg27[%c8_28, %c0_29], %61 {strides = array<i32>} : memref<72x384xf32, #tpu.memory_space<vmem>>, vector<4x25xf32>,
    %63 = vector.extract_strided_slice %37 {offsets = [0, 7], sizes = [4, 25], strides = [1, 1]} : vector<4x49xf32> to vector<4x25xf32>
    %c12 = arith.constant 12 : index
    %c0_30 = arith.constant 0 : index
    %64 = vector.load %arg27[%c12, %c0_30] : memref<72x384xf32, #tpu.memory_space<vmem>>, vector<4x25xf32>
    tpu.vector_store %arg27[%c12, %c0_30], %63 {strides = array<i32>} : memref<72x384xf32, #tpu.memory_space<vmem>>, vector<4x25xf32>,
    %65 = vector.extract_strided_slice %37 {offsets = [0, 8], sizes = [4, 25], strides = [1, 1]} : vector<4x49xf32> to vector<4x25xf32>
    %c16 = arith.constant 16 : index
    %c0_31 = arith.constant 0 : index
    %66 = vector.load %arg27[%c16, %c0_31] : memref<72x384xf32, #tpu.memory_space<vmem>>, vector<4x25xf32>
    tpu.vector_store %arg27[%c16, %c0_31], %65 {strides = array<i32>} : memref<72x384xf32, #tpu.memory_space<vmem>>, vector<4x25xf32>,
    %67 = vector.extract_strided_slice %37 {offsets = [0, 9], sizes = [4, 25], strides = [1, 1]} : vector<4x49xf32> to vector<4x25xf32>
    %c20 = arith.constant 20 : index
    %c0_32 = arith.constant 0 : index
    %68 = vector.load %arg27[%c20, %c0_32] : memref<72x384xf32, #tpu.memory_space<vmem>>, vector<4x25xf32>
    tpu.vector_store %arg27[%c20, %c0_32], %67 {strides = array<i32>} : memref<72x384xf32, #tpu.memory_space<vmem>>, vector<4x25xf32>,
    %69 = vector.extract_strided_slice %37 {offsets = [0, 14], sizes = [4, 25], strides = [1, 1]} : vector<4x49xf32> to vector<4x25xf32>
    %c24 = arith.constant 24 : index
    %c0_33 = arith.constant 0 : index
    %70 = vector.load %arg27[%c24, %c0_33] : memref<72x384xf32, #tpu.memory_space<vmem>>, vector<4x25xf32>
    tpu.vector_store %arg27[%c24, %c0_33], %69 {strides = array<i32>} : memref<72x384xf32, #tpu.memory_space<vmem>>, vector<4x25xf32>,
    %71 = vector.extract_strided_slice %37 {offsets = [0, 15], sizes = [4, 25], strides = [1, 1]} : vector<4x49xf32> to vector<4x25xf32>
    %c28 = arith.constant 28 : index
    %c0_34 = arith.constant 0 : index
    %72 = vector.load %arg27[%c28, %c0_34] : memref<72x384xf32, #tpu.memory_space<vmem>>, vector<4x25xf32>
    tpu.vector_store %arg27[%c28, %c0_34], %71 {strides = array<i32>} : memref<72x384xf32, #tpu.memory_space<vmem>>, vector<4x25xf32>,
    %73 = vector.extract_strided_slice %37 {offsets = [0, 16], sizes = [4, 25], strides = [1, 1]} : vector<4x49xf32> to vector<4x25xf32>
    %c32 = arith.constant 32 : index
    %c0_35 = arith.constant 0 : index
    %74 = vector.load %arg27[%c32, %c0_35] : memref<72x384xf32, #tpu.memory_space<vmem>>, vector<4x25xf32>
    tpu.vector_store %arg27[%c32, %c0_35], %73 {strides = array<i32>} : memref<72x384xf32, #tpu.memory_space<vmem>>, vector<4x25xf32>,
    %c0_36 = arith.constant 0 : index
    %c0_37 = arith.constant 0 : index
    %75 = vector.load %arg27[%c0_36, %c0_37] : memref<72x384xf32, #tpu.memory_space<vmem>>, vector<36x25xf32>
    %76 = arith.truncf %75 : vector<36x25xf32> to vector<36x25xbf16>
    %c0_38 = arith.constant 0 : index
    %c0_39 = arith.constant 0 : index
    %77 = vector.load %arg4[%c0_38, %c0_39] : memref<8x36xbf16, #tpu.memory_space<vmem>>, vector<8x36xbf16>
    %cst_40 = arith.constant dense<0.000000e+00> : vector<8x25xf32>
    %78 = tpu.matmul %77, %76, %cst_40 {dimension_numbers = #tpu.dot_dimension_numbers<[1], [0], [0], [1], [0, 0, 1, 1], [], []>} : vector<8x36xbf16>, vector<36x25xbf16>, vector<8x25xf32> -> vector<8x25xf32>
    %c0_41 = arith.constant 0 : index
    %c0_42 = arith.constant 0 : index
    %79 = vector.load %arg5[%c0_41, %c0_42] : memref<8x1xf32, #tpu.memory_space<vmem>>, vector<8x1xf32>
    %80 = vector.broadcast %79 : vector<8x1xf32> to vector<8x25xf32>
    %81 = arith.addf %78, %80 : vector<8x25xf32>
    %cst_43 = arith.constant 0.000000e+00 : f32
    %82 = vector.broadcast %cst_43 : f32 to vector<8x25xf32>
    %83 = arith.cmpf oge, %81, %82 : vector<8x25xf32>
    %cst_44 = arith.constant 5.000000e-02 : f32
    %84 = vector.broadcast %cst_44 : f32 to vector<8x25xf32>
    %85 = arith.mulf %84, %81 : vector<8x25xf32>
    %86 = arith.select %83, %81, %85 : vector<8x25xi1>, vector<8x25xf32>
    %c0_45 = arith.constant 0 : index
    %c0_46 = arith.constant 0 : index
    %87 = vector.load %arg16[%c0_45, %c0_46] : memref<25x16xf32, #tpu.memory_space<vmem>>, vector<25x16xf32>
    %cst_47 = arith.constant dense<0.000000e+00> : vector<8x16xf32>
    %88 = tpu.matmul %86, %87, %cst_47 {dimension_numbers = #tpu.dot_dimension_numbers<[1], [0], [0], [1], [0, 0, 1, 1], [], []>} : vector<8x25xf32>, vector<25x16xf32>, vector<8x16xf32> -> vector<8x16xf32>
    %89 = vector.extract_strided_slice %88 {offsets = [0, 0], sizes = [8, 4], strides = [1, 1]} : vector<8x16xf32> to vector<8x4xf32>
    %90 = vector.extract_strided_slice %88 {offsets = [0, 4], sizes = [8, 4], strides = [1, 1]} : vector<8x16xf32> to vector<8x4xf32>
    %91 = vector.extract_strided_slice %88 {offsets = [0, 8], sizes = [8, 4], strides = [1, 1]} : vector<8x16xf32> to vector<8x4xf32>
    %92 = vector.extract_strided_slice %88 {offsets = [0, 12], sizes = [8, 4], strides = [1, 1]} : vector<8x16xf32> to vector<8x4xf32>
    %93 = arith.maximumf %89, %90 : vector<8x4xf32>
    %94 = arith.maximumf %91, %92 : vector<8x4xf32>
    %95 = arith.maximumf %93, %94 : vector<8x4xf32>
    %c0_48 = arith.constant 0 : index
    %c0_49 = arith.constant 0 : index
    %96 = vector.load %arg17[%c0_48, %c0_49] : memref<4x4xf32, #tpu.memory_space<vmem>>, vector<4x4xf32>
    %97 = arith.cmpf oeq, %89, %95 : vector<8x4xf32>
    %98 = vector.extract_strided_slice %96 {offsets = [0, 0], sizes = [1, 4], strides = [1, 1]} : vector<4x4xf32> to vector<1x4xf32>
    %99 = arith.cmpf oeq, %90, %95 : vector<8x4xf32>
    %100 = vector.extract_strided_slice %96 {offsets = [1, 0], sizes = [1, 4], strides = [1, 1]} : vector<4x4xf32> to vector<1x4xf32>
    %101 = arith.cmpf oeq, %91, %95 : vector<8x4xf32>
    %102 = vector.extract_strided_slice %96 {offsets = [2, 0], sizes = [1, 4], strides = [1, 1]} : vector<4x4xf32> to vector<1x4xf32>
    %103 = vector.extract_strided_slice %96 {offsets = [3, 0], sizes = [1, 4], strides = [1, 1]} : vector<4x4xf32> to vector<1x4xf32>
    %104 = vector.shape_cast %102 : vector<1x4xf32> to vector<1x4xf32>
    %105 = vector.broadcast %104 : vector<1x4xf32> to vector<8x4xf32>
    %106 = vector.shape_cast %103 : vector<1x4xf32> to vector<1x4xf32>
    %107 = vector.broadcast %106 : vector<1x4xf32> to vector<8x4xf32>
    %108 = arith.select %101, %105, %107 : vector<8x4xi1>, vector<8x4xf32>
    %109 = vector.shape_cast %100 : vector<1x4xf32> to vector<1x4xf32>
    %110 = vector.broadcast %109 : vector<1x4xf32> to vector<8x4xf32>
    %111 = arith.select %99, %110, %108 : vector<8x4xi1>, vector<8x4xf32>
    %112 = vector.shape_cast %98 : vector<1x4xf32> to vector<1x4xf32>
    %113 = vector.broadcast %112 : vector<1x4xf32> to vector<8x4xf32>
    %114 = arith.select %97, %113, %111 : vector<8x4xi1>, vector<8x4xf32>
    %115 = vector.extract_strided_slice %95 {offsets = [0, 0], sizes = [8, 1], strides = [1, 1]} : vector<8x4xf32> to vector<8x1xf32>
    %c0_50 = arith.constant 0 : index
    %c0_51 = arith.constant 0 : index
    %116 = vector.load %arg27[%c0_50, %c0_51] : memref<72x384xf32, #tpu.memory_space<vmem>>, vector<8x1xf32>
    tpu.vector_store %arg27[%c0_50, %c0_51], %115 {strides = array<i32>} : memref<72x384xf32, #tpu.memory_space<vmem>>, vector<8x1xf32>,
    %117 = vector.extract_strided_slice %95 {offsets = [0, 1], sizes = [8, 1], strides = [1, 1]} : vector<8x4xf32> to vector<8x1xf32>
    %c8_52 = arith.constant 8 : index
    %c0_53 = arith.constant 0 : index
    %118 = vector.load %arg27[%c8_52, %c0_53] : memref<72x384xf32, #tpu.memory_space<vmem>>, vector<8x1xf32>
    tpu.vector_store %arg27[%c8_52, %c0_53], %117 {strides = array<i32>} : memref<72x384xf32, #tpu.memory_space<vmem>>, vector<8x1xf32>,
    %119 = vector.extract_strided_slice %95 {offsets = [0, 2], sizes = [8, 1], strides = [1, 1]} : vector<8x4xf32> to vector<8x1xf32>
    %c16_54 = arith.constant 16 : index
    %c0_55 = arith.constant 0 : index
    %120 = vector.load %arg27[%c16_54, %c0_55] : memref<72x384xf32, #tpu.memory_space<vmem>>, vector<8x1xf32>
    tpu.vector_store %arg27[%c16_54, %c0_55], %119 {strides = array<i32>} : memref<72x384xf32, #tpu.memory_space<vmem>>, vector<8x1xf32>,
    %121 = vector.extract_strided_slice %95 {offsets = [0, 3], sizes = [8, 1], strides = [1, 1]} : vector<8x4xf32> to vector<8x1xf32>
    %c24_56 = arith.constant 24 : index
    %c0_57 = arith.constant 0 : index
    %122 = vector.load %arg27[%c24_56, %c0_57] : memref<72x384xf32, #tpu.memory_space<vmem>>, vector<8x1xf32>
    tpu.vector_store %arg27[%c24_56, %c0_57], %121 {strides = array<i32>} : memref<72x384xf32, #tpu.memory_space<vmem>>, vector<8x1xf32>,
    %c0_58 = arith.constant 0 : index
    %c0_59 = arith.constant 0 : index
    %123 = vector.load %arg27[%c0_58, %c0_59] : memref<72x384xf32, #tpu.memory_space<vmem>>, vector<32x1xf32>
    %124 = arith.truncf %123 : vector<32x1xf32> to vector<32x1xbf16>
    %c0_60 = arith.constant 0 : index
    %c0_61 = arith.constant 0 : index
    %125 = vector.load %arg6[%c0_60, %c0_61] : memref<16x32xbf16, #tpu.memory_space<vmem>>, vector<16x32xbf16>
    %cst_62 = arith.constant dense<0.000000e+00> : vector<16x1xf32>
    %126 = tpu.matmul %125, %124, %cst_62 {dimension_numbers = #tpu.dot_dimension_numbers<[1], [0], [0], [1], [0, 0, 1, 1], [], []>} : vector<16x32xbf16>, vector<32x1xbf16>, vector<16x1xf32> -> vector<16x1xf32>
    %c0_63 = arith.constant 0 : index
    %c0_64 = arith.constant 0 : index
    %127 = vector.load %arg7[%c0_63, %c0_64] : memref<16x1xf32, #tpu.memory_space<vmem>>, vector<16x1xf32>
    %128 = arith.addf %126, %127 : vector<16x1xf32>
    %cst_65 = arith.constant 0.000000e+00 : f32
    %129 = vector.broadcast %cst_65 : f32 to vector<16x1xf32>
    %130 = arith.cmpf oge, %128, %129 : vector<16x1xf32>
    %cst_66 = arith.constant 5.000000e-02 : f32
    %131 = vector.broadcast %cst_66 : f32 to vector<16x1xf32>
    %132 = arith.mulf %131, %128 : vector<16x1xf32>
    %133 = arith.select %130, %128, %132 : vector<16x1xi1>, vector<16x1xf32>
    %c0_67 = arith.constant 0 : index
    %c0_68 = arith.constant 0 : index
    %134 = vector.load %arg18[%c0_67, %c0_68] : memref<1x9xf32, #tpu.memory_space<vmem>>, vector<1x9xf32>
    %135 = vector.broadcast %133 : vector<16x1xf32> to vector<16x9xf32>
    %136 = vector.broadcast %134 : vector<1x9xf32> to vector<16x9xf32>
    %137 = arith.mulf %135, %136 : vector<16x9xf32>
    %138 = vector.extract_strided_slice %137 {offsets = [0, 0], sizes = [16, 5], strides = [1, 1]} : vector<16x9xf32> to vector<16x5xf32>
    %c0_69 = arith.constant 0 : index
    %c0_70 = arith.constant 0 : index
    %139 = vector.load %arg27[%c0_69, %c0_70] : memref<72x384xf32, #tpu.memory_space<vmem>>, vector<16x5xf32>
    tpu.vector_store %arg27[%c0_69, %c0_70], %138 {strides = array<i32>} : memref<72x384xf32, #tpu.memory_space<vmem>>, vector<16x5xf32>,
    %140 = vector.extract_strided_slice %137 {offsets = [0, 1], sizes = [16, 5], strides = [1, 1]} : vector<16x9xf32> to vector<16x5xf32>
    %c16_71 = arith.constant 16 : index
    %c0_72 = arith.constant 0 : index
    %141 = vector.load %arg27[%c16_71, %c0_72] : memref<72x384xf32, #tpu.memory_space<vmem>>, vector<16x5xf32>
    tpu.vector_store %arg27[%c16_71, %c0_72], %140 {strides = array<i32>} : memref<72x384xf32, #tpu.memory_space<vmem>>, vector<16x5xf32>,
    %142 = vector.extract_strided_slice %137 {offsets = [0, 3], sizes = [16, 5], strides = [1, 1]} : vector<16x9xf32> to vector<16x5xf32>
    %c32_73 = arith.constant 32 : index
    %c0_74 = arith.constant 0 : index
    %143 = vector.load %arg27[%c32_73, %c0_74] : memref<72x384xf32, #tpu.memory_space<vmem>>, vector<16x5xf32>
    tpu.vector_store %arg27[%c32_73, %c0_74], %142 {strides = array<i32>} : memref<72x384xf32, #tpu.memory_space<vmem>>, vector<16x5xf32>,
    %144 = vector.extract_strided_slice %137 {offsets = [0, 4], sizes = [16, 5], strides = [1, 1]} : vector<16x9xf32> to vector<16x5xf32>
    %c48 = arith.constant 48 : index
    %c0_75 = arith.constant 0 : index
    %145 = vector.load %arg27[%c48, %c0_75] : memref<72x384xf32, #tpu.memory_space<vmem>>, vector<16x5xf32>
    tpu.vector_store %arg27[%c48, %c0_75], %144 {strides = array<i32>} : memref<72x384xf32, #tpu.memory_space<vmem>>, vector<16x5xf32>,
    %c0_76 = arith.constant 0 : index
    %c0_77 = arith.constant 0 : index
    %146 = vector.load %arg27[%c0_76, %c0_77] : memref<72x384xf32, #tpu.memory_space<vmem>>, vector<64x5xf32>
    %147 = arith.truncf %146 : vector<64x5xf32> to vector<64x5xbf16>
    %c0_78 = arith.constant 0 : index
    %c0_79 = arith.constant 0 : index
    %148 = vector.load %arg8[%c0_78, %c0_79] : memref<8x64xbf16, #tpu.memory_space<vmem>>, vector<8x64xbf16>
    %cst_80 = arith.constant dense<0.000000e+00> : vector<8x5xf32>
    %149 = tpu.matmul %148, %147, %cst_80 {dimension_numbers = #tpu.dot_dimension_numbers<[1], [0], [0], [1], [0, 0, 1, 1], [], []>} : vector<8x64xbf16>, vector<64x5xbf16>, vector<8x5xf32> -> vector<8x5xf32>
    %c0_81 = arith.constant 0 : index
    %c0_82 = arith.constant 0 : index
    %150 = vector.load %arg9[%c0_81, %c0_82] : memref<8x1xf32, #tpu.memory_space<vmem>>, vector<8x1xf32>
    %151 = vector.broadcast %150 : vector<8x1xf32> to vector<8x5xf32>
    %152 = arith.addf %149, %151 : vector<8x5xf32>
    %cst_83 = arith.constant 0.000000e+00 : f32
    %153 = vector.broadcast %cst_83 : f32 to vector<8x5xf32>
    %154 = arith.cmpf oge, %152, %153 : vector<8x5xf32>
    %cst_84 = arith.constant 5.000000e-02 : f32
    %155 = vector.broadcast %cst_84 : f32 to vector<8x5xf32>
    %156 = arith.mulf %155, %152 : vector<8x5xf32>
    %157 = arith.select %154, %152, %156 : vector<8x5xi1>, vector<8x5xf32>
    %c0_85 = arith.constant 0 : index
    %c0_86 = arith.constant 0 : index
    %158 = vector.load %arg19[%c0_85, %c0_86] : memref<5x81xf32, #tpu.memory_space<vmem>>, vector<5x81xf32>
    %cst_87 = arith.constant dense<0.000000e+00> : vector<8x81xf32>
    %159 = tpu.matmul %157, %158, %cst_87 {dimension_numbers = #tpu.dot_dimension_numbers<[1], [0], [0], [1], [0, 0, 1, 1], [], []>} : vector<8x5xf32>, vector<5x81xf32>, vector<8x81xf32> -> vector<8x81xf32>
    %c0_88 = arith.constant 0 : index
    %c0_89 = arith.constant 0 : index
    %160 = vector.load %arg20[%c0_88, %c0_89] : memref<4x81xf32, #tpu.memory_space<vmem>>, vector<4x81xf32>
    %cst_90 = arith.constant dense<0.000000e+00> : vector<8x81xf32>
    %161 = tpu.matmul %114, %160, %cst_90 {dimension_numbers = #tpu.dot_dimension_numbers<[1], [0], [0], [1], [0, 0, 1, 1], [], []>} : vector<8x4xf32>, vector<4x81xf32>, vector<8x81xf32> -> vector<8x81xf32>
    %c0_91 = arith.constant 0 : index
    %c0_92 = arith.constant 0 : index
    %162 = vector.load %arg21[%c0_91, %c0_92] : memref<1x81xf32, #tpu.memory_space<vmem>>, vector<1x81xf32>
    %163 = vector.broadcast %162 : vector<1x81xf32> to vector<8x81xf32>
    %164 = arith.cmpf oeq, %161, %163 : vector<8x81xf32>
    %cst_93 = arith.constant 0.000000e+00 : f32
    %165 = vector.broadcast %cst_93 : f32 to vector<8x81xf32>
    %166 = arith.select %164, %159, %165 : vector<8x81xi1>, vector<8x81xf32>
    %167 = vector.extract_strided_slice %166 {offsets = [0, 0], sizes = [8, 61], strides = [1, 1]} : vector<8x81xf32> to vector<8x61xf32>
    %c0_94 = arith.constant 0 : index
    %c0_95 = arith.constant 0 : index
    %168 = vector.load %arg27[%c0_94, %c0_95] : memref<72x384xf32, #tpu.memory_space<vmem>>, vector<8x61xf32>
    tpu.vector_store %arg27[%c0_94, %c0_95], %167 {strides = array<i32>} : memref<72x384xf32, #tpu.memory_space<vmem>>, vector<8x61xf32>,
    %169 = vector.extract_strided_slice %166 {offsets = [0, 1], sizes = [8, 61], strides = [1, 1]} : vector<8x81xf32> to vector<8x61xf32>
    %c8_96 = arith.constant 8 : index
    %c0_97 = arith.constant 0 : index
    %170 = vector.load %arg27[%c8_96, %c0_97] : memref<72x384xf32, #tpu.memory_space<vmem>>, vector<8x61xf32>
    tpu.vector_store %arg27[%c8_96, %c0_97], %169 {strides = array<i32>} : memref<72x384xf32, #tpu.memory_space<vmem>>, vector<8x61xf32>,
    %171 = vector.extract_strided_slice %166 {offsets = [0, 2], sizes = [8, 61], strides = [1, 1]} : vector<8x81xf32> to vector<8x61xf32>
    %c16_98 = arith.constant 16 : index
    %c0_99 = arith.constant 0 : index
    %172 = vector.load %arg27[%c16_98, %c0_99] : memref<72x384xf32, #tpu.memory_space<vmem>>, vector<8x61xf32>
    tpu.vector_store %arg27[%c16_98, %c0_99], %171 {strides = array<i32>} : memref<72x384xf32, #tpu.memory_space<vmem>>, vector<8x61xf32>,
    %173 = vector.extract_strided_slice %166 {offsets = [0, 9], sizes = [8, 61], strides = [1, 1]} : vector<8x81xf32> to vector<8x61xf32>
    %c24_100 = arith.constant 24 : index
    %c0_101 = arith.constant 0 : index
    %174 = vector.load %arg27[%c24_100, %c0_101] : memref<72x384xf32, #tpu.memory_space<vmem>>, vector<8x61xf32>
    tpu.vector_store %arg27[%c24_100, %c0_101], %173 {strides = array<i32>} : memref<72x384xf32, #tpu.memory_space<vmem>>, vector<8x61xf32>,
    %175 = vector.extract_strided_slice %166 {offsets = [0, 10], sizes = [8, 61], strides = [1, 1]} : vector<8x81xf32> to vector<8x61xf32>
    %c32_102 = arith.constant 32 : index
    %c0_103 = arith.constant 0 : index
    %176 = vector.load %arg27[%c32_102, %c0_103] : memref<72x384xf32, #tpu.memory_space<vmem>>, vector<8x61xf32>
    tpu.vector_store %arg27[%c32_102, %c0_103], %175 {strides = array<i32>} : memref<72x384xf32, #tpu.memory_space<vmem>>, vector<8x61xf32>,
    %177 = vector.extract_strided_slice %166 {offsets = [0, 11], sizes = [8, 61], strides = [1, 1]} : vector<8x81xf32> to vector<8x61xf32>
    %c40 = arith.constant 40 : index
    %c0_104 = arith.constant 0 : index
    %178 = vector.load %arg27[%c40, %c0_104] : memref<72x384xf32, #tpu.memory_space<vmem>>, vector<8x61xf32>
    tpu.vector_store %arg27[%c40, %c0_104], %177 {strides = array<i32>} : memref<72x384xf32, #tpu.memory_space<vmem>>, vector<8x61xf32>,
    %179 = vector.extract_strided_slice %166 {offsets = [0, 18], sizes = [8, 61], strides = [1, 1]} : vector<8x81xf32> to vector<8x61xf32>
    %c48_105 = arith.constant 48 : index
    %c0_106 = arith.constant 0 : index
    %180 = vector.load %arg27[%c48_105, %c0_106] : memref<72x384xf32, #tpu.memory_space<vmem>>, vector<8x61xf32>
    tpu.vector_store %arg27[%c48_105, %c0_106], %179 {strides = array<i32>} : memref<72x384xf32, #tpu.memory_space<vmem>>, vector<8x61xf32>,
    %181 = vector.extract_strided_slice %166 {offsets = [0, 19], sizes = [8, 61], strides = [1, 1]} : vector<8x81xf32> to vector<8x61xf32>
    %c56 = arith.constant 56 : index
    %c0_107 = arith.constant 0 : index
    %182 = vector.load %arg27[%c56, %c0_107] : memref<72x384xf32, #tpu.memory_space<vmem>>, vector<8x61xf32>
    tpu.vector_store %arg27[%c56, %c0_107], %181 {strides = array<i32>} : memref<72x384xf32, #tpu.memory_space<vmem>>, vector<8x61xf32>,
    %183 = vector.extract_strided_slice %166 {offsets = [0, 20], sizes = [8, 61], strides = [1, 1]} : vector<8x81xf32> to vector<8x61xf32>
    %c64 = arith.constant 64 : index
    %c0_108 = arith.constant 0 : index
    %184 = vector.load %arg27[%c64, %c0_108] : memref<72x384xf32, #tpu.memory_space<vmem>>, vector<8x61xf32>
    tpu.vector_store %arg27[%c64, %c0_108], %183 {strides = array<i32>} : memref<72x384xf32, #tpu.memory_space<vmem>>, vector<8x61xf32>,
    %c0_109 = arith.constant 0 : index
    %c0_110 = arith.constant 0 : index
    %185 = vector.load %arg27[%c0_109, %c0_110] : memref<72x384xf32, #tpu.memory_space<vmem>>, vector<72x61xf32>
    %186 = arith.truncf %185 : vector<72x61xf32> to vector<72x61xbf16>
    %c0_111 = arith.constant 0 : index
    %c0_112 = arith.constant 0 : index
    %187 = vector.load %arg10[%c0_111, %c0_112] : memref<4x72xbf16, #tpu.memory_space<vmem>>, vector<4x72xbf16>
    %cst_113 = arith.constant dense<0.000000e+00> : vector<4x61xf32>
    %188 = tpu.matmul %187, %186, %cst_113 {dimension_numbers = #tpu.dot_dimension_numbers<[1], [0], [0], [1], [0, 0, 1, 1], [], []>} : vector<4x72xbf16>, vector<72x61xbf16>, vector<4x61xf32> -> vector<4x61xf32>
    %c0_114 = arith.constant 0 : index
    %c0_115 = arith.constant 0 : index
    %189 = vector.load %arg11[%c0_114, %c0_115] : memref<4x1xf32, #tpu.memory_space<vmem>>, vector<4x1xf32>
    %190 = vector.broadcast %189 : vector<4x1xf32> to vector<4x61xf32>
    %191 = arith.addf %188, %190 : vector<4x61xf32>
    %cst_116 = arith.constant 0.000000e+00 : f32
    %192 = vector.broadcast %cst_116 : f32 to vector<4x61xf32>
    %193 = arith.cmpf oge, %191, %192 : vector<4x61xf32>
    %cst_117 = arith.constant 5.000000e-02 : f32
    %194 = vector.broadcast %cst_117 : f32 to vector<4x61xf32>
    %195 = arith.mulf %194, %191 : vector<4x61xf32>
    %196 = arith.select %193, %191, %195 : vector<4x61xi1>, vector<4x61xf32>
    %c0_118 = arith.constant 0 : index
    %c0_119 = arith.constant 0 : index
    %197 = vector.load %arg22[%c0_118, %c0_119] : memref<61x324xf32, #tpu.memory_space<vmem>>, vector<61x324xf32>
    %cst_120 = arith.constant dense<0.000000e+00> : vector<4x324xf32>
    %198 = tpu.matmul %196, %197, %cst_120 {dimension_numbers = #tpu.dot_dimension_numbers<[1], [0], [0], [1], [0, 0, 1, 1], [], []>} : vector<4x61xf32>, vector<61x324xf32>, vector<4x324xf32> -> vector<4x324xf32>
    %c0_121 = arith.constant 0 : index
    %c0_122 = arith.constant 0 : index
    %199 = vector.load %arg23[%c0_121, %c0_122] : memref<49x324xf32, #tpu.memory_space<vmem>>, vector<49x324xf32>
    %cst_123 = arith.constant dense<0.000000e+00> : vector<4x324xf32>
    %200 = tpu.matmul %56, %199, %cst_123 {dimension_numbers = #tpu.dot_dimension_numbers<[1], [0], [0], [1], [0, 0, 1, 1], [], []>} : vector<4x49xf32>, vector<49x324xf32>, vector<4x324xf32> -> vector<4x324xf32>
    %c0_124 = arith.constant 0 : index
    %c0_125 = arith.constant 0 : index
    %201 = vector.load %arg24[%c0_124, %c0_125] : memref<1x324xf32, #tpu.memory_space<vmem>>, vector<1x324xf32>
    %202 = vector.broadcast %201 : vector<1x324xf32> to vector<4x324xf32>
    %203 = arith.cmpf oeq, %200, %202 : vector<4x324xf32>
    %cst_126 = arith.constant 0.000000e+00 : f32
    %204 = vector.broadcast %cst_126 : f32 to vector<4x324xf32>
    %205 = arith.select %203, %198, %204 : vector<4x324xi1>, vector<4x324xf32>
    %206 = vector.extract_strided_slice %205 {offsets = [0, 0], sizes = [4, 286], strides = [1, 1]} : vector<4x324xf32> to vector<4x286xf32>
    %c0_127 = arith.constant 0 : index
    %c0_128 = arith.constant 0 : index
    %207 = vector.load %arg27[%c0_127, %c0_128] : memref<72x384xf32, #tpu.memory_space<vmem>>, vector<4x286xf32>
    tpu.vector_store %arg27[%c0_127, %c0_128], %206 {strides = array<i32>} : memref<72x384xf32, #tpu.memory_space<vmem>>, vector<4x286xf32>,
    %208 = vector.extract_strided_slice %205 {offsets = [0, 1], sizes = [4, 286], strides = [1, 1]} : vector<4x324xf32> to vector<4x286xf32>
    %c4_129 = arith.constant 4 : index
    %c0_130 = arith.constant 0 : index
    %209 = vector.load %arg27[%c4_129, %c0_130] : memref<72x384xf32, #tpu.memory_space<vmem>>, vector<4x286xf32>
    tpu.vector_store %arg27[%c4_129, %c0_130], %208 {strides = array<i32>} : memref<72x384xf32, #tpu.memory_space<vmem>>, vector<4x286xf32>,
    %210 = vector.extract_strided_slice %205 {offsets = [0, 2], sizes = [4, 286], strides = [1, 1]} : vector<4x324xf32> to vector<4x286xf32>
    %c8_131 = arith.constant 8 : index
    %c0_132 = arith.constant 0 : index
    %211 = vector.load %arg27[%c8_131, %c0_132] : memref<72x384xf32, #tpu.memory_space<vmem>>, vector<4x286xf32>
    tpu.vector_store %arg27[%c8_131, %c0_132], %210 {strides = array<i32>} : memref<72x384xf32, #tpu.memory_space<vmem>>, vector<4x286xf32>,
    %212 = vector.extract_strided_slice %205 {offsets = [0, 18], sizes = [4, 286], strides = [1, 1]} : vector<4x324xf32> to vector<4x286xf32>
    %c12_133 = arith.constant 12 : index
    %c0_134 = arith.constant 0 : index
    %213 = vector.load %arg27[%c12_133, %c0_134] : memref<72x384xf32, #tpu.memory_space<vmem>>, vector<4x286xf32>
    tpu.vector_store %arg27[%c12_133, %c0_134], %212 {strides = array<i32>} : memref<72x384xf32, #tpu.memory_space<vmem>>, vector<4x286xf32>,
    %214 = vector.extract_strided_slice %205 {offsets = [0, 19], sizes = [4, 286], strides = [1, 1]} : vector<4x324xf32> to vector<4x286xf32>
    %c16_135 = arith.constant 16 : index
    %c0_136 = arith.constant 0 : index
    %215 = vector.load %arg27[%c16_135, %c0_136] : memref<72x384xf32, #tpu.memory_space<vmem>>, vector<4x286xf32>
    tpu.vector_store %arg27[%c16_135, %c0_136], %214 {strides = array<i32>} : memref<72x384xf32, #tpu.memory_space<vmem>>, vector<4x286xf32>,
    %216 = vector.extract_strided_slice %205 {offsets = [0, 20], sizes = [4, 286], strides = [1, 1]} : vector<4x324xf32> to vector<4x286xf32>
    %c20_137 = arith.constant 20 : index
    %c0_138 = arith.constant 0 : index
    %217 = vector.load %arg27[%c20_137, %c0_138] : memref<72x384xf32, #tpu.memory_space<vmem>>, vector<4x286xf32>
    tpu.vector_store %arg27[%c20_137, %c0_138], %216 {strides = array<i32>} : memref<72x384xf32, #tpu.memory_space<vmem>>, vector<4x286xf32>,
    %218 = vector.extract_strided_slice %205 {offsets = [0, 36], sizes = [4, 286], strides = [1, 1]} : vector<4x324xf32> to vector<4x286xf32>
    %c24_139 = arith.constant 24 : index
    %c0_140 = arith.constant 0 : index
    %219 = vector.load %arg27[%c24_139, %c0_140] : memref<72x384xf32, #tpu.memory_space<vmem>>, vector<4x286xf32>
    tpu.vector_store %arg27[%c24_139, %c0_140], %218 {strides = array<i32>} : memref<72x384xf32, #tpu.memory_space<vmem>>, vector<4x286xf32>,
    %220 = vector.extract_strided_slice %205 {offsets = [0, 37], sizes = [4, 286], strides = [1, 1]} : vector<4x324xf32> to vector<4x286xf32>
    %c28_141 = arith.constant 28 : index
    %c0_142 = arith.constant 0 : index
    %221 = vector.load %arg27[%c28_141, %c0_142] : memref<72x384xf32, #tpu.memory_space<vmem>>, vector<4x286xf32>
    tpu.vector_store %arg27[%c28_141, %c0_142], %220 {strides = array<i32>} : memref<72x384xf32, #tpu.memory_space<vmem>>, vector<4x286xf32>,
    %222 = vector.extract_strided_slice %205 {offsets = [0, 38], sizes = [4, 286], strides = [1, 1]} : vector<4x324xf32> to vector<4x286xf32>
    %c32_143 = arith.constant 32 : index
    %c0_144 = arith.constant 0 : index
    %223 = vector.load %arg27[%c32_143, %c0_144] : memref<72x384xf32, #tpu.memory_space<vmem>>, vector<4x286xf32>
    tpu.vector_store %arg27[%c32_143, %c0_144], %222 {strides = array<i32>} : memref<72x384xf32, #tpu.memory_space<vmem>>, vector<4x286xf32>,
    %c0_145 = arith.constant 0 : index
    %c0_146 = arith.constant 0 : index
    %224 = vector.load %arg27[%c0_145, %c0_146] : memref<72x384xf32, #tpu.memory_space<vmem>>, vector<36x286xf32>
    %225 = arith.truncf %224 : vector<36x286xf32> to vector<36x286xbf16>
    %c0_147 = arith.constant 0 : index
    %c0_148 = arith.constant 0 : index
    %226 = vector.load %arg12[%c0_147, %c0_148] : memref<1x36xbf16, #tpu.memory_space<vmem>>, vector<1x36xbf16>
    %cst_149 = arith.constant dense<0.000000e+00> : vector<1x286xf32>
    %227 = tpu.matmul %226, %225, %cst_149 {dimension_numbers = #tpu.dot_dimension_numbers<[1], [0], [0], [1], [0, 0, 1, 1], [], []>} : vector<1x36xbf16>, vector<36x286xbf16>, vector<1x286xf32> -> vector<1x286xf32>
    %c0_150 = arith.constant 0 : index
    %c0_151 = arith.constant 0 : index
    %228 = vector.load %arg13[%c0_150, %c0_151] : memref<1x1xf32, #tpu.memory_space<vmem>>, vector<1x1xf32>
    %229 = vector.broadcast %228 : vector<1x1xf32> to vector<1x286xf32>
    %230 = arith.addf %227, %229 : vector<1x286xf32>
    %cst_152 = arith.constant 0.000000e+00 : f32
    %231 = vector.broadcast %cst_152 : f32 to vector<1x286xf32>
    %232 = arith.maximumf %230, %231 : vector<1x286xf32>
    %c0_153 = arith.constant 0 : index
    %c0_154 = arith.constant 0 : index
    %233 = vector.load %arg25[%c0_153, %c0_154] : memref<286x256xf32, #tpu.memory_space<vmem>>, vector<286x256xf32>
    %cst_155 = arith.constant dense<0.000000e+00> : vector<1x256xf32>
    %234 = tpu.matmul %232, %233, %cst_155 {dimension_numbers = #tpu.dot_dimension_numbers<[1], [0], [0], [1], [0, 0, 1, 1], [], []>} : vector<1x286xf32>, vector<286x256xf32>, vector<1x256xf32> -> vector<1x256xf32>
    %c0_156 = arith.constant 0 : index
    %c0_157 = arith.constant 0 : index
    %c0_158 = arith.constant 0 : index
    %235 = vector.load %arg26[%c0_156, %c0_157, %c0_158] : memref<1x1x256xf32, #tpu.memory_space<vmem>>, vector<1x1x256xf32>
    %236 = vector.shape_cast %235 : vector<1x1x256xf32> to vector<1x256xf32>
    %237 = vector.shape_cast %234 : vector<1x256xf32> to vector<1x1x256xf32>
    tpu.vector_store %arg26[%c0_156, %c0_157, %c0_158], %237 {strides = array<i32>} : memref<1x1x256xf32, #tpu.memory_space<vmem>>, vector<1x1x256xf32>,
    return
  }
  func.func @transform_0(%arg0: i32) -> (i32, i32, i32) {
    %c0_i32 = arith.constant 0 : i32
    %c0_i32_0 = arith.constant 0 : i32
    %c0_i32_1 = arith.constant 0 : i32
    return %arg0, %c0_i32, %c0_i32_0 : i32, i32, i32
  }
  func.func @transform_1(%arg0: i32) -> (i32, i32) {
    %c0_i32 = arith.constant 0 : i32
    %c0_i32_0 = arith.constant 0 : i32
    %c0_i32_1 = arith.constant 0 : i32
    return %c0_i32, %c0_i32_0 : i32, i32
  }
  func.func @transform_2(%arg0: i32) -> (i32, i32) {
    %c0_i32 = arith.constant 0 : i32
    %c0_i32_0 = arith.constant 0 : i32
    %c0_i32_1 = arith.constant 0 : i32
    return %c0_i32, %c0_i32_0 : i32, i32
  }
  func.func @transform_3(%arg0: i32) -> (i32, i32) {
    %c0_i32 = arith.constant 0 : i32
    %c0_i32_0 = arith.constant 0 : i32
    %c0_i32_1 = arith.constant 0 : i32
    return %c0_i32, %c0_i32_0 : i32, i32
  }
  func.func @transform_4(%arg0: i32) -> (i32, i32) {
    %c0_i32 = arith.constant 0 : i32
    %c0_i32_0 = arith.constant 0 : i32
    %c0_i32_1 = arith.constant 0 : i32
    return %c0_i32, %c0_i32_0 : i32, i32
  }
  func.func @transform_5(%arg0: i32) -> (i32, i32) {
    %c0_i32 = arith.constant 0 : i32
    %c0_i32_0 = arith.constant 0 : i32
    %c0_i32_1 = arith.constant 0 : i32
    return %c0_i32, %c0_i32_0 : i32, i32
  }
  func.func @transform_6(%arg0: i32) -> (i32, i32) {
    %c0_i32 = arith.constant 0 : i32
    %c0_i32_0 = arith.constant 0 : i32
    %c0_i32_1 = arith.constant 0 : i32
    return %c0_i32, %c0_i32_0 : i32, i32
  }
  func.func @transform_7(%arg0: i32) -> (i32, i32) {
    %c0_i32 = arith.constant 0 : i32
    %c0_i32_0 = arith.constant 0 : i32
    %c0_i32_1 = arith.constant 0 : i32
    return %c0_i32, %c0_i32_0 : i32, i32
  }
  func.func @transform_8(%arg0: i32) -> (i32, i32) {
    %c0_i32 = arith.constant 0 : i32
    %c0_i32_0 = arith.constant 0 : i32
    %c0_i32_1 = arith.constant 0 : i32
    return %c0_i32, %c0_i32_0 : i32, i32
  }
  func.func @transform_9(%arg0: i32) -> (i32, i32) {
    %c0_i32 = arith.constant 0 : i32
    %c0_i32_0 = arith.constant 0 : i32
    %c0_i32_1 = arith.constant 0 : i32
    return %c0_i32, %c0_i32_0 : i32, i32
  }
  func.func @transform_10(%arg0: i32) -> (i32, i32) {
    %c0_i32 = arith.constant 0 : i32
    %c0_i32_0 = arith.constant 0 : i32
    %c0_i32_1 = arith.constant 0 : i32
    return %c0_i32, %c0_i32_0 : i32, i32
  }
  func.func @transform_11(%arg0: i32) -> (i32, i32) {
    %c0_i32 = arith.constant 0 : i32
    %c0_i32_0 = arith.constant 0 : i32
    %c0_i32_1 = arith.constant 0 : i32
    return %c0_i32, %c0_i32_0 : i32, i32
  }
  func.func @transform_12(%arg0: i32) -> (i32, i32) {
    %c0_i32 = arith.constant 0 : i32
    %c0_i32_0 = arith.constant 0 : i32
    %c0_i32_1 = arith.constant 0 : i32
    return %c0_i32, %c0_i32_0 : i32, i32
  }
  func.func @transform_13(%arg0: i32) -> (i32, i32) {
    %c0_i32 = arith.constant 0 : i32
    %c0_i32_0 = arith.constant 0 : i32
    %c0_i32_1 = arith.constant 0 : i32
    return %c0_i32, %c0_i32_0 : i32, i32
  }
  func.func @transform_14(%arg0: i32) -> (i32, i32) {
    %c0_i32 = arith.constant 0 : i32
    %c0_i32_0 = arith.constant 0 : i32
    %c0_i32_1 = arith.constant 0 : i32
    return %c0_i32, %c0_i32_0 : i32, i32
  }
  func.func @transform_15(%arg0: i32) -> (i32, i32) {
    %c0_i32 = arith.constant 0 : i32
    %c0_i32_0 = arith.constant 0 : i32
    %c0_i32_1 = arith.constant 0 : i32
    return %c0_i32, %c0_i32_0 : i32, i32
  }
  func.func @transform_16(%arg0: i32) -> (i32, i32) {
    %c0_i32 = arith.constant 0 : i32
    %c0_i32_0 = arith.constant 0 : i32
    %c0_i32_1 = arith.constant 0 : i32
    return %c0_i32, %c0_i32_0 : i32, i32
  }
  func.func @transform_17(%arg0: i32) -> (i32, i32) {
    %c0_i32 = arith.constant 0 : i32
    %c0_i32_0 = arith.constant 0 : i32
    %c0_i32_1 = arith.constant 0 : i32
    return %c0_i32, %c0_i32_0 : i32, i32
  }
  func.func @transform_18(%arg0: i32) -> (i32, i32) {
    %c0_i32 = arith.constant 0 : i32
    %c0_i32_0 = arith.constant 0 : i32
    %c0_i32_1 = arith.constant 0 : i32
    return %c0_i32, %c0_i32_0 : i32, i32
  }
  func.func @transform_19(%arg0: i32) -> (i32, i32) {
    %c0_i32 = arith.constant 0 : i32
    %c0_i32_0 = arith.constant 0 : i32
    %c0_i32_1 = arith.constant 0 : i32
    return %c0_i32, %c0_i32_0 : i32, i32
  }
  func.func @transform_20(%arg0: i32) -> (i32, i32) {
    %c0_i32 = arith.constant 0 : i32
    %c0_i32_0 = arith.constant 0 : i32
    %c0_i32_1 = arith.constant 0 : i32
    return %c0_i32, %c0_i32_0 : i32, i32
  }
  func.func @transform_21(%arg0: i32) -> (i32, i32) {
    %c0_i32 = arith.constant 0 : i32
    %c0_i32_0 = arith.constant 0 : i32
    %c0_i32_1 = arith.constant 0 : i32
    return %c0_i32, %c0_i32_0 : i32, i32
  }
  func.func @transform_22(%arg0: i32) -> (i32, i32) {
    %c0_i32 = arith.constant 0 : i32
    %c0_i32_0 = arith.constant 0 : i32
    %c0_i32_1 = arith.constant 0 : i32
    return %c0_i32, %c0_i32_0 : i32, i32
  }
  func.func @transform_23(%arg0: i32) -> (i32, i32) {
    %c0_i32 = arith.constant 0 : i32
    %c0_i32_0 = arith.constant 0 : i32
    %c0_i32_1 = arith.constant 0 : i32
    return %c0_i32, %c0_i32_0 : i32, i32
  }
  func.func @transform_24(%arg0: i32) -> (i32, i32) {
    %c0_i32 = arith.constant 0 : i32
    %c0_i32_0 = arith.constant 0 : i32
    %c0_i32_1 = arith.constant 0 : i32
    return %c0_i32, %c0_i32_0 : i32, i32
  }
  func.func @transform_25(%arg0: i32) -> (i32, i32, i32) {
    %c0_i32 = arith.constant 0 : i32
    %c0_i32_0 = arith.constant 0 : i32
    %c0_i32_1 = arith.constant 0 : i32
    return %arg0, %c0_i32, %c0_i32_0 : i32, i32, i32
  }
}

</mosaic_0001>

<bundles_post_ra>
// kernel: conv_deconv_forward.1
= control target key start
LH: loop header
LB: loop body
LE: loop exit
PB: predicated region body
PF: predicated region fallthrough
CT: control target
= control target key end

     0   :  { %s5270_s0 = inlined_call_operand.vmem [shape: f32[2,1,256], index: 0, kind: input, shape index: {}]   ;;  %s5271_s1 = inlined_call_operand.hbm [shape: bf16[4,9], index: 1, kind: input, shape index: {}]   ;;  %s5272_s2 = inlined_call_operand.vmem [shape: f32[4,1], index: 2, kind: input, shape index: {}]   ;;  %s5273_s3 = inlined_call_operand.hbm [shape: bf16[8,36], index: 3, kind: input, shape index: {}]   ;;  %s5274_s4 = inlined_call_operand.vmem [shape: f32[8,1], index: 4, kind: input, shape index: {}]   ;;  %s5275_s5 = inlined_call_operand.hbm [shape: bf16[16,32], index: 5, kind: input, shape index: {}]   ;;  %s5276_s6 = inlined_call_operand.vmem [shape: f32[16,1], index: 6, kind: input, shape index: {}]   ;;  %s5277_s7 = inlined_call_operand.hbm [shape: bf16[8,64], index: 7, kind: input, shape index: {}]   ;;  %s5278_s8 = inlined_call_operand.vmem [shape: f32[8,1], index: 8, kind: input, shape index: {}]   ;;  %s5279_s9 = inlined_call_operand.hbm [shape: bf16[4,72], index: 9, kind: input, shape index: {}]   ;;  %s5280_s10 = inlined_call_operand.vmem [shape: f32[4,1], index: 10, kind: input, shape index: {}]   ;;  %s5281_s11 = inlined_call_operand.hbm [shape: bf16[1,36], index: 11, kind: input, shape index: {}]   ;;  %s5282_s12 = inlined_call_operand.<no memory space> [shape: f32[1,1], index: 12, kind: input, shape index: {}]   ;;  %s5283_s13 = inlined_call_operand.hbm [shape: f32[222,196], index: 13, kind: input, shape index: {}]   ;;  %s5284_s14 = inlined_call_operand.hbm [shape: f32[4,49], index: 14, kind: input, shape index: {}]   ;;  %s5285_s15 = inlined_call_operand.hbm [shape: f32[25,16], index: 15, kind: input, shape index: {}]   ;;  %s5286_s16 = inlined_call_operand.hbm [shape: f32[4,4], index: 16, kind: input, shape index: {}]   ;;  %s5287_s17 = inlined_call_operand.hbm [shape: f32[1,9], index: 17, kind: input, shape index: {}]   ;;  %s5288_s18 = inlined_call_operand.hbm [shape: f32[5,81], index: 18, kind: input, shape index: {}]   ;;  %s5289_s19 = inlined_call_operand.hbm [shape: f32[4,81], index: 19, kind: input, shape index: {}]   ;;  %s5290_s20 = inlined_call_operand.hbm [shape: f32[1,81], index: 20, kind: input, shape index: {}]   ;;  %s5291_s21 = inlined_call_operand.hbm [shape: f32[61,324], index: 21, kind: input, shape index: {}]   ;;  %s5292_s22 = inlined_call_operand.vmem [shape: f32[49,324], index: 22, kind: input, shape index: {}]   ;;  %s5293_s23 = inlined_call_operand.vmem [shape: f32[1,324], index: 23, kind: input, shape index: {}]   ;;  %s5294_s24 = inlined_call_operand.hbm [shape: f32[286,256], index: 24, kind: input, shape index: {}]   ;;  %s5295_s25 = inlined_call_operand.vmem [shape: f32[2,1,256], index: 25, kind: output, shape index: {}]  }
   0x1   :  { %5309 = sst [smem:[#allocation39_spill]] %s5270_s0  ;;  %v30_v0 = vstv %s5282_s12 }
   0x2   :  { %5310 = sst [smem:[#allocation40_spill]] %s5271_s1  ;;  %31 = vst [vmem:[#allocation3] sm:$0x1] %v30_v0 }
   0x3   :  { %5311 = sst [smem:[#allocation41_spill]] %s5272_s2 }
   0x4   :  { %5312 = sst [smem:[#allocation42_spill]] %s5273_s3 }
   0x5   :  { %5313 = sst [smem:[#allocation43_spill]] %s5274_s4 }
   0x6   :  { %5314 = sst [smem:[#allocation44_spill]] %s5275_s5 }
   0x7   :  { %5315 = sst [smem:[#allocation45_spill]] %s5276_s6 }
   0x8   :  { %5316 = sst [smem:[#allocation46_spill]] %s5277_s7 }
   0x9   :  { %5317 = sst [smem:[#allocation47_spill]] %s5278_s8 }
   0xa   :  { %5318 = sst [smem:[#allocation48_spill]] %s5279_s9 }
   0xb   :  { %5319 = sst [smem:[#allocation49_spill]] %s5281_s11 }
   0xc   :  { %5320 = sst [smem:[#allocation50_spill]] %s5283_s13 }
   0xd   :  { %5321 = sst [smem:[#allocation51_spill]] %s5284_s14 }
   0xe   :  { %5322 = sst [smem:[#allocation52_spill]] %s5286_s16 }
   0xf   :  { %5323 = sst [smem:[#allocation53_spill]] %s5288_s18 }
  0x10   :  { %5324 = sst [smem:[#allocation54_spill]] %s5292_s22 }
  0x11   :  { %5325 = sst [smem:[#allocation55_spill]] %s5293_s23 }
  0x12   :  { %5326 = sst [smem:[#allocation56_spill]] %s5295_s25 }
  0x13   :  { %32 = vsyncpa [#allocation5], 0 }
  0x14   :  { %33 = vsyncpa [#allocation7], 0 }
  0x15   :  { %34 = vsyncpa [#allocation10], 0 }
  0x16   :  { %35 = vsyncpa [#allocation13], 0 }
  0x17   :  { %36 = vsyncpa [#allocation16], 0 }
  0x18   :  { %37 = vsyncpa [#allocation19], 0 }
  0x19   :  { %38 = vsyncpa [#allocation22], 0 }
  0x1a   :  { %39 = vsyncpa [#allocation25], 0 }
  0x1b   :  { %40 = vsyncpa [#allocation28], 0  ;;  %s4458_s6 = smov 0  }
  0x1c LB: > { %5327 = sst [smem:[#allocation38_spill]] %s4264_s6  ;;  %s4266_s12 = smov [#allocation6]   ;;  %s4264_s6 = sphi %s4458_s6, %s46_s6  }
  0x1d   : > { %s634_s30 = sshll.u32 %s4266_s12, 4  ;;  %s4464_s7 = sadd.s32 4294967295, %s4264_s6   ;;  %s4469_s30 = int_to_ptr.vmem [resolvable:$true] %s634_s30 }
  0x1e   : > { %p3135_p0 = scmp.ge.s32.totalorder %s4264_s6, 1  ;;  %p607_p1 = scmp.lt.s32.totalorder %s4264_s6, 3 }
  0x1f   : > { %p5304_p2 = scmp.eq.s32.totalorder %s4464_s7, 0  ;;  %s4267_s26 = smov [#allocation9]  }
  0x20   : > { %p4471_p3 = pnand %p3135_p0, %p607_p1  ;;  %s664_s1 = sshll.u32 %s4267_s26, 4  ;;  %s4477_s1 = int_to_ptr.vmem [resolvable:$true] %s664_s1 }
  0x21   : > { %s4268_s8 = smov [#allocation12]   ;;  %s4269_s28 = smov [#allocation15]  }
  0x22   : > { %s5328_s3 = scalar_select %p4471_p3, 1, 0 }
  0x23   : > { %p3623_p4 = pneg %p4471_p3  ;;  %s692_s27 = sshll.u32 %s4268_s8, 4  ;;  %s4485_s27 = int_to_ptr.vmem [resolvable:$true] %s692_s27 }
  0x24   : > { %s719_s9 = sshll.u32 %s4269_s28, 4  ;;  %s5330_s29 = sld [smem:[#allocation42_spill]]  ;;  %s4487_s9 = int_to_ptr.vmem [resolvable:$true] %s719_s9 }
  0x25   : > { %p4481_p5 = pnand %p5304_p2, %p3623_p4 }
  0x27   : > { %p4497_p7 = pneg %p4481_p5 }
  0x2a   : > { %s3774_s2 = scalar_lea.hbm %s5330_s29, 64 }
  0x2b   : > { %p3775_p6 = scmp.ne.s32.totalorder %s5330_s29, %s3774_s2  ;;  %p3781_p10 = scmp.lt.u32.totalorder %s3774_s2, %s5330_s29 }
  0x2d   : > { %p3777_p8 = pnand %p4497_p7, %p3775_p6 }
  0x2f   : > { %p3778_p9 = pneg %p3777_p8 }
  0x31   : > { %p3783_p11 = pnand %p3781_p10, %p3778_p9 }
  0x33   : > { %3786 = shalt.err (!%p3783_p11)
}
  0x34   : > { %s3787_s5 = scalar_lea.vmem %s4469_s30, 64  ;;  %p3795_p1 = scmp.lt.s32.totalorder %s4469_s30, %s4469_s30 }
  0x35   : > { %p3788_p12 = scmp.ne.s32.totalorder %s4469_s30, %s3787_s5  ;;  %p3796_p4 = scmp.lt.s32.totalorder %s3787_s5, %s3787_s5 }
  0x37   : > { %p3790_p13 = pnand %p3788_p12, %p4497_p7  ;;  %p3797_p6 = por %p3796_p4, %p3795_p1 }
  0x39   : > { %p3791_p0 = pneg %p3790_p13 }
  0x3b   : > { %p3798_p8 = pnand %p3797_p6, %p3791_p0 }
  0x3d   : > { %3801 = shalt.err (!%p3798_p8)
}
  0x3e   : > { %3629 = dma.hbm_to_vmem [thread:$0]  (!%p4481_p5), %s5330_s29, 64, %s4469_s30, [#allocation7]  }
  0x3f   : > { %s5332_s26 = sld [smem:[#allocation46_spill]] }
  0x45   : > { %s3802_s28 = scalar_lea.hbm %s5332_s26, 64 }
  0x46   : > { %p3803_p9 = scmp.ne.s32.totalorder %s5332_s26, %s3802_s28  ;;  %p3809_p12 = scmp.lt.u32.totalorder %s3802_s28, %s5332_s26 }
  0x48   : > { %p3805_p10 = pnand %p3803_p9, %p4497_p7 }
  0x4a   : > { %p3806_p11 = pneg %p3805_p10 }
  0x4c   : > { %p3811_p13 = pnand %p3809_p12, %p3806_p11 }
  0x4e   : > { %3814 = shalt.err (!%p3811_p13)
}
  0x4f   : > { %s3815_s30 = scalar_lea.vmem %s4477_s1, 64  ;;  %p3823_p6 = scmp.lt.s32.totalorder %s4477_s1, %s4477_s1 }
  0x50   : > { %p3816_p0 = scmp.ne.s32.totalorder %s4477_s1, %s3815_s30  ;;  %p3824_p8 = scmp.lt.s32.totalorder %s3815_s30, %s3815_s30 }
  0x52   : > { %p3818_p1 = pnand %p3816_p0, %p4497_p7  ;;  %p3825_p9 = por %p3824_p8, %p3823_p6 }
  0x54   : > { %p3819_p4 = pneg %p3818_p1 }
  0x56   : > { %p3826_p10 = pnand %p3825_p9, %p3819_p4 }
  0x58   : > { %3829 = shalt.err (!%p3826_p10)
}
  0x59   : > { %3635 = dma.hbm_to_vmem [thread:$0]  (!%p4481_p5), %s5332_s26, 64, %s4477_s1, [#allocation10]  }
  0x5a   : > { %s5333_s11 = sld [smem:[#allocation49_spill]] }
  0x60   : > { %s3830_s0 = scalar_lea.hbm %s5333_s11, 16 }
  0x61   : > { %p3831_p11 = scmp.ne.s32.totalorder %s5333_s11, %s3830_s0  ;;  %p3837_p0 = scmp.lt.u32.totalorder %s3830_s0, %s5333_s11 }
  0x63   : > { %p3833_p12 = pnand %p3831_p11, %p4497_p7 }
  0x65   : > { %p3834_p13 = pneg %p3833_p12 }
  0x67   : > { %p3839_p1 = pnand %p3837_p0, %p3834_p13 }
  0x69   : > { %3842 = shalt.err (!%p3839_p1)
}
  0x6a   : > { %s3843_s1 = scalar_lea.vmem %s4485_s27, 16  ;;  %s3850_s30 = scalar_lea.vmem %s4485_s27, 32 }
  0x6b   : > { %p3844_p4 = scmp.ne.s32.totalorder %s4485_s27, %s3843_s1  ;;  %p3851_p9 = scmp.lt.s32.totalorder %s4485_s27, %s4485_s27 }
  0x6c   : > { %p3852_p10 = scmp.lt.s32.totalorder %s3850_s30, %s3843_s1 }
  0x6d   : > { %p3846_p6 = pnand %p3844_p4, %p4497_p7 }
  0x6e   : > { %p3853_p11 = por %p3852_p10, %p3851_p9 }
  0x6f   : > { %p3847_p8 = pneg %p3846_p6 }
  0x71   : > { %p3854_p12 = pnand %p3853_p11, %p3847_p8 }
  0x73   : > { %3857 = shalt.err (!%p3854_p12)
}
  0x74   : > { %3641 = dma.hbm_to_vmem [thread:$0]  (!%p4481_p5), %s5333_s11, 16, %s4485_s27, [#allocation13]  }
  0x75   : > { %s5334_s14 = sld [smem:[#allocation51_spill]] }
  0x7b   : > { %s3858_s0 = scalar_lea.hbm %s5334_s14, 64 }
  0x7c   : > { %p3859_p13 = scmp.ne.s32.totalorder %s5334_s14, %s3858_s0  ;;  %p3865_p4 = scmp.lt.u32.totalorder %s3858_s0, %s5334_s14 }
  0x7e   : > { %p3861_p0 = pnand %p3859_p13, %p4497_p7 }
  0x80   : > { %p3862_p1 = pneg %p3861_p0 }
  0x82   : > { %p3867_p6 = pnand %p3865_p4, %p3862_p1 }
  0x84   : > { %3870 = shalt.err (!%p3867_p6)
}
  0x85   : > { %s3871_s27 = scalar_lea.vmem %s4487_s9, 64  ;;  %p3879_p11 = scmp.lt.s32.totalorder %s4487_s9, %s4487_s9 }
  0x86   : > { %p3872_p8 = scmp.ne.s32.totalorder %s4487_s9, %s3871_s27  ;;  %p3880_p12 = scmp.lt.s32.totalorder %s3871_s27, %s3871_s27 }
  0x88   : > { %p3874_p9 = pnand %p3872_p8, %p4497_p7  ;;  %p3881_p13 = por %p3880_p12, %p3879_p11 }
  0x8a   : > { %p3875_p10 = pneg %p3874_p9 }
  0x8c   : > { %p3882_p0 = pnand %p3881_p13, %p3875_p10 }
  0x8e   : > { %3885 = shalt.err (!%p3882_p0)
}
  0x8f   : > { %3647 = dma.hbm_to_vmem [thread:$0]  (!%p4481_p5), %s5334_s14, 64, %s4487_s9, [#allocation16]  }
  0x90   : > { %s4270_s22 = smov [#allocation18]   ;;  %s4271_s25 = smov [#allocation21]  }
  0x91   : > { %s743_s23 = sshll.u32 %s4270_s22, 4  ;;  %s765_s6 = sshll.u32 %s4271_s25, 4  ;;  %s744_s23 = int_to_ptr.vmem [resolvable:$true] %s743_s23  ;;  %s766_s6 = int_to_ptr.vmem [resolvable:$true] %s765_s6 }
  0x92   : > { %s5335_s16 = sld [smem:[#allocation52_spill]] }
  0x98   : > { %s3886_s12 = scalar_lea.hbm %s5335_s16, 64 }
  0x99   : > { %p3887_p1 = scmp.ne.s32.totalorder %s5335_s16, %s3886_s12  ;;  %p3893_p8 = scmp.lt.u32.totalorder %s3886_s12, %s5335_s16 }
  0x9b   : > { %p3889_p4 = pnand %p3887_p1, %p4497_p7 }
  0x9d   : > { %p3890_p6 = pneg %p3889_p4 }
  0x9f   : > { %p3895_p9 = pnand %p3893_p8, %p3890_p6 }
  0xa1   : > { %3898 = shalt.err (!%p3895_p9)
}
  0xa2   : > { %s3899_s9 = scalar_lea.vmem %s744_s23, 64  ;;  %p3907_p13 = scmp.lt.s32.totalorder %s744_s23, %s744_s23 }
  0xa3   : > { %p3900_p10 = scmp.ne.s32.totalorder %s744_s23, %s3899_s9  ;;  %p3908_p0 = scmp.lt.s32.totalorder %s3899_s9, %s3899_s9 }
  0xa5   : > { %p3902_p11 = pnand %p3900_p10, %p4497_p7  ;;  %p3909_p2 = por %p3908_p0, %p3907_p13 }
  0xa7   : > { %p3903_p12 = pneg %p3902_p11 }
  0xa9   : > { %p3910_p3 = pnand %p3909_p2, %p3903_p12 }
  0xab   : > { %3913 = shalt.err (!%p3910_p3)
}
  0xac   : > { %3653 = dma.hbm_to_vmem [thread:$0]  (!%p4481_p5), %s5335_s16, 64, %s744_s23, [#allocation19]  }
  0xad   : > { %s5336_s18 = sld [smem:[#allocation53_spill]] }
  0xb3   : > { %s3914_s2 = scalar_lea.hbm %s5336_s18, 128 }
  0xb4   : > { %p3915_p1 = scmp.ne.s32.totalorder %s5336_s18, %s3914_s2  ;;  %p3921_p3 = scmp.lt.u32.totalorder %s3914_s2, %s5336_s18 }
  0xb6   : > { %p3917_p4 = pnand %p3915_p1, %p4497_p7 }
  0xb8   : > { %p3918_p2 = pneg %p3917_p4 }
  0xba   : > { %p3923_p6 = pnand %p3921_p3, %p3918_p2 }
  0xbc   : > { %3926 = shalt.err (!%p3923_p6)
}
  0xbd   : > { %s3927_s1 = scalar_lea.vmem %s766_s6, 128  ;;  %p3935_p11 = scmp.lt.s32.totalorder %s766_s6, %s766_s6 }
  0xbe   : > { %p3928_p8 = scmp.ne.s32.totalorder %s766_s6, %s3927_s1  ;;  %p3936_p12 = scmp.lt.s32.totalorder %s3927_s1, %s3927_s1 }
  0xc0   : > { %p3930_p9 = pnand %p3928_p8, %p4497_p7  ;;  %p3937_p13 = por %p3936_p12, %p3935_p11 }
  0xc2   : > { %p3931_p10 = pneg %p3930_p9 }
  0xc4   : > { %p3938_p0 = pnand %p3937_p13, %p3931_p10 }
  0xc6   : > { %3941 = shalt.err (!%p3938_p0)
}
  0xc7   : > { %3659 = dma.hbm_to_vmem [thread:$0]  (!%p4481_p5), %s5336_s18, 128, %s766_s6, [#allocation22]  }
  0xc8   : > { %s4272_s30 = smov [#allocation24]   ;;  %s4273_s25 = smov [#allocation4]  }
  0xc9   : > { %s787_s22 = sshll.u32 %s4272_s30, 4  ;;  %s620_s0 = sshll.u32 %s4273_s25, 4  ;;  %s788_s22 = int_to_ptr.vmem [resolvable:$true] %s787_s22  ;;  %s621_s0 = int_to_ptr.vmem [resolvable:$true] %s620_s0 }
  0xca   : > { %s3942_s28 = scalar_lea.hbm %s5290_s20, 16 }
  0xcb   : > { %p3943_p1 = scmp.ne.s32.totalorder %s5290_s20, %s3942_s28  ;;  %p3949_p3 = scmp.lt.u32.totalorder %s3942_s28, %s5290_s20 }
  0xcd   : > { %p3945_p4 = pnand %p3943_p1, %p4497_p7 }
  0xcf   : > { %p3946_p2 = pneg %p3945_p4 }
  0xd1   : > { %p3951_p6 = pnand %p3949_p3, %p3946_p2 }
  0xd3   : > { %3954 = shalt.err (!%p3951_p6)
}
  0xd4   : > { %s3955_s6 = scalar_lea.vmem %s788_s22, 16  ;;  %s3962_s9 = scalar_lea.vmem %s788_s22, 32 }
  0xd5   : > { %p3956_p8 = scmp.ne.s32.totalorder %s788_s22, %s3955_s6  ;;  %p3963_p11 = scmp.lt.s32.totalorder %s788_s22, %s788_s22 }
  0xd6   : > { %p3964_p12 = scmp.lt.s32.totalorder %s3962_s9, %s3955_s6 }
  0xd7   : > { %p3958_p9 = pnand %p3956_p8, %p4497_p7 }
  0xd8   : > { %p3965_p13 = por %p3964_p12, %p3963_p11 }
  0xd9   : > { %p3959_p10 = pneg %p3958_p9 }
  0xdb   : > { %p3966_p0 = pnand %p3965_p13, %p3959_p10 }
  0xdd   : > { %3969 = shalt.err (!%p3966_p0)
}
  0xde   : > { %3665 = dma.hbm_to_vmem [thread:$0]  (!%p4481_p5), %s5290_s20, 16, %s788_s22, [#allocation25]  }
  0xdf   : > { %s5337_s28 = sld [smem:[#allocation40_spill]] }
  0xe5   : > { %s3970_s5 = scalar_lea.hbm %s5337_s28, 32 }
  0xe6   : > { %p3971_p1 = scmp.ne.s32.totalorder %s5337_s28, %s3970_s5  ;;  %p3977_p3 = scmp.lt.u32.totalorder %s3970_s5, %s5337_s28 }
  0xe8   : > { %p3973_p4 = pnand %p3971_p1, %p4497_p7 }
  0xea   : > { %p3974_p2 = pneg %p3973_p4 }
  0xec   : > { %p3979_p6 = pnand %p3977_p3, %p3974_p2 }
  0xee   : > { %3982 = shalt.err (!%p3979_p6)
}
  0xef   : > { %s3983_s9 = scalar_lea.vmem %s621_s0, 32  ;;  %p3991_p11 = scmp.lt.s32.totalorder %s621_s0, %s621_s0 }
  0xf0   : > { %p3984_p8 = scmp.ne.s32.totalorder %s621_s0, %s3983_s9  ;;  %p3992_p12 = scmp.lt.s32.totalorder %s3983_s9, %s3983_s9 }
  0xf2   : > { %p3986_p9 = pnand %p3984_p8, %p4497_p7  ;;  %p3993_p13 = por %p3992_p12, %p3991_p11 }
  0xf4   : > { %p3987_p10 = pneg %p3986_p9 }
  0xf6   : > { %p3994_p0 = pnand %p3993_p13, %p3987_p10 }
  0xf8   : > { %3997 = shalt.err (!%p3994_p0)
}
  0xf9   : > { %3626 = dma.hbm_to_vmem [thread:$0]  (!%p4481_p5), %s5337_s28, 32, %s621_s0, [#allocation5]  }
  0xfa   : > { %s4274_s25 = smov [#allocation8]   ;;  %s5338_s27 = sld [smem:[#allocation44_spill]] }
  0xfb   : > { %s647_s2 = sshll.u32 %s4274_s25, 4  ;;  %s648_s2 = int_to_ptr.vmem [resolvable:$true] %s647_s2 }
 0x100   : > { %s3998_s1 = scalar_lea.hbm %s5338_s27, 128 }
 0x101   : > { %p3999_p1 = scmp.ne.s32.totalorder %s5338_s27, %s3998_s1  ;;  %p4005_p3 = scmp.lt.u32.totalorder %s3998_s1, %s5338_s27 }
 0x103   : > { %p4001_p4 = pnand %p3999_p1, %p4497_p7 }
 0x105   : > { %p4002_p2 = pneg %p4001_p4 }
 0x107   : > { %p4007_p6 = pnand %p4005_p3, %p4002_p2 }
 0x109   : > { %4010 = shalt.err (!%p4007_p6)
}
 0x10a   : > { %s4011_s0 = scalar_lea.vmem %s648_s2, 128  ;;  %p4019_p11 = scmp.lt.s32.totalorder %s648_s2, %s648_s2 }
 0x10b   : > { %p4012_p8 = scmp.ne.s32.totalorder %s648_s2, %s4011_s0  ;;  %p4020_p12 = scmp.lt.s32.totalorder %s4011_s0, %s4011_s0 }
 0x10d   : > { %p4014_p9 = pnand %p4012_p8, %p4497_p7  ;;  %p4021_p13 = por %p4020_p12, %p4019_p11 }
 0x10f   : > { %p4015_p10 = pneg %p4014_p9 }
 0x111   : > { %p4022_p0 = pnand %p4021_p13, %p4015_p10 }
 0x113   : > { %4025 = shalt.err (!%p4022_p0)
}
 0x114   : > { %s4275_s22 = smov 64   ;;  %s4276_s30 = smov 4  }
 0x115   : > { %3632 = dma.hbm_to_vmem [thread:$0]  (!%p4481_p5), %s5338_s27, 128, %s648_s2, [#allocation7], %s4275_s22, %s4275_s22, %s4276_s30  }
 0x116   : > { %s4277_s12 = smov [#allocation11]   ;;  %s4278_s1 = smov [#allocation14]  }
 0x117   : > { %s678_s5 = sshll.u32 %s4277_s12, 4  ;;  %s705_s23 = sshll.u32 %s4278_s1, 4  ;;  %s679_s5 = int_to_ptr.vmem [resolvable:$true] %s678_s5  ;;  %s4678_s23 = int_to_ptr.vmem [resolvable:$true] %s705_s23 }
 0x118   : > { %s5339_s0 = sld [smem:[#allocation48_spill]] }
 0x11e   : > { %s4026_s14 = scalar_lea.hbm %s5339_s0, 32 }
 0x11f   : > { %p4027_p1 = scmp.ne.s32.totalorder %s5339_s0, %s4026_s14  ;;  %p4033_p3 = scmp.lt.u32.totalorder %s4026_s14, %s5339_s0 }
 0x121   : > { %p4029_p4 = pnand %p4027_p1, %p4497_p7 }
 0x123   : > { %p4030_p2 = pneg %p4029_p4 }
 0x125   : > { %p4035_p6 = pnand %p4033_p3, %p4030_p2 }
 0x127   : > { %4038 = shalt.err (!%p4035_p6)
}
 0x128   : > { %s4039_s22 = scalar_lea.vmem %s679_s5, 32  ;;  %p4047_p11 = scmp.lt.s32.totalorder %s679_s5, %s679_s5 }
 0x129   : > { %p4040_p8 = scmp.ne.s32.totalorder %s679_s5, %s4039_s22  ;;  %p4048_p12 = scmp.lt.s32.totalorder %s4039_s22, %s4039_s22 }
 0x12b   : > { %p4042_p9 = pnand %p4040_p8, %p4497_p7  ;;  %p4049_p13 = por %p4048_p12, %p4047_p11 }
 0x12d   : > { %p4043_p10 = pneg %p4042_p9 }
 0x12f   : > { %p4050_p0 = pnand %p4049_p13, %p4043_p10 }
 0x131   : > { %4053 = shalt.err (!%p4050_p0)
}
 0x132   : > { %3638 = dma.hbm_to_vmem [thread:$0]  (!%p4481_p5), %s5339_s0, 32, %s679_s5, [#allocation10]  }
 0x133   : > { %s5340_s13 = sld [smem:[#allocation50_spill]] }
 0x139   : > { %s4054_s25 = scalar_lea.hbm %s5340_s13, 7168 }
 0x13a   : > { %p4055_p1 = scmp.ne.s32.totalorder %s5340_s13, %s4054_s25  ;;  %p4061_p3 = scmp.lt.u32.totalorder %s4054_s25, %s5340_s13 }
 0x13c   : > { %p4057_p4 = pnand %p4055_p1, %p4497_p7 }
 0x13e   : > { %p4058_p2 = pneg %p4057_p4 }
 0x140   : > { %p4063_p6 = pnand %p4061_p3, %p4058_p2 }
 0x142   : > { %4066 = shalt.err (!%p4063_p6)
}
 0x143   : > { %s4067_s5 = scalar_lea.vmem %s4678_s23, 7168  ;;  %p4075_p11 = scmp.lt.s32.totalorder %s4678_s23, %s4678_s23 }
 0x144   : > { %p4068_p8 = scmp.ne.s32.totalorder %s4678_s23, %s4067_s5  ;;  %p4076_p12 = scmp.lt.s32.totalorder %s4067_s5, %s4067_s5 }
 0x146   : > { %p4070_p9 = pnand %p4068_p8, %p4497_p7  ;;  %p4077_p13 = por %p4076_p12, %p4075_p11 }
 0x148   : > { %p4071_p10 = pneg %p4070_p9 }
 0x14a   : > { %p4078_p0 = pnand %p4077_p13, %p4071_p10 }
 0x14c   : > { %4081 = shalt.err (!%p4078_p0)
}
 0x14d   : > { %s5306_s11 = smov 256   ;;  %s5307_s2 = smov 16  }
 0x14e   : > { %3644 = dma.hbm_to_vmem [thread:$0]  (!%p4481_p5), %s5340_s13, 7168, %s4678_s23, [#allocation13], %s5306_s11, %s5306_s11, %s5307_s2  }
 0x14f   : > { %s4281_s18 = smov [#allocation17]   ;;  %s4082_s12 = scalar_lea.hbm %s5285_s15, 512 }
 0x150   : > { %s729_s14 = sshll.u32 %s4281_s18, 4  ;;  %p4083_p1 = scmp.ne.s32.totalorder %s5285_s15, %s4082_s12  ;;  %s730_s14 = int_to_ptr.vmem [resolvable:$true] %s729_s14 }
 0x151   : > { %p4089_p3 = scmp.lt.u32.totalorder %s4082_s12, %s5285_s15 }
 0x152   : > { %p4085_p4 = pnand %p4083_p1, %p4497_p7 }
 0x154   : > { %p4086_p2 = pneg %p4085_p4 }
 0x156   : > { %p4091_p6 = pnand %p4089_p3, %p4086_p2 }
 0x158   : > { %4094 = shalt.err (!%p4091_p6)
}
 0x159   : > { %s4095_s23 = scalar_lea.vmem %s730_s14, 512  ;;  %p4103_p11 = scmp.lt.s32.totalorder %s730_s14, %s730_s14 }
 0x15a   : > { %p4096_p8 = scmp.ne.s32.totalorder %s730_s14, %s4095_s23  ;;  %p4104_p12 = scmp.lt.s32.totalorder %s4095_s23, %s4095_s23 }
 0x15c   : > { %p4098_p9 = pnand %p4096_p8, %p4497_p7  ;;  %p4105_p13 = por %p4104_p12, %p4103_p11 }
 0x15e   : > { %p4099_p10 = pneg %p4098_p9 }
 0x160   : > { %p4106_p0 = pnand %p4105_p13, %p4099_p10 }
 0x162   : > { %4109 = shalt.err (!%p4106_p0)
}
 0x163   : > { %s4282_s22 = smov 128   ;;  %s4283_s16 = smov 8  }
 0x164   : > { %3650 = dma.hbm_to_vmem [thread:$0]  (!%p4481_p5), %s5285_s15, 512, %s730_s14, [#allocation16], %s4282_s22, %s4282_s22, %s4283_s16  }
 0x165   : > { %s4284_s25 = smov [#allocation20]   ;;  %s4285_s1 = smov [#allocation23]  }
 0x166   : > { %s754_s12 = sshll.u32 %s4284_s25, 4  ;;  %s776_s6 = sshll.u32 %s4285_s1, 4  ;;  %s755_s12 = int_to_ptr.vmem [resolvable:$true] %s754_s12  ;;  %s777_s6 = int_to_ptr.vmem [resolvable:$true] %s776_s6 }
 0x167   : > { %s4110_s23 = scalar_lea.hbm %s5287_s17, 16 }
 0x168   : > { %p4111_p1 = scmp.ne.s32.totalorder %s5287_s17, %s4110_s23  ;;  %p4117_p3 = scmp.lt.u32.totalorder %s4110_s23, %s5287_s17 }
 0x16a   : > { %p4113_p4 = pnand %p4111_p1, %p4497_p7 }
 0x16c   : > { %p4114_p2 = pneg %p4113_p4 }
 0x16e   : > { %p4119_p6 = pnand %p4117_p3, %p4114_p2 }
 0x170   : > { %4122 = shalt.err (!%p4119_p6)
}
 0x171   : > { %s4123_s14 = scalar_lea.vmem %s755_s12, 16  ;;  %s4130_s22 = scalar_lea.vmem %s755_s12, 32 }
 0x172   : > { %p4124_p8 = scmp.ne.s32.totalorder %s755_s12, %s4123_s14  ;;  %p4131_p11 = scmp.lt.s32.totalorder %s755_s12, %s755_s12 }
 0x173   : > { %p4132_p12 = scmp.lt.s32.totalorder %s4130_s22, %s4123_s14 }
 0x174   : > { %p4126_p9 = pnand %p4124_p8, %p4497_p7 }
 0x175   : > { %p4133_p13 = por %p4132_p12, %p4131_p11 }
 0x176   : > { %p4127_p10 = pneg %p4126_p9 }
 0x178   : > { %p4134_p0 = pnand %p4133_p13, %p4127_p10 }
 0x17a   : > { %4137 = shalt.err (!%p4134_p0)
}
 0x17b   : > { %3656 = dma.hbm_to_vmem [thread:$0]  (!%p4481_p5), %s5287_s17, 16, %s755_s12, [#allocation19]  }
 0x17c   : > { %s4138_s16 = scalar_lea.hbm %s5289_s19, 64 }
 0x17d   : > { %p4139_p1 = scmp.ne.s32.totalorder %s5289_s19, %s4138_s16  ;;  %p4145_p3 = scmp.lt.u32.totalorder %s4138_s16, %s5289_s19 }
 0x17f   : > { %p4141_p4 = pnand %p4139_p1, %p4497_p7 }
 0x181   : > { %p4142_p2 = pneg %p4141_p4 }
 0x183   : > { %p4147_p6 = pnand %p4145_p3, %p4142_p2 }
 0x185   : > { %4150 = shalt.err (!%p4147_p6)
}
 0x186   : > { %s4151_s9 = scalar_lea.vmem %s777_s6, 64  ;;  %p4159_p11 = scmp.lt.s32.totalorder %s777_s6, %s777_s6 }
 0x187   : > { %p4152_p8 = scmp.ne.s32.totalorder %s777_s6, %s4151_s9  ;;  %p4160_p12 = scmp.lt.s32.totalorder %s4151_s9, %s4151_s9 }
 0x189   : > { %p4154_p9 = pnand %p4152_p8, %p4497_p7  ;;  %p4161_p13 = por %p4160_p12, %p4159_p11 }
 0x18b   : > { %p4155_p10 = pneg %p4154_p9 }
 0x18d   : > { %p4162_p0 = pnand %p4161_p13, %p4155_p10 }
 0x18f   : > { %4165 = shalt.err (!%p4162_p0)
}
 0x190   : > { %3662 = dma.hbm_to_vmem [thread:$0]  (!%p4481_p5), %s5289_s19, 64, %s777_s6, [#allocation22]  }
 0x191   : > { %s4286_s23 = smov [#allocation26]   ;;  %s4166_s2 = scalar_lea.hbm %s5291_s21, 3072 }
 0x192   : > { %s797_s14 = sshll.u32 %s4286_s23, 4  ;;  %p4167_p1 = scmp.ne.s32.totalorder %s5291_s21, %s4166_s2  ;;  %s798_s14 = int_to_ptr.vmem [resolvable:$true] %s797_s14 }
 0x193   : > { %p4173_p3 = scmp.lt.u32.totalorder %s4166_s2, %s5291_s21 }
 0x194   : > { %p4169_p4 = pnand %p4167_p1, %p4497_p7 }
 0x196   : > { %p4170_p2 = pneg %p4169_p4 }
 0x198   : > { %p4175_p6 = pnand %p4173_p3, %p4170_p2 }
 0x19a   : > { %4178 = shalt.err (!%p4175_p6)
}
 0x19b   : > { %s4179_s6 = scalar_lea.vmem %s798_s14, 3072  ;;  %p4187_p11 = scmp.lt.s32.totalorder %s798_s14, %s798_s14 }
 0x19c   : > { %p4180_p8 = scmp.ne.s32.totalorder %s798_s14, %s4179_s6  ;;  %p4188_p12 = scmp.lt.s32.totalorder %s4179_s6, %s4179_s6 }
 0x19e   : > { %p4182_p9 = pnand %p4180_p8, %p4497_p7  ;;  %p4189_p13 = por %p4188_p12, %p4187_p11 }
 0x1a0   : > { %p4183_p10 = pneg %p4182_p9 }
 0x1a2   : > { %p4190_p0 = pnand %p4189_p13, %p4183_p10 }
 0x1a4   : > { %4193 = shalt.err (!%p4190_p0)
}
 0x1a5   : > { %s4287_s30 = smov 384   ;;  %s4288_s25 = smov 24  }
 0x1a6   : > { %3668 = dma.hbm_to_vmem [thread:$0]  (!%p4481_p5), %s5291_s21, 3072, %s798_s14, [#allocation25], %s4287_s30, %s4287_s30, %s4288_s25  }
 0x1a7   : > { %s4289_s12 = smov [#allocation27]   ;;  %s4194_s11 = scalar_lea.hbm %s5294_s24, 9216 }
 0x1a8   : > { %s816_s5 = sshll.u32 %s4289_s12, 4  ;;  %p4195_p1 = scmp.ne.s32.totalorder %s5294_s24, %s4194_s11  ;;  %s817_s5 = int_to_ptr.vmem [resolvable:$true] %s816_s5 }
 0x1a9   : > { %p4201_p3 = scmp.lt.u32.totalorder %s4194_s11, %s5294_s24 }
 0x1aa   : > { %p4197_p4 = pnand %p4195_p1, %p4497_p7 }
 0x1ac   : > { %p4198_p2 = pneg %p4197_p4 }
 0x1ae   : > { %p4203_p6 = pnand %p4201_p3, %p4198_p2 }
 0x1b0   : > { %4206 = shalt.err (!%p4203_p6)
}
 0x1b1   : > { %s4207_s14 = scalar_lea.vmem %s817_s5, 9216  ;;  %p4215_p11 = scmp.lt.s32.totalorder %s817_s5, %s817_s5 }
 0x1b2   : > { %p4208_p8 = scmp.ne.s32.totalorder %s817_s5, %s4207_s14  ;;  %p4216_p12 = scmp.lt.s32.totalorder %s4207_s14, %s4207_s14 }
 0x1b4   : > { %p4210_p9 = pnand %p4208_p8, %p4497_p7  ;;  %p4217_p13 = por %p4216_p12, %p4215_p11 }
 0x1b6   : > { %p4211_p10 = pneg %p4210_p9 }
 0x1b8   : > { %p4218_p0 = pnand %p4217_p13, %p4211_p10 }
 0x1ba   : > { %4221 = shalt.err (!%p4218_p0)
}
 0x1bb   : > { %s5341_s18 = smov 16   ;;  %s5342_s6 = smov 256  }
 0x1bc   : > { %3671 = dma.hbm_to_vmem [thread:$0]  (!%p4481_p5), %s5294_s24, 9216, %s817_s5, [#allocation28], %s5342_s6, %s5342_s6, %s5341_s18  }
 0x1bd   : > { %p5343_p1 = scmp.ne.s32.totalorder %s5328_s3, 0 }
 0x1be   : > { %p5344_p7 = scmp.eq.s32.totalorder (!%p5343_p1), %s4464_s7, 0 }
 0x1bf   : > { %839 = sbr.rel (%p5343_p1) target bundleno = 4377 (0x1119), region = 120 }
 0x1c6   : > { %4227 = dma.done.wait (%p5344_p7), [#allocation5], 32   ;;  %p5345_p4 = pmov %p5344_p7 }
 0x1c8   : > { %4229 = vsyncadd (%p5345_p4), [#allocation5], 4294967264  ;;  %p5346_p2 = pmov %p5345_p4 }
 0x1ca   : > { %4231 = dma.done.wait (%p5346_p2), [#allocation7], 192   ;;  %p5347_p3 = pmov %p5346_p2 }
 0x1cb   : > { %p5348_p6 = pmov %p5346_p2 }
 0x1cc   : > { %4233 = vsyncadd (%p5347_p3), [#allocation7], 4294967104 }
 0x1cd   : > { %4235 = dma.done.wait (%p5348_p6), [#allocation10], 96   ;;  %p5349_p5 = pmov %p5346_p2 }
 0x1ce   : > { %p5350_p8 = pmov %p5346_p2 }
 0x1cf   : > { %4237 = vsyncadd (%p5349_p5), [#allocation10], 4294967200 }
 0x1d0   : > { %4239 = dma.done.wait (%p5350_p8), [#allocation13], 7184   ;;  %p5351_p9 = pmov %p5346_p2 }
 0x1d1   : > { %p5352_p10 = pmov %p5346_p2 }
 0x1d2   : > { %4241 = vsyncadd (%p5351_p9), [#allocation13], 4294960112 }
 0x1d3   : > { %4243 = dma.done.wait (%p5352_p10), [#allocation16], 576   ;;  %p5353_p11 = pmov %p5346_p2 }
 0x1d4   : > { %p5354_p12 = pmov %p5346_p2 }
 0x1d5   : > { %4245 = vsyncadd (%p5353_p11), [#allocation16], 4294966720 }
 0x1d6   : > { %4247 = dma.done.wait (%p5354_p12), [#allocation19], 80   ;;  %p5355_p13 = pmov %p5346_p2 }
 0x1d7   : > { %p5356_p0 = pmov %p5346_p2 }
 0x1d8   : > { %4249 = vsyncadd (%p5355_p13), [#allocation19], 4294967216 }
 0x1d9   : > { %4251 = dma.done.wait (%p5356_p0), [#allocation22], 192   ;;  %p5357_p1 = pmov %p5356_p0 }
 0x1da   : > { %p5358_p7 = pmov %p5356_p0 }
 0x1db   : > { %4253 = vsyncadd (%p5357_p1), [#allocation22], 4294967104 }
 0x1dc   : > { %4255 = dma.done.wait (%p5358_p7), [#allocation25], 3088   ;;  %p5359_p4 = pmov %p5356_p0 }
 0x1dd   : > { %p5360_p2 = pmov %p5356_p0 }
 0x1de   : > { %4257 = vsyncadd (%p5359_p4), [#allocation25], 4294964208 }
 0x1df   : > { %4259 = dma.done.wait (%p5360_p2), [#allocation28], 9216   ;;  %p5361_p3 = pmov %p5356_p0 }
 0x1e0   : > { %p965_p6 = scmp.lt.s32.totalorder %s4464_s7, 1  ;;  %v975_v1 = vlaneseq  ;;  %s5362_s1 = sld [smem:[#allocation39_spill]]  ;;  %v4298_v4 = vmov 0   ;;  %v1125_v6 = vld [vmem:[#allocation14 + $0x8] sm:$0xff]  ;;  %v1127_v7 = vld [vmem:[#allocation14 + $0x18] sm:$0xff]  ;;  %v1124_v9 = vld [vmem:[#allocation14] sm:$0xff] }
 0x1e1   : > { %4261 = vsyncadd (%p5361_p3), [#allocation28], 4294958080  ;;  %s4290_s12 = smov 112   ;;  %s4291_s5 = smov 127   ;;  %1113 = vmatprep.mubr.bf16.mxu0 %v4298_v4  ;;  %3771 = vset.pattern.permute.xlu0 %v4298_v4  ;;  %v3366_v8 = vpack.c.bf16 %v1127_v7, %v1125_v6  ;;  %v1126_v10 = vld [vmem:[#allocation14 + $0x10] sm:$0xff]  ;;  %v1129_v11 = vld [vmem:[#allocation14 + $0x28] sm:$0xff] }
 0x1e2   : > { %s5378_s7 = smov (!%p965_p6, %s4464_s7), 1  ;;  %vm4866_vm0 = vcmp.lt.s32.totalorder %v975_v1, 222  ;;  %s4292_s23 = smov 111   ;;  %3772 = vset.pattern.permute.xlu1 %v4298_v4  ;;  %v3368_v12 = vpack.c.bf16 %v1126_v10, %v1124_v9  ;;  %v1131_v13 = vld [vmem:[#allocation14 + $0x38] sm:$0xff]  ;;  %v1128_v14 = vld [vmem:[#allocation14 + $0x20] sm:$0xff]  ;;  %v1130_v15 = vld [vmem:[#allocation14 + $0x30] sm:$0xff] }
 0x1e3   : > { %s3170_s3 = sshll.u32 %s5378_s7, 1  ;;  %s4293_s22 = smov 126   ;;  %3367 = vmatprep.subr.bf16.mxu1 %v3366_v8  ;;  %v3370_v16 = vpack.c.bf16 %v1131_v13, %v1129_v11  ;;  %v1133_v17 = vld [vmem:[#allocation14 + $0x48] sm:$0xff]  ;;  %v1135_v18 = vld [vmem:[#allocation14 + $0x58] sm:$0xff]  ;;  %v3372_v19 = vpack.c.bf16 %v1130_v15, %v1128_v14  ;;  %v1132_v21 = vld [vmem:[#allocation14 + $0x40] sm:$0xff]  ;;  %vm1003_vm1 = vcmask 916480  }
 0x1e4   : > { %s4294_s11 = smov 96   ;;  %s4295_s2 = smov 110   ;;  %3369 = vmatpush1.bf16.msra.mxu1 %v3368_v12  ;;  %v3374_v20 = vpack.c.bf16 %v1135_v18, %v1133_v17  ;;  %v1134_v22 = vld [vmem:[#allocation14 + $0x50] sm:$0xff]  ;;  %v1137_v23 = vld [vmem:[#allocation14 + $0x68] sm:$0xff]  ;;  %v1139_v24 = vld [vmem:[#allocation14 + $0x78] sm:$0xff]  ;;  %vm985_vm2 = vcmask 1039360  }
 0x1e5   : > { %s4296_s13 = smov 94   ;;  %s4297_s0 = smov 95   ;;  %3371 = vmatprep.subr.bf16.mxu1 %v3370_v16  ;;  %v3376_v25 = vpack.c.bf16 %v1134_v22, %v1132_v21  ;;  %v3378_v26 = vpack.c.bf16 %v1139_v24, %v1137_v23  ;;  %v1136_v27 = vld [vmem:[#allocation14 + $0x60] sm:$0xff]  ;;  %v1138_v28 = vld [vmem:[#allocation14 + $0x70] sm:$0xff]  ;;  %v1141_v29 = vld [vmem:[#allocation14 + $0x88] sm:$0xff]  ;;  %vm1012_vm3 = vcmask 908288  }
 0x1e6   : > { %s968_s9 = scalar_lea.vmem %s5362_s1, %s3170_s3  ;;  %s5365_s18 = sld [smem:[#allocation41_spill]]  ;;  %v1143_v30 = vld [vmem:[#allocation14 + $0x98] sm:$0xff]  ;;  %v3380_v31 = vpack.c.bf16 %v1138_v28, %v1136_v27  ;;  %v1140_v33 = vld [vmem:[#allocation14 + $0x80] sm:$0xff]  ;;  %v1142_v34 = vld [vmem:[#allocation14 + $0x90] sm:$0xff]  ;;  %vm994_vm4 = vcmask 1031168   ;;  %vm1030_vm5 = vcmask 785408  }
 0x1e7   : > { %v974_v3 = vld [vmem:[%s968_s9] sm:$0x3]  ;;  %v3382_v32 = vpack.c.bf16 %v1143_v30, %v1141_v29  ;;  %v1145_v35 = vld [vmem:[#allocation14 + $0xa8] sm:$0xff]  ;;  %v1147_v36 = vld [vmem:[#allocation14 + $0xb8] sm:$0xff]  ;;  %v3384_v37 = vpack.c.bf16 %v1142_v34, %v1140_v33  ;;  %vm1021_vm6 = vcmask 900096   ;;  %vm1048_vm7 = vcmask 769024  }
 0x1e8   : > { %1000 = vrot.lane.b32.xlu1 %v974_v3, %s4290_s12  ;;  %982 = vrot.lane.b32.xlu0 %v974_v3, %s4291_s5  ;;  %979 = vst.msk [vmem:[#allocation2] ss:$8 sm:$0x3] %vm4866_vm0, %v974_v3  ;;  %v3386_v38 = vpack.c.bf16 %v1147_v36, %v1145_v35  ;;  %v1144_v39 = vld [vmem:[#allocation14 + $0xa0] sm:$0xff]  ;;  %v1146_v40 = vld [vmem:[#allocation14 + $0xb0] sm:$0xff]  ;;  %v1149_v41 = vld [vmem:[#allocation14 + $0xc8] sm:$0xff] }
 0x1e9   : > { %3373 = vmatpush1.bf16.msra.mxu1 %v3372_v19  ;;  %v1151_v42 = vld [vmem:[#allocation14 + $0xd8] sm:$0xff]  ;;  %v3388_v43 = vpack.c.bf16 %v1146_v40, %v1144_v39  ;;  %v1148_v45 = vld [vmem:[#allocation14 + $0xc0] sm:$0xff]  ;;  %v1150_v46 = vld [vmem:[#allocation14 + $0xd0] sm:$0xff]  ;;  %vm1039_vm8 = vcmask 777216   ;;  %vm1071_vm9 = vcmask 1043456   ;;  %vm1072_vm10 = vcmask 1044480  }
 0x1ea   : > { %3375 = vmatprep.subr.bf16.mxu1 %v3374_v20  ;;  %v3390_v44 = vpack.c.bf16 %v1151_v42, %v1149_v41  ;;  %v1153_v47 = vld [vmem:[#allocation14 + $0xe8] sm:$0xff]  ;;  %v1155_v48 = vld [vmem:[#allocation14 + $0xf8] sm:$0xff]  ;;  %v3392_v49 = vpack.c.bf16 %v1150_v46, %v1148_v45  ;;  %v1152_v51 = vld [vmem:[#allocation14 + $0xe0] sm:$0xff]  ;;  %vm1067_vm11 = vcmask 72704   ;;  %vm1183_vm12 = vcmask 1045504   ;;  %s4301_s6 = smov 79  }
 0x1eb   : > { %v3394_v50 = vpack.c.bf16 %v1155_v48, %v1153_v47  ;;  %v1154_v52 = vld [vmem:[#allocation14 + $0xf0] sm:$0xff]  ;;  %v1157_v53 = vld [vmem:[#allocation14 + $0x108] sm:$0xff]  ;;  %v1159_v54 = vld [vmem:[#allocation14 + $0x118] sm:$0xff]  ;;  %v4299_v47 = vmov 65535   ;;  %vm4300_vm13 = vmmov 1   ;;  %s4302_s30 = smov 30  }
 0x1ec   : > { %1009 = vrot.lane.b32.xlu1 %v974_v3, %s4292_s23  ;;  %991 = vrot.lane.b32.xlu0 %v974_v3, %s4293_s22  ;;  %v1061_v5 = vld [vmem:[%s5365_s18] sm:$0xf]  ;;  %v3396_v55 = vpack.c.bf16 %v1154_v52, %v1152_v51  ;;  %v3398_v56 = vpack.c.bf16 %v1159_v54, %v1157_v53  ;;  %v1156_v57 = vld [vmem:[#allocation14 + $0x100] sm:$0xff]  ;;  %v1161_v59 = vld [vmem:[#allocation14 + $0x128] sm:$0xff]  ;;  %v1073_v48 = vsel %vm1071_vm9, 4294967295, %v4299_v47  ;;  %vm1278_vm15 = vcmask 244736  }
 0x1ed   : > { %3377 = vmatpush1.bf16.msra.mxu1 %v3376_v25  ;;  %v1158_v58 = vld [vmem:[#allocation14 + $0x110] sm:$0xff]  ;;  %v1163_v60 = vld [vmem:[#allocation14 + $0x138] sm:$0xff]  ;;  %v1160_v63 = vld [vmem:[#allocation14 + $0x120] sm:$0xff]  ;;  %v1074_v51 = vsel %vm1072_vm10, %v1073_v48, 0  ;;  %s4304_s25 = smov 120   ;;  %s4305_s4 = smov 121  }
 0x1ee   : > { %3379 = vmatprep.subr.bf16.mxu1 %v3378_v26  ;;  %v3400_v61 = vpack.c.bf16 %v1158_v58, %v1156_v57  ;;  %v3402_v62 = vpack.c.bf16 %v1163_v60, %v1161_v59  ;;  %v1162_v0 = vld [vmem:[#allocation14 + $0x130] sm:$0xff]  ;;  %v1164_v8 = vld [vmem:[#allocation14 + $0x140] sm:$0xff]  ;;  %v1169_v10 = vld [vmem:[#allocation14 + $0x168] sm:$0xff]  ;;  %s4306_s8 = smov 114   ;;  %s4307_s1 = smov 119   ;;  %v4310_v48 = vmov 0.0|0.0  }
 0x1ef   : > { %v3404_v6 = vpack.c.bf16 %v1162_v0, %v1160_v63  ;;  %v1166_v9 = vld [vmem:[#allocation14 + $0x150] sm:$0xff]  ;;  %v1171_v11 = vld [vmem:[#allocation14 + $0x178] sm:$0xff]  ;;  %v1168_v14 = vld [vmem:[#allocation14 + $0x160] sm:$0xff]  ;;  %s4308_s9 = smov 113   ;;  %s5369_s18 = sld [smem:[#allocation45_spill]] }
 0x1f0   : > { %1027 = vrot.lane.b32.xlu1 %v974_v3, %s4294_s11  ;;  %1018 = vrot.lane.b32.xlu0 %v974_v3, %s4295_s2  ;;  %v3408_v12 = vpack.c.bf16 %v1166_v9, %v1164_v8  ;;  %v3410_v13 = vpack.c.bf16 %v1171_v11, %v1169_v10  ;;  %v1170_v15 = vld [vmem:[#allocation14 + $0x170] sm:$0xff]  ;;  %v1173_v16 = vld [vmem:[#allocation14 + $0x188] sm:$0xff]  ;;  %v1175_v17 = vld [vmem:[#allocation14 + $0x198] sm:$0xff]  ;;  %s5370_s11 = sld [smem:[#allocation47_spill]]  ;;  %s4318_s16 = smov 109  }
 0x1f1   : > { %3381 = vmatpush1.bf16.msra.mxu1 %v3380_v31  ;;  %v3412_v18 = vpack.c.bf16 %v1170_v15, %v1168_v14  ;;  %v3414_v19 = vpack.c.bf16 %v1175_v17, %v1173_v16  ;;  %v1172_v20 = vld [vmem:[#allocation14 + $0x180] sm:$0xff]  ;;  %v1174_v21 = vld [vmem:[#allocation14 + $0x190] sm:$0xff]  ;;  %v1060_v58 = vld [vmem:[#allocation4] sm:$0x3]  ;;  %s4319_s14 = smov 98   ;;  %s5374_s23 = sld [smem:[#allocation55_spill]] }
 0x1f2   : > { %3383 = vmatprep.subr.bf16.mxu1 %v3382_v32  ;;  %v3416_v22 = vpack.c.bf16 %v1174_v21, %v1172_v20  ;;  %v1177_v2 = vld [vmem:[#allocation14 + $0x1a8] sm:$0xff]  ;;  %v1179_v59 = vld [vmem:[#allocation14 + $0x1b8] sm:$0x3f]  ;;  %vm4905_vm14 = vmpackc.low %vm1183_vm12, %vm4300_vm13 }
 0x1f3   : > { %v3418_v60 = vpack.c.bf16 %v1179_v59, %v1177_v2 }
 0x1f4   : > { %1045 = vrot.lane.b32.xlu1 %v974_v3, %s4296_s13  ;;  %1036 = vrot.lane.b32.xlu0 %v974_v3, %s4297_s0  ;;  %v1165_v3 = vld [vmem:[#allocation14 + $0x148] sm:$0xff]  ;;  %s5368_s13 = sld [smem:[#allocation43_spill]]  ;;  %s4312_s0 = smov 125  }
 0x1f5   : > { %3385 = vmatpush1.bf16.msra.mxu1 %v3384_v37 }
 0x1f6   : > { %3387 = vmatprep.subr.bf16.mxu1 %v3386_v38 }
 0x1f8   : > { %1064 = vperm.xlu0 %3771, %v1061_v5   ;;  %v1167_v5 = vld [vmem:[#allocation14 + $0x158] sm:$0xff] }
 0x1f9   : > { %3389 = vmatpush1.bf16.msra.mxu1 %v3388_v43  ;;  %v3406_v7 = vpack.c.bf16 %v1167_v5, %v1165_v3 }
 0x1fa   : > { %3391 = vmatprep.subr.bf16.mxu1 %v3390_v44 }
 0x1fd   : > { %3393 = vmatpush1.bf16.msra.mxu1 %v3392_v49 }
 0x1fe   : > { %3395 = vmatprep.subr.bf16.mxu1 %v3394_v50 }
 0x201   : > { %3397 = vmatpush1.bf16.msra.mxu1 %v3396_v55 }
 0x202   : > { %3399 = vmatprep.subr.bf16.mxu1 %v3398_v56 }
 0x205   : > { %3401 = vmatpush1.bf16.msra.mxu1 %v3400_v61  ;;  %v1176_v61 = vld [vmem:[#allocation14 + $0x1a0] sm:$0xff] }
 0x206   : > { %3403 = vmatprep.subr.bf16.mxu1 %v3402_v62  ;;  %v1178_v62 = vld [vmem:[#allocation14 + $0x1b0] sm:$0x3f] }
 0x207   : > { %v3421_v0 = vpack.c.bf16 %v1178_v62, %v1176_v61 }
 0x209   : > { %3405 = vmatpush1.bf16.msra.mxu1 %v3404_v6 }
 0x20a   : > { %3407 = vmatprep.subr.bf16.mxu1 %v3406_v7 }
 0x20d   : > { %3409 = vmatpush1.bf16.msra.mxu1 %v3408_v12 }
 0x20e   : > { %3411 = vmatprep.subr.bf16.mxu1 %v3410_v13 }
 0x211   : > { %3413 = vmatpush1.bf16.msra.mxu1 %v3412_v18 }
 0x212   : > { %3415 = vmatprep.subr.bf16.mxu1 %v3414_v19 }
 0x215   : > { %3417 = vmatpush1.bf16.msra.mxu1 %v3416_v22 }
 0x216   : > { %3420 = vmatprep.subr.msk.bf16.mxu1 %vm4905_vm14, %v3418_v60 }
 0x219   : > { %3423 = vmatpush1.bf16.msk.msra.mxu1 %vm4905_vm14, %v3421_v0 }
 0x25a   : > { %v1001_v23 = vpop.permute.xlu1 %1000  ;;  %v983_v24 = vpop.permute.xlu0 %982 }
 0x25b   : > { %v1002_v25 = vrot.slane %v1001_v23, 1  ;;  %v984_v26 = vrot.slane %v983_v24, 1 }
 0x25d   : > { %v1004_v27 = vsel %vm1003_vm1, %v1001_v23, %v1002_v25  ;;  %v986_v28 = vsel %vm985_vm2, %v983_v24, %v984_v26  ;;  %v4303_v25 = vmov 0.0   ;;  %v1384_v26 = vld [vmem:[%s5368_s13] sm:$0xff]  ;;  %vm4309_vm1 = vmmov 0   ;;  %s4315_s13 = smov 118  }
 0x25e   : > { %1007 = vst.msk [vmem:[#allocation2 + $0x3] ss:$8 sm:$0x3] %vm4866_vm0, %v1004_v27  ;;  %989 = vst.msk [vmem:[#allocation2 + $0x1] ss:$8 sm:$0x3] %vm4866_vm0, %v986_v28  ;;  %v1010_v29 = vpop.permute.xlu1 %1009  ;;  %v992_v30 = vpop.permute.xlu0 %991 }
 0x25f   : > { %v1011_v31 = vrot.slane %v1010_v29, 1  ;;  %v993_v32 = vrot.slane %v992_v30, 1 }
 0x261   : > { %v1013_v33 = vsel %vm1012_vm3, %v1010_v29, %v1011_v31  ;;  %v995_v34 = vsel %vm994_vm4, %v992_v30, %v993_v32  ;;  %vm1345_vm3 = vcmask 203780  }
 0x262   : > { %1016 = vst.msk [vmem:[#allocation2 + $0x4] ss:$8 sm:$0x3] %vm4866_vm0, %v1013_v33  ;;  %998 = vst.msk [vmem:[#allocation2 + $0x2] ss:$8 sm:$0x3] %vm4866_vm0, %v995_v34  ;;  %v1028_v35 = vpop.permute.xlu1 %1027  ;;  %v1019_v36 = vpop.permute.xlu0 %1018 }
 0x263   : > { %v1029_v37 = vrot.slane %v1028_v35, 1  ;;  %v1020_v38 = vrot.slane %v1019_v36, 1 }
 0x265   : > { %v1031_v39 = vsel %vm1030_vm5, %v1028_v35, %v1029_v37  ;;  %v1022_v40 = vsel %vm1021_vm6, %v1019_v36, %v1020_v38  ;;  %vm1394_vm5 = vcmask 1041408  }
 0x266   : > { %1034 = vst.msk [vmem:[#allocation2 + $0x6] ss:$8 sm:$0x3] %vm4866_vm0, %v1031_v39  ;;  %1025 = vst.msk [vmem:[#allocation2 + $0x5] ss:$8 sm:$0x3] %vm4866_vm0, %v1022_v40  ;;  %v1046_v41 = vpop.permute.xlu1 %1045  ;;  %v1037_v42 = vpop.permute.xlu0 %1036 }
 0x267   : > { %v1047_v43 = vrot.slane %v1046_v41, 1  ;;  %v1038_v44 = vrot.slane %v1037_v42, 1 }
 0x269   : > { %v1049_v45 = vsel %vm1048_vm7, %v1046_v41, %v1047_v43  ;;  %v1040_v46 = vsel %vm1039_vm8, %v1037_v42, %v1038_v44  ;;  %v1441_v43 = vld [vmem:[#allocation17] sm:$0xff]  ;;  %v1442_v44 = vld [vmem:[#allocation17 + $0x8] sm:$0xff]  ;;  %vm1449_vm8 = vcmask 1040384  }
 0x26a   : > { %1052 = vst.msk [vmem:[#allocation2 + $0x18] ss:$8 sm:$0x3] %vm4866_vm0, %v1049_v45  ;;  %1043 = vst.msk [vmem:[#allocation2 + $0x7] ss:$8 sm:$0x3] %vm4866_vm0, %v1040_v46  ;;  %v3425_v47 = vpack.c.bf16 %v1442_v44, %v1441_v43 }
 0x26b   : > { %vm1339_vm0 = vcmask 199680   ;;  %v1383_v46 = vld [vmem:[#allocation6] sm:$0xf] }
 0x271   : > { %v1055_v49 = vld [vmem:[#allocation2 + $0x8] sm:$0xff]  ;;  %v1057_v50 = vld [vmem:[#allocation2 + $0x20] sm:$0x1]  ;;  %v1056_v54 = vld [vmem:[#allocation2 + $0x18] sm:$0x1] }
 0x272   : > { %v1054_v52 = vld [vmem:[#allocation2] sm:$0xff]  ;;  %v1059_v53 = vpack.c.bf16 %v1057_v50, %v1055_v49  ;;  %v1444_v50 = vld [vmem:[#allocation17 + $0x18] sm:$0x1] }
 0x273   : > { %v1058_v55 = vpack.c.bf16 %v1056_v54, %v1054_v52  ;;  %v1443_v49 = vld [vmem:[#allocation17 + $0x10] sm:$0xff] }
 0x274   : > { %v1079_v56 = vand.u32 %v1074_v51, %v1059_v53 }
 0x275   : > { %v1076_v57 = vand.u32 %v1074_v51, %v1058_v55  ;;  %v3428_v51 = vpack.c.bf16 %v1444_v50, %v1443_v49 }
 0x276   : > { %1081 = vmatprep.subr.bf16.mxu0 %v1079_v56 }
 0x277   : > { %1082 = vmatpush1.bf16.msra.mxu0 %v1076_v57  ;;  %v1065_v3 = vpop.permute.xlu0 %1064 }
 0x278   : > { %3255 = vmatprep.subr.bf16.mxu0 %v4303_v25 }
 0x27a   : > { %3172 = vmatmul.mubr.msk.bf16.vlgmr.msra.gmra.mrb[0].mxu0 %vm1067_vm11, %v1060_v58  ;;  %vm3429_vm11 = vmpackc.low %vm1449_vm8, %vm4300_vm13 }
 0x27b   : > { %3261 = vmatprep.mubr.msk.bf16.mxu0 %vm4309_vm1, %v4303_v25 }
 0x34d   : > { %v1115_v5 = vpop.f32.mrb[0].mxu0 }
 0x34e   : > { %v1116_v6 = vadd.f32 %v1115_v5, %v1065_v3  ;;  %v1117_v7 = vpop.f32.mrb[1].mxu0 }
 0x34f   : > { %v1118_v8 = vadd.f32 %v1117_v7, %v1065_v3  ;;  %v1119_v9 = vpop.f32.mrb[2].mxu0 }
 0x350   : > { %v1120_v10 = vpop.f32.mrb[3].mxu0  ;;  %v1122_v12 = vmax.f32 %v1116_v6, 0.0 }
 0x351   : > { %v1123_v11 = vmax.f32 %v1118_v8, 0.0 }
 0x353   : > { %3175 = vmatprep.mubr.msk.f32.mxu1 %vm1048_vm7, %v1123_v11  ;;  %vm1390_vm7 = vcmask 293888  }
 0x354   : > { %1255 = vmatmul.mubr.f32.vlgmr.msra.gmra.mrb[0].mxu1 %v1122_v12 }
 0x355   : > { %2322 = vmatprep.mubr.f32.mxu1 %v4303_v25 }
 0x427   : > { %v4914_v13 = vpop.f32.mrb[0].mxu1 }
 0x428   : > { %v4916_v14 = vpop.f32.mrb[1].mxu1 }
 0x429   : > { %1267 = vrot.lane.b32.xlu1 %v4916_v14, %s4301_s6 }
 0x42d   : > { %1262 = vrot.lane.b32.xlu1 %v4914_v13, %s4301_s6 }
 0x49b   : > { %v1268_v15 = vpop.permute.xlu1 %1267 }
 0x49c   : > { %v1270_v16 = vmax.f32 %v4914_v13, %v1268_v15  ;;  %v1271_v17 = vmax.f32 %v4916_v14, %v1268_v15 }
 0x49e   : > { %1276 = vrot.lane.b32.xlu1 %v1271_v17, %s4302_s30  ;;  %1274 = vrot.lane.b32.xlu0 %v1270_v16, %s4302_s30  ;;  %v3773_v16 = vld [vmem:[#allocation8] sm:$0xff]  }
 0x49f   : > { %v1263_v18 = vpop.permute.xlu1 %1262  ;;  %v1605_v17 = vld [vmem:[%s5369_s18] sm:$0xff] }
 0x4a0   : > { %v1265_v19 = vmax.f32 %v4914_v13, %v1263_v18 }
 0x510   : > { %v1275_v20 = vpop.permute.xlu0 %1274  ;;  %v1277_v21 = vpop.permute.xlu1 %1276 }
 0x511   : > { %v1279_v22 = vsel %vm1278_vm15, %v1275_v20, %v1277_v21 }
 0x512   : > { %v4926_v23 = vmax.f32 %v1265_v19, %v1279_v22  ;;  %v1606_v19 = vld [vmem:[%s5369_s18 + $0x8] sm:$0xff] }
 0x514   : > { %1347 = vrot.lane.b32.xlu1 %v4926_v23, %s4293_s22  ;;  %v1341_v24 = vrot.slane %v4926_v23, 4  ;;  %1340 = vst.msk [vmem:[#allocation2] sm:$0xf] %vm1339_vm0, %v4926_v23 }
 0x516   : > { %1342 = vrot.lane.b32.xlu0 %v1341_v24, %s4291_s5 }
 0x518   : > { %1355 = vrot.lane.b32.xlu1 %v4926_v23, %s4304_s25 }
 0x51a   : > { %1351 = vrot.lane.b32.xlu0 %v1341_v24, %s4305_s4  ;;  %s4313_s4 = smov 8  }
 0x51c   : > { %1363 = vrot.lane.b32.xlu1 %v4926_v23, %s4306_s8  ;;  %s4314_s8 = smov 4  }
 0x51e   : > { %1359 = vrot.lane.b32.xlu0 %v1341_v24, %s4307_s1 }
 0x520   : > { %1371 = vrot.lane.b32.xlu1 %v4926_v23, %s4290_s12  ;;  %s4311_s12 = smov 124  }
 0x522   : > { %1367 = vrot.lane.b32.xlu0 %v1341_v24, %s4308_s9  ;;  %s5371_s9 = sld [smem:[#allocation54_spill]] }
 0x526   : > { %1387 = vperm.xlu0 %3771, %v1384_v26  }
 0x586   : > { %v1348_v27 = vpop.permute.xlu1 %1347 }
 0x587   : > { %1350 = vst.msk [vmem:[#allocation2 + $0x18] sm:$0xf] %vm1339_vm0, %v1348_v27 }
 0x588   : > { %v1343_v28 = vpop.permute.xlu0 %1342 }
 0x589   : > { %1346 = vst.msk [vmem:[#allocation2] sm:$0xf0] %vm1345_vm3, %v1343_v28 }
 0x58a   : > { %v1356_v29 = vpop.permute.xlu1 %1355 }
 0x58b   : > { %1358 = vst.msk [vmem:[#allocation2 + $0x30] sm:$0xf] %vm1339_vm0, %v1356_v29 }
 0x58c   : > { %v1352_v30 = vpop.permute.xlu0 %1351 }
 0x58d   : > { %1354 = vst.msk [vmem:[#allocation2 + $0x18] sm:$0xf0] %vm1345_vm3, %v1352_v30 }
 0x58e   : > { %v1364_v31 = vpop.permute.xlu1 %1363 }
 0x58f   : > { %1366 = vst.msk [vmem:[#allocation2 + $0x48] sm:$0xf] %vm1339_vm0, %v1364_v31  ;;  %v3181_v31 = vld [vmem:[#allocation20] ss:$0 sm:$0xff] }
 0x590   : > { %v1360_v32 = vpop.permute.xlu0 %1359  ;;  %v1375_v35 = vld [vmem:[#allocation2] sm:$0xff] }
 0x591   : > { %1362 = vst.msk [vmem:[#allocation2 + $0x30] sm:$0xf0] %vm1345_vm3, %v1360_v32 }
 0x592   : > { %v1372_v33 = vpop.permute.xlu1 %1371 }
 0x593   : > { %1374 = vst.msk [vmem:[#allocation2 + $0x60] sm:$0xf] %vm1339_vm0, %v1372_v33  ;;  %vm1445_vm0 = vcmask 203776  }
 0x594   : > { %v1368_v34 = vpop.permute.xlu0 %1367  ;;  %v1376_v36 = vld [vmem:[#allocation2 + $0x18] sm:$0xff] }
 0x595   : > { %1370 = vst.msk [vmem:[#allocation2 + $0x48] sm:$0xf0] %vm1345_vm3, %v1368_v34  ;;  %v1380_v37 = vpack.c.bf16 %v1376_v36, %v1375_v35  ;;  %vm1583_vm3 = vcmask 7168   ;;  %v4998_v36 = vshrl.u32 %v975_v1, 7 }
 0x597   : > { %3256 = vmatpush3.bf16.msra.mxu0 %v1380_v37  ;;  %v5003_v37 = vsub.s32 2, %v4998_v36 }
 0x598   : > { %3257 = vmatprep.subr.bf16.mxu0 %v4303_v25  ;;  %v1377_v39 = vld [vmem:[#allocation2 + $0x30] sm:$0xff] }
 0x59a   : > { %v1379_v38 = vld [vmem:[#allocation2 + $0x60] sm:$0xf] }
 0x59b   : > { %v1382_v42 = vpack.c.bf16 %v1379_v38, %v1379_v38  ;;  %v5005_v38 = vld [vmem:[#allocation18] sm:$0xf] }
 0x59c   : > { %v1378_v40 = vld [vmem:[#allocation2 + $0x48] sm:$0xff]  ;;  %v1547_v43 = vrot.slane %v5005_v38, %v5003_v37 }
 0x59d   : > { %v1381_v41 = vpack.c.bf16 %v1378_v40, %v1377_v39  ;;  %v1396_v45 = vsel %vm1394_vm5, %v1382_v42, 0  ;;  %v1300_v39 = vsub.s32 3, %v4998_v36 }
 0x59f   : > { %3258 = vmatpush3.bf16.msra.mxu0 %v1381_v41  ;;  %v1551_v44 = vrot.slane %v5005_v38, %v1300_v39 }
 0x5a0   : > { %3259 = vmatprep.subr.bf16.mxu0 %v4303_v25 }
 0x5a3   : > { %3260 = vmatpush3.bf16.msra.mxu0 %v1396_v45  ;;  %v5017_v45 = vsub.s32 1, %v4998_v36 }
 0x5a4   : > { %3424 = vmatprep.subr.bf16.mxu0 %v4310_v48 }
 0x5a5   : > { %v1388_v52 = vpop.permute.xlu0 %1387 }
 0x5a6   : > { %3262 = vmatmul.mubr.msk.bf16.vlgmr.msra.gmra.mrb[4].mxu0 %vm1390_vm7, %v1383_v46  ;;  %v1564_v46 = vrot.slane %v5005_v38, %v5017_v45 }
 0x5a7   : > { %3426 = vmatpush3.bf16.msra.mxu0 %v3425_v47  ;;  %3273 = vmatprep.mubr.msk.f32.mxu0 %vm4309_vm1, %v4303_v25  ;;  %v1724_v47 = vld [vmem:[%s5370_s11] sm:$0xff]  ;;  %s4321_s11 = smov 92  }
 0x5a8   : > { %3427 = vmatprep.subr.bf16.mxu0 %v4310_v48 }
 0x5ab   : > { %3430 = vmatpush3.bf16.msk.msra.mxu0 %vm3429_vm11, %v3428_v51  ;;  %vm1612_vm11 = vcmask 261120  }
 0x5ac   : > { %3276 = vmatprep.subr.bf16.mxu0 %v4303_v25 }
 0x679   : > { %v1432_v53 = vpop.f32.mrb[4].mxu0 }
 0x67a   : > { %v1433_v54 = vadd.f32 %v1432_v53, %v1388_v52  ;;  %v3263_v55 = vpop.f32.mrb[5].mxu0 }
 0x67b   : > { %v1435_v56 = vpop.f32.mrb[6].mxu0 }
 0x67c   : > { %vm1438_vm12 = vcmp.ge.f32.partialorder %v1433_v54, 0.0  ;;  %v1439_v57 = vmul.f32 0.05, %v1433_v54  ;;  %v3264_v58 = vpop.f32.mrb[7].mxu0 }
 0x67e   : > { %v1440_v2 = vsel %vm1438_vm12, %v1433_v54, %v1439_v57 }
 0x67f   : > { %3274 = vmatmul.mubr.msk.f32.vlgmr.msra.gmra.mrb[8].mxu0 %vm1445_vm0, %v1440_v2 }
 0x680   : > { %3280 = vmatprep.mubr.msk.bf16.mxu0 %vm4309_vm1, %v4303_v25 }
 0x752   : > { %v4968_v59 = vpop.f32.mrb[8].mxu0 }
 0x753   : > { %1524 = vrot.lane.b32.xlu1 %v4968_v59, %s4311_s12  ;;  %v3275_v60 = vpop.f32.mrb[9].mxu0 }
 0x7c5   : > { %v1525_v61 = vpop.permute.xlu1 %1524 }
 0x7c6   : > { %v1527_v62 = vmax.f32 %v4968_v59, %v1525_v61 }
 0x7c8   : > { %1529 = vrot.lane.b32.xlu0 %v1527_v62, %s4304_s25 }
 0x83a   : > { %v1530_v0 = vpop.permute.xlu0 %1529 }
 0x83b   : > { %v4974_v3 = vmax.f32 %v1527_v62, %v1530_v0 }
 0x83d   : > { %1589 = vrot.lane.b32.xlu0 %v4974_v3, %s4293_s22  ;;  %1585 = vrot.lane.b32.xlu1 %v4974_v3, %s4291_s5  ;;  %1584 = vst.msk [vmem:[#allocation2] sm:$0xff] %vm1583_vm3, %v4974_v3 }
 0x841   : > { %1593 = vrot.lane.b32.xlu1 %v4974_v3, %s4312_s0 }
 0x844   : > { %v1597_v8 = vld [vmem:[#allocation2] sm:$0xff] }
 0x8af   : > { %v1590_v5 = vpop.permute.xlu0 %1589  ;;  %v1586_v6 = vpop.permute.xlu1 %1585 }
 0x8b0   : > { %1592 = vst.msk [vmem:[#allocation2 + $0x30] sm:$0xff] %vm1583_vm3, %v1590_v5  ;;  %1588 = vst.msk [vmem:[#allocation2 + $0x18] sm:$0xff] %vm1583_vm3, %v1586_v6 }
 0x8b3   : > { %v1594_v7 = vpop.permute.xlu1 %1593 }
 0x8b4   : > { %1596 = vst.msk [vmem:[#allocation2 + $0x48] sm:$0xff] %vm1583_vm3, %v1594_v7  ;;  %vm1682_vm3 = vcmask 39936  }
 0x8b7   : > { %v1598_v9 = vld [vmem:[#allocation2 + $0x18] sm:$0xff]  ;;  %v1599_v11 = vld [vmem:[#allocation2 + $0x30] sm:$0xff] }
 0x8b8   : > { %v1601_v10 = vpack.c.bf16 %v1598_v9, %v1597_v8  ;;  %v1723_v9 = vld [vmem:[#allocation9] sm:$0xf] }
 0x8ba   : > { %3277 = vmatpush3.bf16.msra.mxu0 %v1601_v10  ;;  %v1777_v10 = vld [vmem:[#allocation21] sm:$0x1f] }
 0x8bb   : > { %3278 = vmatprep.subr.bf16.mxu0 %v4303_v25  ;;  %v1600_v12 = vld [vmem:[#allocation2 + $0x48] sm:$0xff] }
 0x8bc   : > { %v1602_v15 = vpack.c.bf16 %v1600_v12, %v1599_v11 }
 0x8be   : > { %3279 = vmatpush3.bf16.msra.mxu0 %v1602_v15 }
 0x8bf   : > { %3284 = vmatprep.subr.bf16.mxu0 %v4303_v25 }
 0x8c1   : > { %3281 = vmatmul.mubr.msk.bf16.vlgmr.msra.gmra.mrb[12].mxu0 %vm1612_vm11, %v3773_v16 }
 0x8c2   : > { %3292 = vmatprep.mubr.msk.bf16.mxu0 %vm4309_vm1, %v4303_v25 }
 0x994   : > { %v1650_v18 = vpop.f32.mrb[12].mxu0 }
 0x995   : > { %v1651_v20 = vadd.f32 %v1650_v18, %v1605_v17  ;;  %v3282_v21 = vpop.f32.mrb[13].mxu0 }
 0x996   : > { %v1653_v22 = vpop.f32.mrb[14].mxu0 }
 0x997   : > { %v1659_v24 = vmul.f32 0.05, %v1651_v20  ;;  %v1654_v26 = vadd.f32 %v1653_v22, %v1606_v19  ;;  %v3283_v27 = vpop.f32.mrb[15].mxu0  ;;  %vm1657_vm12 = vcmp.ge.f32.partialorder %v1651_v20, 0.0 }
 0x999   : > { %v1660_v28 = vmul.f32 0.05, %v1654_v26  ;;  %v1661_v29 = vsel %vm1657_vm12, %v1651_v20, %v1659_v24  ;;  %vm1658_vm0 = vcmp.ge.f32.partialorder %v1654_v26, 0.0  ;;  %vm1730_vm12 = vcmask 523264  }
 0x99a   : > { %1666 = vperm.xlu0 %3771, %v1661_v29  }
 0x99b   : > { %v1662_v30 = vsel %vm1658_vm0, %v1654_v26, %v1660_v28  ;;  %v1854_v26 = vld [vmem:[#allocation23] sm:$0xf]  ;;  %v5045_v28 = vsub.s32 0, %v4998_v36 }
 0x99c   : > { %1671 = vperm.xlu1 %3772, %v1662_v30  }
 0x99d   : > { %v1577_v29 = vrot.slane %v5005_v38, %v5045_v28 }
 0xa19   : > { %v1667_v32 = vpop.permute.xlu0 %1666 }
 0xa1a   : > { %v1680_v33 = vmul.f32 %v3181_v31, %v1667_v32 }
 0xa1b   : > { %v1672_v34 = vpop.permute.xlu1 %1671 }
 0xa1c   : > { %1683 = vst.msk [vmem:[#allocation2] sm:$0xff] %vm1682_vm3, %v1680_v33  ;;  %v1681_v35 = vmul.f32 %v3181_v31, %v1672_v34  ;;  %1687 = vrot.lane.b32.xlu0 %v1680_v33, %s4291_s5  ;;  %v3187_v34 = vld [vmem:[#allocation24] ss:$0 sm:$0xff] }
 0xa1e   : > { %1684 = vst.msk [vmem:[#allocation2 + $0x18] sm:$0xff] %vm1682_vm3, %v1681_v35  ;;  %1689 = vrot.lane.b32.xlu1 %v1681_v35, %s4291_s5 }
 0xa20   : > { %1695 = vrot.lane.b32.xlu0 %v1680_v33, %s4312_s0 }
 0xa22   : > { %1697 = vrot.lane.b32.xlu1 %v1681_v35, %s4312_s0  ;;  %s4317_s0 = smov 108  }
 0xa23   : > { %v1711_v40 = vld [vmem:[#allocation2] sm:$0xff] }
 0xa24   : > { %1703 = vrot.lane.b32.xlu0 %v1680_v33, %s4311_s12 }
 0xa25   : > { %v1712_v41 = vld [vmem:[#allocation2 + $0x18] sm:$0xff] }
 0xa26   : > { %1705 = vrot.lane.b32.xlu1 %v1681_v35, %s4311_s12  ;;  %v1719_v42 = vpack.c.bf16 %v1712_v41, %v1711_v40 }
 0xa28   : > { %1540 = vrot.lane.b32.xlu0 %v4974_v3, %s4313_s4  ;;  %3285 = vmatpush3.bf16.msra.mxu0 %v1719_v42 }
 0xa29   : > { %3286 = vmatprep.subr.bf16.mxu0 %v4303_v25 }
 0xa2a   : > { %1553 = vrot.lane.b32.xlu1 %v1547_v43, %s4313_s4 }
 0xa2c   : > { %1557 = vrot.lane.b32.xlu0 %v1551_v44, %s4313_s4 }
 0xa2e   : > { %1536 = vrot.lane.b32.xlu1 %v4974_v3, %s4314_s8 }
 0xa30   : > { %1566 = vrot.lane.b32.xlu0 %v1564_v46, %s4314_s8 }
 0xa34   : > { %1727 = vperm.xlu0 %3771, %v1724_v47  }
 0xa8e   : > { %v1688_v49 = vpop.permute.xlu0 %1687 }
 0xa8f   : > { %1693 = vst.msk [vmem:[#allocation2 + $0x30] sm:$0xff] %vm1682_vm3, %v1688_v49 }
 0xa90   : > { %v1690_v50 = vpop.permute.xlu1 %1689 }
 0xa91   : > { %1694 = vst.msk [vmem:[#allocation2 + $0x48] sm:$0xff] %vm1682_vm3, %v1690_v50 }
 0xa92   : > { %v1696_v51 = vpop.permute.xlu0 %1695 }
 0xa93   : > { %1701 = vst.msk [vmem:[#allocation2 + $0x60] sm:$0xff] %vm1682_vm3, %v1696_v51 }
 0xa94   : > { %v1698_v52 = vpop.permute.xlu1 %1697 }
 0xa95   : > { %1702 = vst.msk [vmem:[#allocation2 + $0x78] sm:$0xff] %vm1682_vm3, %v1698_v52 }
 0xa96   : > { %v1704_v53 = vpop.permute.xlu0 %1703  ;;  %v1713_v55 = vld [vmem:[#allocation2 + $0x30] sm:$0xff] }
 0xa97   : > { %1709 = vst.msk [vmem:[#allocation2 + $0x90] sm:$0xff] %vm1682_vm3, %v1704_v53 }
 0xa98   : > { %v1706_v54 = vpop.permute.xlu1 %1705  ;;  %v1714_v56 = vld [vmem:[#allocation2 + $0x48] sm:$0xff] }
 0xa99   : > { %1710 = vst.msk [vmem:[#allocation2 + $0xa8] sm:$0xff] %vm1682_vm3, %v1706_v54  ;;  %v1720_v57 = vpack.c.bf16 %v1714_v56, %v1713_v55 }
 0xa9a   : > { %v1541_v58 = vpop.permute.xlu0 %1540  ;;  %v1715_v2 = vld [vmem:[#allocation2 + $0x60] sm:$0xff] }
 0xa9b   : > { %3287 = vmatpush3.bf16.msra.mxu0 %v1720_v57  ;;  %vm1543_vm11 = vcmp.eq.f32.partialorder %v4968_v59, %v1541_v58 }
 0xa9c   : > { %3288 = vmatprep.subr.bf16.mxu0 %v4303_v25  ;;  %v1716_v60 = vld [vmem:[#allocation2 + $0x78] sm:$0xff]  ;;  %v1554_v62 = vpop.permute.xlu1 %1553 }
 0xa9d   : > { %v1721_v61 = vpack.c.bf16 %v1716_v60, %v1715_v2 }
 0xa9e   : > { %v1558_v0 = vpop.permute.xlu0 %1557  ;;  %v1717_v6 = vld [vmem:[#allocation2 + $0x90] sm:$0xff] }
 0xa9f   : > { %3289 = vmatpush3.bf16.msra.mxu0 %v1721_v61  ;;  %v1560_v5 = vsel %vm1543_vm11, %v1554_v62, %v1558_v0 }
 0xaa0   : > { %1570 = vrot.lane.b32.xlu1 %v1560_v5, %s4311_s12  ;;  %3290 = vmatprep.subr.bf16.mxu0 %v4303_v25  ;;  %v1718_v7 = vld [vmem:[#allocation2 + $0xa8] sm:$0xff]  ;;  %v1537_v11 = vpop.permute.xlu1 %1536 }
 0xaa1   : > { %v1722_v8 = vpack.c.bf16 %v1718_v7, %v1717_v6  ;;  %vm1539_vm0 = vcmp.eq.f32.partialorder %v4968_v59, %v1537_v11 }
 0xaa2   : > { %v1567_v12 = vpop.permute.xlu0 %1566 }
 0xaa3   : > { %3291 = vmatpush3.bf16.msra.mxu0 %v1722_v8 }
 0xaa4   : > { %3296 = vmatprep.subr.mxu0 %v4303_v25 }
 0xaa6   : > { %3293 = vmatmul.mubr.msk.bf16.vlgmr.msra.gmra.mrb[16].mxu0 %vm1730_vm12, %v1723_v9  ;;  %vm1855_vm12 = vcmask 31744  }
 0xaa7   : > { %3298 = vmatprep.mubr.msk.f32.mxu0 %vm4309_vm1, %v4303_v25  ;;  %3297 = vmatpush3.msk.msra.mxu0 %vm1072_vm10, %v1777_v10 }
 0xaa8   : > { %3301 = vmatprep.subr.mxu0 %v4303_v25 }
 0xab3   : > { %v1728_v17 = vpop.permute.xlu0 %1727 }
 0xb12   : > { %v1571_v15 = vpop.permute.xlu1 %1570 }
 0xb13   : > { %v1573_v16 = vsel %vm1539_vm0, %v1567_v12, %v1571_v15  ;;  %vm1534_vm0 = vcmp.eq.f32.partialorder %v4968_v59, %v4974_v3  ;;  %v5062_v59 = vld [vmem:[#allocation15] sm:$0xf]  ;;  %v2051_v15 = vld [vmem:[#allocation26 + $0x20] sm:$0xff] }
 0xb14   : > { %1579 = vrot.lane.b32.xlu1 %v1573_v16, %s4311_s12  ;;  %s4316_s12 = smov 117   ;;  %v1297_v3 = vrot.slane %v5062_v59, %v5003_v37  ;;  %v1301_v38 = vrot.slane %v5062_v59, %v1300_v39  ;;  %v1315_v10 = vrot.slane %v5062_v59, %v5017_v45  ;;  %v2048_v12 = vld [vmem:[#allocation26 + $0x8] sm:$0xff]  ;;  %v2047_v16 = vld [vmem:[#allocation26] sm:$0xff] }
 0xb79   : > { %v1768_v18 = vpop.f32.mrb[16].mxu0 }
 0xb7a   : > { %v1769_v19 = vadd.f32 %v1768_v18, %v1728_v17  ;;  %v3294_v20 = vpop.f32.mrb[17].mxu0  ;;  %v3431_v18 = vpack.c.bf16 %v2051_v15, %v2048_v12 }
 0xb7b   : > { %v1771_v21 = vpop.f32.mrb[18].mxu0  ;;  %v2054_v20 = vld [vmem:[#allocation26 + $0x38] sm:$0xff] }
 0xb7c   : > { %vm1774_vm11 = vcmp.ge.f32.partialorder %v1769_v19, 0.0  ;;  %v1775_v22 = vmul.f32 0.05, %v1769_v19  ;;  %v3295_v24 = vpop.f32.mrb[19].mxu0  ;;  %v2057_v21 = vld [vmem:[#allocation26 + $0x50] sm:$0xff] }
 0xb7e   : > { %v1776_v27 = vsel %vm1774_vm11, %v1769_v19, %v1775_v22  ;;  %v2050_v19 = vld [vmem:[#allocation26 + $0x18] sm:$0xff]  ;;  %v1990_v22 = vld [vmem:[#allocation11] sm:$0x3] }
 0xb7f   : > { %3299 = vmatmul.mubr.msk.f32.vlgmr.msra.gmra.mrb[10].mxu0 %vm1682_vm3, %v1776_v27  ;;  %vm1941_vm3 = vcmask 498688   ;;  %v3433_v24 = vpack.c.bf16 %v2050_v19, %v2047_v16  ;;  %v2053_v27 = vld [vmem:[#allocation26 + $0x30] sm:$0xff] }
 0xb80   : > { %3302 = vmatpush3.msk.msra.mxu0 %vm1071_vm9, %v1854_v26  ;;  %3303 = vmatprep.mubr.msk.f32.mxu0 %vm4309_vm1, %v4303_v25  ;;  %v3435_v26 = vpack.c.bf16 %v2057_v21, %v2054_v20 }
 0xb81   : > { %3306 = vmatprep.subr.bf16.mxu0 %v4303_v25 }
 0xb86   : > { %v1580_v30 = vpop.permute.xlu1 %1579 }
 0xb87   : > { %v1582_v31 = vsel %vm1534_vm0, %v1577_v29, %v1580_v30  ;;  %v2056_v29 = vld [vmem:[#allocation26 + $0x48] sm:$0xff] }
 0xb88   : > { %3304 = vmatmul.mubr.msk.f32.vlgmr.msra.gmra.mrb[20].mxu0 %vm1855_vm12, %v1582_v31  ;;  %v2060_v30 = vld [vmem:[#allocation26 + $0x68] sm:$0xff]  ;;  %v2063_v31 = vld [vmem:[#allocation26 + $0x80] sm:$0xff] }
 0xb89   : > { %3316 = vmatprep.mubr.msk.bf16.mxu0 %vm4309_vm1, %v4303_v25 }
 0xc52   : > { %v1850_v32 = vpop.f32.mrb[10].mxu0 }
 0xc53   : > { %v3300_v33 = vpop.f32.mrb[11].mxu0 }
 0xc54   : > { %v3439_v33 = vpack.c.bf16 %v2063_v31, %v2060_v30 }
 0xc5b   : > { %v1928_v35 = vpop.f32.mrb[20].mxu0 }
 0xc5c   : > { %vm1939_vm11 = vcmp.eq.f32.partialorder %v1928_v35, %v3187_v34  ;;  %v3305_v40 = vpop.f32.mrb[21].mxu0  ;;  %v2059_v34 = vld [vmem:[#allocation26 + $0x60] sm:$0xff]  ;;  %v2062_v35 = vld [vmem:[#allocation26 + $0x78] sm:$0xff] }
 0xc5d   : > { %v1940_v41 = vsel %vm1939_vm11, %v1850_v32, 0.0  ;;  %vm1997_vm11 = vcmask 588800   ;;  %v3437_v32 = vpack.c.bf16 %v2056_v29, %v2053_v27  ;;  %v3441_v40 = vpack.c.bf16 %v2062_v35, %v2059_v34  ;;  %v2055_v27 = vld [vmem:[#allocation26 + $0x40] sm:$0xff]  ;;  %v2058_v29 = vld [vmem:[#allocation26 + $0x58] sm:$0xff]  ;;  %v2226_v35 = vld [vmem:[%s5371_s9 + $0x10] sm:$0xff] }
 0xc5e   : > { %1942 = vst.msk [vmem:[#allocation2] sm:$0xff] %vm1941_vm3, %v1940_v41  ;;  %1948 = vrot.lane.b32.xlu1 %v1940_v41, %s4293_s22  ;;  %1944 = vrot.lane.b32.xlu0 %v1940_v41, %s4291_s5  ;;  %v3453_v31 = vpack.c.bf16 %v2058_v29, %v2055_v27  ;;  %v2694_v27 = vld [vmem:[#allocation27 + $0x68] sm:$0xff]  ;;  %v2696_v29 = vld [vmem:[#allocation27 + $0x78] sm:$0xff] }
 0xc62   : > { %1956 = vrot.lane.b32.xlu1 %v1940_v41, %s4315_s13  ;;  %1952 = vrot.lane.b32.xlu0 %v1940_v41, %s4307_s1  ;;  %s4320_s1 = smov 49   ;;  %s4322_s13 = smov 91  }
 0xc65   : > { %v1976_v39 = vld [vmem:[#allocation2] sm:$0xff] }
 0xc66   : > { %1964 = vrot.lane.b32.xlu1 %v1940_v41, %s4295_s2  ;;  %1960 = vrot.lane.b32.xlu0 %v1940_v41, %s4316_s12  ;;  %s4323_s12 = smov 90  }
 0xc6a   : > { %1972 = vrot.lane.b32.xlu1 %v1940_v41, %s4317_s0  ;;  %1968 = vrot.lane.b32.xlu0 %v1940_v41, %s4318_s16  ;;  %v2066_v41 = vld [vmem:[#allocation26 + $0x98] sm:$0xff] }
 0xc6e   : > { %1303 = vrot.lane.b32.xlu1 %v1297_v3, %s4319_s14  ;;  %1289 = vrot.lane.b32.xlu0 %v4926_v23, %s4319_s14  ;;  %v2069_v3 = vld [vmem:[#allocation26 + $0xb0] sm:$0x1f] }
 0xc72   : > { %1285 = vrot.lane.b32.xlu1 %v4926_v23, %s4320_s1  ;;  %1307 = vrot.lane.b32.xlu0 %v1301_v38, %s4319_s14  ;;  %v3443_v38 = vpack.c.bf16 %v2069_v3, %v2066_v41  ;;  %v1333_v41 = vrot.slane %v5062_v59, %v5045_v28  ;;  %v2067_v3 = vld [vmem:[#allocation26 + $0xa0] sm:$0xff] }
 0xcd0   : > { %v1949_v42 = vpop.permute.xlu1 %1948  ;;  %v1945_v43 = vpop.permute.xlu0 %1944 }
 0xcd1   : > { %1951 = vst.msk [vmem:[#allocation2 + $0x30] sm:$0xff] %vm1941_vm3, %v1949_v42  ;;  %1947 = vst.msk [vmem:[#allocation2 + $0x18] sm:$0xff] %vm1941_vm3, %v1945_v43  ;;  %v2065_v42 = vld [vmem:[#allocation26 + $0x90] sm:$0xff]  ;;  %v2068_v43 = vld [vmem:[#allocation26 + $0xa8] sm:$0x1f] }
 0xcd4   : > { %v1957_v44 = vpop.permute.xlu1 %1956  ;;  %v1953_v46 = vpop.permute.xlu0 %1952 }
 0xcd5   : > { %1959 = vst.msk [vmem:[#allocation2 + $0x60] sm:$0xff] %vm1941_vm3, %v1957_v44  ;;  %1955 = vst.msk [vmem:[#allocation2 + $0x48] sm:$0xff] %vm1941_vm3, %v1953_v46  ;;  %v2225_v44 = vld [vmem:[%s5371_s9 + $0x8] sm:$0xff]  ;;  %v2244_v46 = vld [vmem:[%s5371_s9 + $0xa0] sm:$0x1] }
 0xcd8   : > { %v1965_v47 = vpop.permute.xlu1 %1964  ;;  %v1961_v49 = vpop.permute.xlu0 %1960  ;;  %v1977_v50 = vld [vmem:[#allocation2 + $0x18] sm:$0xff]  ;;  %v1978_v54 = vld [vmem:[#allocation2 + $0x30] sm:$0xff] }
 0xcd9   : > { %1967 = vst.msk [vmem:[#allocation2 + $0x90] sm:$0xff] %vm1941_vm3, %v1965_v47  ;;  %1963 = vst.msk [vmem:[#allocation2 + $0x78] sm:$0xff] %vm1941_vm3, %v1961_v49  ;;  %v1985_v51 = vpack.c.bf16 %v1977_v50, %v1976_v39  ;;  %v3446_v47 = vpack.c.bf16 %v2068_v43, %v2065_v42  ;;  %v2228_v49 = vld [vmem:[%s5371_s9 + $0x20] sm:$0xff] }
 0xcda   : > { %v2224_v39 = vld [vmem:[%s5371_s9] sm:$0xff]  ;;  %v3462_v50 = vpack.c.bf16 %v2228_v49, %v2225_v44  ;;  %v2235_v49 = vld [vmem:[%s5371_s9 + $0x58] sm:$0xff] }
 0xcdb   : > { %3307 = vmatpush3.bf16.msra.mxu0 %v1985_v51  ;;  %v2227_v51 = vld [vmem:[%s5371_s9 + $0x18] sm:$0xff] }
 0xcdc   : > { %v1973_v52 = vpop.permute.xlu1 %1972  ;;  %v1969_v53 = vpop.permute.xlu0 %1968  ;;  %3308 = vmatprep.subr.bf16.mxu0 %v4303_v25  ;;  %v1979_v55 = vld [vmem:[#allocation2 + $0x48] sm:$0xff]  ;;  %v1980_v58 = vld [vmem:[#allocation2 + $0x60] sm:$0xff]  ;;  %3463 = vmatprep.subr.bf16.mxu1 %v3462_v50 }
 0xcdd   : > { %1975 = vst.msk [vmem:[#allocation2 + $0xc0] sm:$0xff] %vm1941_vm3, %v1973_v52  ;;  %1971 = vst.msk [vmem:[#allocation2 + $0xa8] sm:$0xff] %vm1941_vm3, %v1969_v53  ;;  %v1986_v56 = vpack.c.bf16 %v1979_v55, %v1978_v54  ;;  %v3464_v52 = vpack.c.bf16 %v2227_v51, %v2224_v39  ;;  %v2231_v53 = vld [vmem:[%s5371_s9 + $0x38] sm:$0xff]  ;;  %v2234_v54 = vld [vmem:[%s5371_s9 + $0x50] sm:$0xff] }
 0xcde   : > { %v2230_v55 = vld [vmem:[%s5371_s9 + $0x30] sm:$0xff] }
 0xcdf   : > { %3309 = vmatpush3.bf16.msra.mxu0 %v1986_v56  ;;  %3465 = vmatpush1.bf16.msra.mxu1 %v3464_v52  ;;  %v2233_v56 = vld [vmem:[%s5371_s9 + $0x48] sm:$0xff] }
 0xce0   : > { %v1290_v57 = vpop.permute.xlu0 %1289  ;;  %3310 = vmatprep.subr.bf16.mxu0 %v4303_v25  ;;  %v1981_v2 = vld [vmem:[#allocation2 + $0x78] sm:$0xff]  ;;  %v1304_v61 = vpop.permute.xlu1 %1303  ;;  %v1982_v0 = vld [vmem:[#allocation2 + $0x90] sm:$0xff] }
 0xce1   : > { %v1987_v60 = vpack.c.bf16 %v1981_v2, %v1980_v58  ;;  %vm1292_vm12 = vcmp.eq.f32.partialorder %v4914_v13, %v1290_v57  ;;  %vm1293_vm0 = vcmp.eq.f32.partialorder %v4916_v14, %v1290_v57  ;;  %v1991_v14 = vld [vmem:[%s5280_s10] sm:$0xf]  ;;  %v3466_v57 = vpack.c.bf16 %v2234_v54, %v2231_v53  ;;  %v2237_v2 = vld [vmem:[%s5371_s9 + $0x68] sm:$0xff] }
 0xce2   : > { %v3468_v58 = vpack.c.bf16 %v2233_v56, %v2230_v55  ;;  %v2399_v53 = vld [vmem:[%s5374_s23] sm:$0x7] }
 0xce3   : > { %3311 = vmatpush3.bf16.msra.mxu0 %v1987_v60  ;;  %3467 = vmatprep.subr.bf16.mxu1 %v3466_v57  ;;  %v2240_v60 = vld [vmem:[%s5371_s9 + $0x80] sm:$0xff] }
 0xce4   : > { %v1308_v62 = vpop.permute.xlu0 %1307  ;;  %3312 = vmatprep.subr.bf16.mxu0 %v4303_v25  ;;  %v1983_v5 = vld [vmem:[#allocation2 + $0xa8] sm:$0xff]  ;;  %v1984_v6 = vld [vmem:[#allocation2 + $0xc0] sm:$0xff]  ;;  %3469 = vmatpush1.bf16.msra.mxu1 %v3468_v58 }
 0xce5   : > { %v1311_v7 = vsel %vm1293_vm0, %v1304_v61, %v1308_v62  ;;  %v1310_v8 = vsel %vm1292_vm12, %v1304_v61, %v1308_v62  ;;  %v1988_v9 = vpack.c.bf16 %v1983_v5, %v1982_v0  ;;  %v1989_v11 = vpack.c.bf16 %v1984_v6, %v1984_v6  ;;  %v2236_v61 = vld [vmem:[%s5371_s9 + $0x60] sm:$0xff]  ;;  %v2239_v62 = vld [vmem:[%s5371_s9 + $0x78] sm:$0xff] }
 0xce6   : > { %1324 = vrot.lane.b32.xlu1 %v1311_v7, %s4301_s6  ;;  %1322 = vrot.lane.b32.xlu0 %v1310_v8, %s4301_s6  ;;  %v3470_v0 = vpack.c.bf16 %v2240_v60, %v2237_v2  ;;  %v3472_v5 = vpack.c.bf16 %v2239_v62, %v2236_v61  ;;  %v2243_v6 = vld [vmem:[%s5371_s9 + $0x98] sm:$0x1]  ;;  %v2242_v7 = vld [vmem:[%s5371_s9 + $0x90] sm:$0x1]  ;;  %v1286_v8 = vpop.permute.xlu1 %1285  ;;  %vm2245_vm0 = vcmask 400384  }
 0xce7   : > { %3313 = vmatpush3.bf16.msra.mxu0 %v1988_v9  ;;  %v2002_v17 = vsel %vm1071_vm9, %v1989_v11, 0  ;;  %vm5103_vm9 = vmpackc.low %vm1072_vm10, %vm4300_vm13  ;;  %vm1326_vm10 = vcmask 646144   ;;  %vm1288_vm13 = vcmp.eq.f32.partialorder %v4914_v13, %v1286_v8  ;;  %v2684_v8 = vld [vmem:[#allocation27 + $0x18] sm:$0xff] }
 0xce8   : > { %3314 = vmatprep.subr.bf16.mxu0 %v4303_v25  ;;  %3471 = vmatprep.subr.bf16.mxu1 %v3470_v0 }
 0xce9   : > { %3473 = vmatpush1.bf16.msra.mxu1 %v3472_v5 }
 0xcea   : > { %1994 = vperm.xlu1 %3772, %v1991_v14   ;;  %1317 = vrot.lane.b32.xlu0 %v1315_v10, %s4320_s1 }
 0xceb   : > { %3315 = vmatpush3.bf16.msra.mxu0 %v2002_v17  ;;  %3194 = vmatprep.subr.msk.mxu1 %vm1449_vm8, %v2243_v6  ;;  %v2049_v17 = vld [vmem:[#allocation26 + $0x10] sm:$0xff] }
 0xcec   : > { %3432 = vmatprep.subr.bf16.mxu0 %v3431_v18  ;;  %v2052_v18 = vld [vmem:[#allocation26 + $0x28] sm:$0xff]  ;;  %v2575_v6 = vld [vmem:[#allocation3] sm:$0x1] }
 0xced   : > { %3195 = vmatpush1.msk.msra.mxu1 %vm1449_vm8, %v2242_v7  ;;  %v2682_v7 = vld [vmem:[#allocation27 + $0x8] sm:$0xff] }
 0xcee   : > { %3317 = vmatmul.mubr.msk.bf16.vlgmr.msra.gmra.mrb[24].mxu0 %vm1997_vm11, %v1990_v22  ;;  %3474 = vmatprep.subr.bf16.mxu1 %v4310_v48  ;;  %vm1283_vm11 = vcmp.eq.f32.partialorder %v4914_v13, %v4926_v23  ;;  %v2238_v13 = vld [vmem:[%s5371_s9 + $0x70] sm:$0xff]  ;;  %v2241_v23 = vld [vmem:[%s5371_s9 + $0x88] sm:$0xff] }
 0xcef   : > { %3434 = vmatpush1.bf16.msra.mxu0 %v3433_v24  ;;  %2147 = vmatprep.mubr.f32.mxu0 %v4303_v25  ;;  %v3450_v24 = vpack.c.bf16 %v2052_v18, %v2049_v17  ;;  %v3481_v50 = vpack.c.bf16 %v2241_v23, %v2238_v13  ;;  %v2685_v17 = vld [vmem:[#allocation27 + $0x20] sm:$0xff]  ;;  %v2687_v18 = vld [vmem:[#allocation27 + $0x30] sm:$0xff]  ;;  %v2708_v13 = vld [vmem:[#allocation27 + $0xd8] sm:$0xff] }
 0xcf0   : > { %3436 = vmatprep.subr.bf16.mxu0 %v3435_v26 }
 0xcf3   : > { %3438 = vmatpush1.bf16.msra.mxu0 %v3437_v32  ;;  %v2061_v32 = vld [vmem:[#allocation26 + $0x70] sm:$0xff] }
 0xcf4   : > { %3440 = vmatprep.subr.bf16.mxu0 %v3439_v33  ;;  %v2064_v33 = vld [vmem:[#allocation26 + $0x88] sm:$0xff] }
 0xcf5   : > { %v3456_v34 = vpack.c.bf16 %v2064_v33, %v2061_v32  ;;  %v2693_v32 = vld [vmem:[#allocation27 + $0x60] sm:$0xff]  ;;  %v2695_v33 = vld [vmem:[#allocation27 + $0x70] sm:$0xff] }
 0xcf7   : > { %3442 = vmatpush1.bf16.msra.mxu0 %v3441_v40  ;;  %v2229_v40 = vld [vmem:[%s5371_s9 + $0x28] sm:$0xff] }
 0xcf8   : > { %3445 = vmatprep.subr.msk.bf16.mxu0 %vm5103_vm9, %v3443_v38  ;;  %v2070_v38 = vld [vmem:[#allocation26 + $0xb8] sm:$0x1f]  ;;  %v3475_v42 = vpack.c.bf16 %v2229_v40, %v2226_v35  ;;  %v3497_v40 = vpack.c.bf16 %v2695_v33, %v2693_v32  ;;  %v2733_v33 = vld [vmem:[#allocation27 + $0x1a0] sm:$0xff] }
 0xcf9   : > { %v3459_v44 = vpack.c.bf16 %v2070_v38, %v2067_v3  ;;  %v2700_v35 = vld [vmem:[#allocation27 + $0x98] sm:$0xff]  ;;  %v2697_v3 = vld [vmem:[#allocation27 + $0x80] sm:$0xff]  ;;  %v2699_v38 = vld [vmem:[#allocation27 + $0x90] sm:$0xff] }
 0xcfb   : > { %3448 = vmatpush1.bf16.msk.msra.mxu0 %vm5103_vm9, %v3446_v47  ;;  %v2232_v47 = vld [vmem:[%s5371_s9 + $0x40] sm:$0xff] }
 0xcfc   : > { %3449 = vmatprep.subr.bf16.mxu0 %v4310_v48  ;;  %v3478_v59 = vpack.c.bf16 %v2235_v49, %v2232_v47  ;;  %v2701_v49 = vld [vmem:[#allocation27 + $0xa0] sm:$0xff] }
 0xd58   : > { %v1323_v9 = vpop.permute.xlu0 %1322  ;;  %v1325_v10 = vpop.permute.xlu1 %1324 }
 0xd59   : > { %v1327_v11 = vsel %vm1326_vm10, %v1323_v9, %v1325_v10  ;;  %v2681_v9 = vld [vmem:[#allocation27] sm:$0xff]  ;;  %v3483_v10 = vpack.c.bf16 %v2684_v8, %v2682_v7  ;;  %v2722_v7 = vld [vmem:[#allocation27 + $0x148] sm:$0xff]  ;;  %v2724_v8 = vld [vmem:[#allocation27 + $0x158] sm:$0xff] }
 0xd5c   : > { %v1318_v14 = vpop.permute.xlu0 %1317 }
 0xd5d   : > { %v1329_v12 = vsel %vm1288_vm13, %v1318_v14, %v1327_v11  ;;  %v2683_v11 = vld [vmem:[#allocation27 + $0x10] sm:$0xff]  ;;  %v2686_v14 = vld [vmem:[#allocation27 + $0x28] sm:$0xff]  ;;  %vm2481_vm13 = vcmask 891904  }
 0xd5e   : > { %1335 = vrot.lane.b32.xlu0 %v1329_v12, %s4301_s6  ;;  %v2688_v12 = vld [vmem:[#allocation27 + $0x38] sm:$0xff] }
 0xd69   : > { %v1995_v15 = vpop.permute.xlu1 %1994 }
 0xdc1   : > { %v2038_v16 = vpop.f32.mrb[24].mxu0 }
 0xdc2   : > { %v2039_v19 = vadd.f32 %v2038_v16, %v1995_v15  ;;  %v3318_v20 = vpop.f32.mrb[25].mxu0  ;;  %v3485_v15 = vpack.c.bf16 %v2683_v11, %v2681_v9  ;;  %v3487_v16 = vpack.c.bf16 %v2688_v12, %v2686_v14  ;;  %v2721_v11 = vld [vmem:[#allocation27 + $0x140] sm:$0xff]  ;;  %v2723_v14 = vld [vmem:[#allocation27 + $0x150] sm:$0xff]  ;;  %v2726_v12 = vld [vmem:[#allocation27 + $0x168] sm:$0xff] }
 0xdc3   : > { %v2041_v21 = vpop.f32.mrb[26].mxu0  ;;  %v2692_v20 = vld [vmem:[#allocation27 + $0x58] sm:$0xff] }
 0xdc4   : > { %vm2044_vm12 = vcmp.ge.f32.partialorder %v2039_v19, 0.0  ;;  %v2045_v22 = vmul.f32 0.05, %v2039_v19  ;;  %v3319_v26 = vpop.f32.mrb[27].mxu0  ;;  %v3489_v21 = vpack.c.bf16 %v2687_v18, %v2685_v17  ;;  %v2725_v18 = vld [vmem:[#allocation27 + $0x160] sm:$0xff] }
 0xdc5   : > { %v2691_v26 = vld [vmem:[#allocation27 + $0x50] sm:$0xff] }
 0xdc6   : > { %v2046_v30 = vsel %vm2044_vm12, %v2039_v19, %v2045_v22  ;;  %v2690_v19 = vld [vmem:[#allocation27 + $0x48] sm:$0xff]  ;;  %vm2511_vm12 = vcmask 752640  }
 0xdc7   : > { %3191 = vmatmul.mubr.msk.f32.vlgmr.msra.gmra.mrb[22].mxu0 %vm1941_vm3, %v2046_v30  ;;  %v3491_v22 = vpack.c.bf16 %v2692_v20, %v2690_v19  ;;  %v2727_v19 = vld [vmem:[#allocation27 + $0x170] sm:$0xff]  ;;  %v2730_v20 = vld [vmem:[#allocation27 + $0x188] sm:$0xff] }
 0xdc8   : > { %3451 = vmatpush3.bf16.msra.mxu0 %v3450_v24  ;;  %3336 = vmatprep.mubr.msk.f32.mxu0 %vm4309_vm1, %v4303_v25  ;;  %v2689_v24 = vld [vmem:[#allocation27 + $0x40] sm:$0xff] }
 0xdc9   : > { %3452 = vmatprep.subr.bf16.mxu0 %v4310_v48 }
 0xdcc   : > { %3454 = vmatpush3.bf16.msra.mxu0 %v3453_v31  ;;  %v3495_v31 = vpack.c.bf16 %v2696_v29, %v2694_v27  ;;  %v2731_v27 = vld [vmem:[#allocation27 + $0x190] sm:$0xff]  ;;  %v2734_v29 = vld [vmem:[#allocation27 + $0x1a8] sm:$0xff] }
 0xdcd   : > { %3455 = vmatprep.subr.bf16.mxu0 %v4310_v48 }
 0xdd0   : > { %3457 = vmatpush3.bf16.msra.mxu0 %v3456_v34  ;;  %v1336_v43 = vpop.permute.xlu0 %1335  ;;  %v2698_v34 = vld [vmem:[#allocation27 + $0x88] sm:$0xff] }
 0xdd1   : > { %v1338_v39 = vsel %vm1283_vm11, %v1333_v41, %v1336_v43  ;;  %3458 = vmatprep.subr.bf16.mxu0 %v4310_v48  ;;  %v3499_v41 = vpack.c.bf16 %v2700_v35, %v2698_v34  ;;  %v2704_v43 = vld [vmem:[#allocation27 + $0xb8] sm:$0xff]  ;;  %v2735_v34 = vld [vmem:[#allocation27 + $0x1b0] sm:$0xff]  ;;  %v2738_v35 = vld [vmem:[#allocation27 + $0x1c8] sm:$0xff]  ;;  %vm2526_vm11 = vcmask 744448  }
 0xdd2   : > { %3196 = vmatmul.mubr.msk.f32.vlgmr.msra.gmra.mrb[2].mxu1 %vm2245_vm0, %v1338_v39 }
 0xdd3   : > { %3476 = vmatpush3.bf16.msra.mxu1 %v3475_v42  ;;  %3353 = vmatprep.mubr.msk.f32.mxu1 %vm4309_vm1, %v4303_v25  ;;  %v2702_v42 = vld [vmem:[#allocation27 + $0xa8] sm:$0xff] }
 0xdd4   : > { %3461 = vmatpush3.bf16.msk.msra.mxu0 %vm5103_vm9, %v3459_v44  ;;  %3477 = vmatprep.subr.bf16.mxu1 %v4310_v48  ;;  %v3501_v44 = vpack.c.bf16 %v2699_v38, %v2697_v3  ;;  %v3503_v47 = vpack.c.bf16 %v2704_v43, %v2702_v42 }
 0xdd7   : > { %3337 = vmatmul.mubr.msk.f32.vlgmr.msra.gmra.mrb[28].mxu0 %vm1941_vm3, %v2046_v30  ;;  %3479 = vmatpush3.bf16.msra.mxu1 %v3478_v59  ;;  %v3493_v30 = vpack.c.bf16 %v2691_v26, %v2689_v24  ;;  %v2706_v59 = vld [vmem:[#allocation27 + $0xc8] sm:$0xff]  ;;  %v2729_v26 = vld [vmem:[#allocation27 + $0x180] sm:$0xff] }
 0xdd8   : > { %3480 = vmatprep.subr.bf16.mxu1 %v4310_v48  ;;  %2629 = vmatprep.mubr.bf16.mxu0 %v4298_v4  ;;  %v2404_v48 = vrot.slane %v2399_v53, %v5045_v28  ;;  %v2408_v4 = vrot.slane %v2399_v53, %v5017_v45  ;;  %v2412_v45 = vrot.slane %v2399_v53, %v5003_v37  ;;  %v2712_v53 = vld [vmem:[#allocation27 + $0xf8] sm:$0xff] }
 0xddb   : > { %3482 = vmatpush3.bf16.msra.mxu1 %v3481_v50  ;;  %v3507_v50 = vpack.c.bf16 %v2708_v13, %v2706_v59 }
 0xddc   : > { %3351 = vmatprep.subr.mxu1 %v4303_v25 }
 0xddf   : > { %3352 = vmatpush3.msk.msra.mxu1 %vm1449_vm8, %v2244_v46  ;;  %vm2424_vm8 = vcmask 240640   ;;  %v2705_v46 = vld [vmem:[#allocation27 + $0xc0] sm:$0xff] }
 0xde0   : > { %3354 = vmatmul.mubr.msk.f32.vlgmr.msra.gmra.mrb[4].mxu1 %vm2245_vm0, %v1338_v39  ;;  %3484 = vmatprep.subr.bf16.mxu1 %v3483_v10  ;;  %v2703_v39 = vld [vmem:[#allocation27 + $0xb0] sm:$0xff]  ;;  %v3523_v10 = vpack.c.bf16 %v2724_v8, %v2722_v7  ;;  %vm2496_vm0 = vcmask 883712  }
 0xde1   : > { %3486 = vmatpush1.bf16.msra.mxu1 %v3485_v15  ;;  %v3505_v23 = vpack.c.bf16 %v2703_v39, %v2701_v49  ;;  %v2728_v15 = vld [vmem:[#allocation27 + $0x178] sm:$0xff] }
 0xde2   : > { %3488 = vmatprep.subr.bf16.mxu1 %v3487_v16  ;;  %v3525_v16 = vpack.c.bf16 %v2723_v14, %v2721_v11  ;;  %v3527_v17 = vpack.c.bf16 %v2728_v15, %v2726_v12 }
 0xde5   : > { %3490 = vmatpush1.bf16.msra.mxu1 %v3489_v21  ;;  %v2732_v21 = vld [vmem:[#allocation27 + $0x198] sm:$0xff] }
 0xde6   : > { %3492 = vmatprep.subr.bf16.mxu1 %v3491_v22  ;;  %v3529_v22 = vpack.c.bf16 %v2727_v19, %v2725_v18  ;;  %v3531_v24 = vpack.c.bf16 %v2732_v21, %v2730_v20 }
 0xde9   : > { %3494 = vmatpush1.bf16.msra.mxu1 %v3493_v30  ;;  %v2736_v30 = vld [vmem:[#allocation27 + $0x1b8] sm:$0xff] }
 0xdea   : > { %3496 = vmatprep.subr.bf16.mxu1 %v3495_v31  ;;  %v3533_v31 = vpack.c.bf16 %v2731_v27, %v2729_v26  ;;  %v3535_v32 = vpack.c.bf16 %v2736_v30, %v2734_v29 }
 0xded   : > { %3498 = vmatpush1.bf16.msra.mxu1 %v3497_v40  ;;  %v2740_v40 = vld [vmem:[#allocation27 + $0x1d8] sm:$0xff] }
 0xdee   : > { %3500 = vmatprep.subr.bf16.mxu1 %v3499_v41  ;;  %v3537_v41 = vpack.c.bf16 %v2735_v34, %v2733_v33  ;;  %v3539_v3 = vpack.c.bf16 %v2740_v40, %v2738_v35 }
 0xdf1   : > { %3502 = vmatpush1.bf16.msra.mxu1 %v3501_v44 }
 0xdf2   : > { %3504 = vmatprep.subr.bf16.mxu1 %v3503_v47 }
 0xdf5   : > { %3506 = vmatpush1.bf16.msra.mxu1 %v3505_v23 }
 0xdf6   : > { %3508 = vmatprep.subr.bf16.mxu1 %v3507_v50 }
 0xe9a   : > { %v2149_v51 = vpop.f32.mrb[22].mxu0 }
 0xe9b   : > { %v2151_v52 = vpop.f32.mrb[23].mxu0 }
 0xea5   : > { %v2324_v54 = vpop.f32.mrb[2].mxu1 }
 0xea6   : > { %vm2416_vm3 = vcmp.eq.f32.partialorder %v2324_v54, %v2404_v48  ;;  %v2326_v55 = vpop.f32.mrb[3].mxu1  ;;  %v2709_v54 = vld [vmem:[#allocation27 + $0xe0] sm:$0xff] }
 0xea7   : > { %v2419_v56 = vsel %vm2416_vm3, %v2149_v51, 0.0  ;;  %vm2417_vm9 = vcmp.eq.f32.partialorder %v2326_v55, %v2408_v4  ;;  %v2707_v51 = vld [vmem:[#allocation27 + $0xd0] sm:$0xff]  ;;  %vm2445_vm3 = vcmask 244740  }
 0xea8   : > { %2422 = vst [vmem:[#allocation2] sm:$0xf] %v2419_v56  ;;  %v2420_v57 = vsel %vm2417_vm9, %v2151_v52, 0.0  ;;  %2447 = vrot.lane.b32.xlu0 %v2419_v56, %s4293_s22  ;;  %v2429_v60 = vrot.slane %v2419_v56, 4  ;;  %v2710_v52 = vld [vmem:[#allocation27 + $0xe8] sm:$0xff]  ;;  %v3509_v48 = vpack.c.bf16 %v2707_v51, %v2705_v46  ;;  %v2711_v55 = vld [vmem:[#allocation27 + $0xf0] sm:$0xff] }
 0xea9   : > { %2423 = vst [vmem:[#allocation2 + $0x8] sm:$0xf] %v2420_v57  ;;  %2449 = vrot.lane.b32.xlu1 %v2420_v57, %s4293_s22  ;;  %v2430_v5 = vrot.slane %v2420_v57, 4  ;;  %v3511_v4 = vpack.c.bf16 %v2712_v53, %v2710_v52 }
 0xeaa   : > { %v2220_v58 = vpop.f32.mrb[28].mxu0  ;;  %3510 = vmatpush1.bf16.msra.mxu1 %v3509_v48 }
 0xeab   : > { %v3338_v2 = vpop.f32.mrb[29].mxu0  ;;  %3512 = vmatprep.subr.bf16.mxu1 %v3511_v4 }
 0xeac   : > { %2475 = vrot.lane.b32.xlu0 %v2419_v56, %s4318_s16 }
 0xead   : > { %2432 = vrot.lane.b32.xlu1 %v2429_v60, %s4291_s5 }
 0xeb0   : > { %2505 = vrot.lane.b32.xlu0 %v2419_v56, %s4321_s11 }
 0xeb1   : > { %2461 = vrot.lane.b32.xlu1 %v2429_v60, %s4295_s2 }
 0xeb3   : > { %v2395_v61 = vpop.f32.mrb[4].mxu1 }
 0xeb4   : > { %vm2418_vm10 = vcmp.eq.f32.partialorder %v2395_v61, %v2412_v45  ;;  %v3355_v62 = vpop.f32.mrb[5].mxu1  ;;  %2477 = vrot.lane.b32.xlu0 %v2420_v57, %s4318_s16  ;;  %v2715_v45 = vld [vmem:[#allocation27 + $0x110] sm:$0xff]  ;;  %v2718_v61 = vld [vmem:[#allocation27 + $0x128] sm:$0xff] }
 0xeb5   : > { %v2421_v0 = vsel %vm2418_vm10, %v2220_v58, 0.0  ;;  %2490 = vrot.lane.b32.xlu1 %v2429_v60, %s4317_s0  ;;  %v3513_v58 = vpack.c.bf16 %v2711_v55, %v2709_v54  ;;  %v2720_v62 = vld [vmem:[#allocation27 + $0x138] sm:$0xff] }
 0xeb6   : > { %2425 = vst.msk [vmem:[#allocation2 + $0x10] sm:$0xf] %vm2424_vm8, %v2421_v0  ;;  %v2431_v37 = vrot.slane %v2421_v0, 4 }
 0xeb7   : > { %3514 = vmatpush1.bf16.msra.mxu1 %v3513_v58 }
 0xeb8   : > { %2507 = vrot.lane.b32.xlu0 %v2420_v57, %s4321_s11 }
 0xeb9   : > { %2520 = vrot.lane.b32.xlu1 %v2429_v60, %s4322_s13  ;;  %v2713_v60 = vld [vmem:[#allocation27 + $0x100] sm:$0xff] }
 0xebc   : > { %2492 = vrot.lane.b32.xlu0 %v2430_v5, %s4317_s0 }
 0xebd   : > { %2434 = vrot.lane.b32.xlu1 %v2430_v5, %s4291_s5 }
 0xec0   : > { %2522 = vrot.lane.b32.xlu0 %v2430_v5, %s4322_s13 }
 0xec1   : > { %2463 = vrot.lane.b32.xlu1 %v2430_v5, %s4295_s2  ;;  %v3519_v5 = vpack.c.bf16 %v2720_v62, %v2718_v61 }
 0xec4   : > { %2451 = vrot.lane.b32.xlu0 %v2421_v0, %s4293_s22 }
 0xec5   : > { %2479 = vrot.lane.b32.xlu1 %v2421_v0, %s4318_s16 }
 0xec8   : > { %2436 = vrot.lane.b32.xlu0 %v2431_v37, %s4291_s5 }
 0xec9   : > { %2509 = vrot.lane.b32.xlu1 %v2421_v0, %s4321_s11 }
 0xecc   : > { %2465 = vrot.lane.b32.xlu0 %v2431_v37, %s4295_s2  ;;  %s5375_s2 = sld [smem:[#allocation56_spill]] }
 0xecd   : > { %2494 = vrot.lane.b32.xlu1 %v2431_v37, %s4317_s0 }
 0xed0   : > { %2535 = vrot.lane.b32.xlu0 %v2419_v56, %s4323_s12  ;;  %v2714_v56 = vld [vmem:[#allocation27 + $0x108] sm:$0xff] }
 0xed1   : > { %2524 = vrot.lane.b32.xlu1 %v2431_v37, %s4322_s13  ;;  %v2717_v37 = vld [vmem:[#allocation27 + $0x120] sm:$0xff] }
 0xed2   : > { %s972_s0 = scalar_lea.vmem %s5375_s2, %s3170_s3 }
 0xed4   : > { %2539 = vrot.lane.b32.xlu0 %v2421_v0, %s4323_s12  ;;  %v3517_v0 = vpack.c.bf16 %v2715_v45, %v2713_v60 }
 0xed5   : > { %2537 = vrot.lane.b32.xlu1 %v2420_v57, %s4323_s12  ;;  %v2716_v57 = vld [vmem:[#allocation27 + $0x118] sm:$0xff] }
 0xed6   : > { %v3515_v2 = vpack.c.bf16 %v2716_v57, %v2714_v56 }
 0xed8   : > { %3516 = vmatprep.subr.bf16.mxu1 %v3515_v2 }
 0xed9   : > { %2578 = vperm.xlu1 %3772, %v2575_v6   ;;  %v2719_v6 = vld [vmem:[#allocation27 + $0x130] sm:$0xff]  ;;  %3518 = vmatpush1.bf16.msra.mxu1 %v3517_v0 }
 0xeda   : > { %v3521_v9 = vpack.c.bf16 %v2719_v6, %v2717_v37  ;;  %3520 = vmatprep.subr.bf16.mxu1 %v3519_v5 }
 0xedd   : > { %3522 = vmatpush1.bf16.msra.mxu1 %v3521_v9 }
 0xede   : > { %3524 = vmatprep.subr.bf16.mxu1 %v3523_v10 }
 0xee1   : > { %3526 = vmatpush1.bf16.msra.mxu1 %v3525_v16 }
 0xee2   : > { %3528 = vmatprep.subr.bf16.mxu1 %v3527_v17 }
 0xee5   : > { %3530 = vmatpush1.bf16.msra.mxu1 %v3529_v22 }
 0xee6   : > { %3532 = vmatprep.subr.bf16.mxu1 %v3531_v24 }
 0xee9   : > { %3534 = vmatpush1.bf16.msra.mxu1 %v3533_v31 }
 0xeea   : > { %3536 = vmatprep.subr.bf16.mxu1 %v3535_v32 }
 0xeed   : > { %3538 = vmatpush1.bf16.msra.mxu1 %v3537_v41 }
 0xeee   : > { %3540 = vmatprep.subr.bf16.mxu1 %v3539_v3  ;;  %v2574_v3 = vld [vmem:[#allocation12] sm:$0x1] }
 0xf1a   : > { %v2448_v38 = vpop.permute.xlu0 %2447 }
 0xf1b   : > { %v2450_v42 = vpop.permute.xlu1 %2449 }
 0xf1c   : > { %v2453_v43 = vsel %vm994_vm4, %v2448_v38, %v2450_v42 }
 0xf1d   : > { %2458 = vst [vmem:[#allocation2 + $0x18] sm:$0xf] %v2453_v43 }
 0xf1e   : > { %v2476_v44 = vpop.permute.xlu0 %2475 }
 0xf1f   : > { %v2433_v47 = vpop.permute.xlu1 %2432 }
 0xf22   : > { %v2506_v49 = vpop.permute.xlu0 %2505 }
 0xf23   : > { %v2462_v39 = vpop.permute.xlu1 %2461 }
 0xf26   : > { %v2478_v59 = vpop.permute.xlu0 %2477 }
 0xf27   : > { %v2482_v13 = vsel %vm2481_vm13, %v2476_v44, %v2478_v59  ;;  %v2491_v23 = vpop.permute.xlu1 %2490 }
 0xf28   : > { %2487 = vst [vmem:[#allocation2 + $0x30] sm:$0xf] %v2482_v13  ;;  %v2737_v13 = vld [vmem:[#allocation27 + $0x1c0] sm:$0xff] }
 0xf2a   : > { %v2508_v50 = vpop.permute.xlu0 %2507 }
 0xf2b   : > { %v2512_v46 = vsel %vm2511_vm12, %v2506_v49, %v2508_v50  ;;  %v2521_v51 = vpop.permute.xlu1 %2520 }
 0xf2c   : > { %2517 = vst [vmem:[#allocation2 + $0x48] sm:$0xf] %v2512_v46  ;;  %v2742_v46 = vld [vmem:[#allocation27 + $0x1e8] sm:$0xff] }
 0xf2e   : > { %v2493_v52 = vpop.permute.xlu0 %2492 }
 0xf2f   : > { %v2497_v53 = vsel %vm2496_vm0, %v2491_v23, %v2493_v52  ;;  %v2435_v48 = vpop.permute.xlu1 %2434  ;;  %v2739_v23 = vld [vmem:[#allocation27 + $0x1d0] sm:$0xff] }
 0xf30   : > { %2502 = vst [vmem:[#allocation2 + $0x30] sm:$0xf0] %v2497_v53  ;;  %v2438_v4 = vsel %vm985_vm2, %v2433_v47, %v2435_v48  ;;  %v2741_v53 = vld [vmem:[#allocation27 + $0x1e0] sm:$0xff] }
 0xf31   : > { %2443 = vst [vmem:[#allocation2] sm:$0xf0] %v2438_v4 }
 0xf32   : > { %v2523_v54 = vpop.permute.xlu0 %2522 }
 0xf33   : > { %v2527_v55 = vsel %vm2526_vm11, %v2521_v51, %v2523_v54  ;;  %v2464_v56 = vpop.permute.xlu1 %2463  ;;  %v2744_v51 = vld [vmem:[#allocation27 + $0x1f8] sm:$0xff] }
 0xf34   : > { %2532 = vst [vmem:[#allocation2 + $0x48] sm:$0xf0] %v2527_v55  ;;  %v2467_v57 = vsel %vm1021_vm6, %v2462_v39, %v2464_v56  ;;  %v2748_v55 = vld [vmem:[#allocation27 + $0x218] sm:$0xff] }
 0xf35   : > { %2472 = vst [vmem:[#allocation2 + $0x18] sm:$0xf0] %v2467_v57 }
 0xf36   : > { %v2452_v58 = vpop.permute.xlu0 %2451 }
 0xf37   : > { %v2454_v2 = vsel %vm994_vm4, %v2450_v42, %v2452_v58  ;;  %2460 = vst.msk [vmem:[#allocation2 + $0x28] sm:$0xf] %vm2424_vm8, %v2452_v58  ;;  %v2480_v60 = vpop.permute.xlu1 %2479  ;;  %v2556_v30 = vld [vmem:[#allocation2 + $0x30] sm:$0xff]  ;;  %vm2922_vm4 = vcmp.lt.s32.totalorder %v975_v1, 256 }
 0xf38   : > { %2459 = vst [vmem:[#allocation2 + $0x20] sm:$0xf] %v2454_v2  ;;  %v2483_v45 = vsel %vm2481_vm13, %v2478_v59, %v2480_v60  ;;  %2489 = vst.msk [vmem:[#allocation2 + $0x40] sm:$0xf] %vm2424_vm8, %v2480_v60  ;;  %v2550_v21 = vld [vmem:[#allocation2] sm:$0xff]  ;;  %v2747_v58 = vld [vmem:[#allocation27 + $0x210] sm:$0xff] }
 0xf39   : > { %2488 = vst [vmem:[#allocation2 + $0x38] sm:$0xf] %v2483_v45  ;;  %v2752_v60 = vld [vmem:[#allocation27 + $0x238] sm:$0x3f] }
 0xf3a   : > { %v2437_v61 = vpop.permute.xlu0 %2436 }
 0xf3b   : > { %v2439_v62 = vsel %vm985_vm2, %v2435_v48, %v2437_v61  ;;  %2446 = vst.msk [vmem:[#allocation2 + $0x10] sm:$0xf0] %vm2445_vm3, %v2437_v61  ;;  %v2510_v0 = vpop.permute.xlu1 %2509  ;;  %vm2541_vm2 = vcmask 736256   ;;  %v2559_v24 = vld [vmem:[#allocation2 + $0x48] sm:$0xff]  ;;  %v2743_v48 = vld [vmem:[#allocation27 + $0x1f0] sm:$0xff] }
 0xf3c   : > { %2444 = vst [vmem:[#allocation2 + $0x8] sm:$0xf0] %v2439_v62  ;;  %v2513_v5 = vsel %vm2511_vm12, %v2508_v50, %v2510_v0  ;;  %2519 = vst.msk [vmem:[#allocation2 + $0x58] sm:$0xf] %vm2424_vm8, %v2510_v0  ;;  %v2553_v12 = vld [vmem:[#allocation2 + $0x18] sm:$0xff]  ;;  %v2568_v31 = vpack.c.bf16 %v2559_v24, %v2556_v30  ;;  %v3541_v50 = vpack.c.bf16 %v2739_v23, %v2737_v13  ;;  %v2749_v61 = vld [vmem:[#allocation27 + $0x220] sm:$0xff] }
 0xf3d   : > { %2518 = vst [vmem:[#allocation2 + $0x50] sm:$0xf] %v2513_v5  ;;  %v2565_v22 = vpack.c.bf16 %v2553_v12, %v2550_v21  ;;  %v3545_v4 = vpack.c.bf16 %v2743_v48, %v2741_v53  ;;  %v2751_v62 = vld [vmem:[#allocation27 + $0x230] sm:$0x3f]  ;;  %v4324_v21 = vmov 1966171168  }
 0xf3e   : > { %v2466_v37 = vpop.permute.xlu0 %2465  ;;  %3542 = vmatpush1.bf16.msra.mxu1 %v3541_v50  ;;  %v3554_v0 = vpack.c.bf16 %v2751_v62, %v2749_v61 }
 0xf3f   : > { %v2468_v6 = vsel %vm1021_vm6, %v2464_v56, %v2466_v37  ;;  %2474 = vst.msk [vmem:[#allocation2 + $0x28] sm:$0xf0] %vm2445_vm3, %v2466_v37  ;;  %v2495_v7 = vpop.permute.xlu1 %2494  ;;  %v2745_v56 = vld [vmem:[#allocation27 + $0x200] sm:$0xff] }
 0xf40   : > { %2473 = vst [vmem:[#allocation2 + $0x20] sm:$0xf0] %v2468_v6  ;;  %v2498_v8 = vsel %vm2496_vm0, %v2493_v52, %v2495_v7  ;;  %2504 = vst.msk [vmem:[#allocation2 + $0x40] sm:$0xf0] %vm2445_vm3, %v2495_v7  ;;  %v3543_v52 = vpack.c.bf16 %v2744_v51, %v2742_v46  ;;  %v3549_v2 = vpack.c.bf16 %v2747_v58, %v2745_v56 }
 0xf41   : > { %2503 = vst [vmem:[#allocation2 + $0x38] sm:$0xf0] %v2498_v8 }
 0xf42   : > { %v2536_v9 = vpop.permute.xlu0 %2535  ;;  %v2552_v38 = vld [vmem:[#allocation2 + $0x10] sm:$0xff]  ;;  %3544 = vmatprep.subr.bf16.mxu1 %v3543_v52 }
 0xf43   : > { %v2525_v10 = vpop.permute.xlu1 %2524  ;;  %v2551_v16 = vld [vmem:[#allocation2 + $0x8] sm:$0xff]  ;;  %3546 = vmatpush1.bf16.msra.mxu1 %v3545_v4 }
 0xf44   : > { %v2528_v11 = vsel %vm2526_vm11, %v2523_v54, %v2525_v10  ;;  %2534 = vst.msk [vmem:[#allocation2 + $0x58] sm:$0xf0] %vm2445_vm3, %v2525_v10  ;;  %v2746_v54 = vld [vmem:[#allocation27 + $0x208] sm:$0xff] }
 0xf45   : > { %2533 = vst [vmem:[#allocation2 + $0x50] sm:$0xf0] %v2528_v11  ;;  %v3547_v57 = vpack.c.bf16 %v2748_v55, %v2746_v54 }
 0xf46   : > { %v2540_v14 = vpop.permute.xlu0 %2539  ;;  %v2555_v41 = vld [vmem:[#allocation2 + $0x28] sm:$0xff] }
 0xf47   : > { %2549 = vst.msk [vmem:[#allocation2 + $0x70] sm:$0xf] %vm2424_vm8, %v2540_v14  ;;  %v2538_v15 = vpop.permute.xlu1 %2537  ;;  %v2554_v17 = vld [vmem:[#allocation2 + $0x20] sm:$0xff]  ;;  %v2567_v42 = vpack.c.bf16 %v2555_v41, %v2552_v38 }
 0xf48   : > { %v2542_v18 = vsel %vm2541_vm2, %v2536_v9, %v2538_v15  ;;  %v2543_v19 = vsel %vm2541_vm2, %v2538_v15, %v2540_v14  ;;  %v2566_v20 = vpack.c.bf16 %v2554_v17, %v2551_v16  ;;  %v2557_v26 = vld [vmem:[#allocation2 + $0x38] sm:$0xff]  ;;  %v2558_v47 = vld [vmem:[#allocation2 + $0x40] sm:$0xff] }
 0xf49   : > { %2547 = vst [vmem:[#allocation2 + $0x60] sm:$0xf] %v2542_v18  ;;  %2548 = vst [vmem:[#allocation2 + $0x68] sm:$0xf] %v2543_v19 }
 0xf4a   : > { %2597 = vmatprep.subr.bf16.mxu0 %v2566_v20 }
 0xf4b   : > { %2598 = vmatpush1.bf16.msra.mxu0 %v2565_v22  ;;  %v2561_v43 = vld [vmem:[#allocation2 + $0x58] sm:$0xff]  ;;  %v2908_v22 = vunpack.c.l.s4 %v4324_v21 }
 0xf4c   : > { %v2560_v27 = vld [vmem:[#allocation2 + $0x50] sm:$0xff]  ;;  %v2570_v49 = vpack.c.bf16 %v2561_v43, %v2558_v47 }
 0xf4d   : > { %v2569_v29 = vpack.c.bf16 %v2560_v27, %v2557_v26  ;;  %v2909_v24 = vunpack.c.0.s8 %v2908_v22 }
 0xf4e   : > { %v2564_v44 = vld [vmem:[#allocation2 + $0x70] sm:$0xf] }
 0xf4f   : > { %2599 = vmatprep.subr.bf16.mxu0 %v2569_v29  ;;  %v2573_v39 = vpack.c.bf16 %v2564_v44, %v2564_v44 }
 0xf50   : > { %2600 = vmatpush1.bf16.msra.mxu0 %v2568_v31  ;;  %v2563_v32 = vld [vmem:[#allocation2 + $0x68] sm:$0xf]  ;;  %v2562_v33 = vld [vmem:[#allocation2 + $0x60] sm:$0xf]  ;;  %v2912_v31 = vsub.s32 %v2909_v24, %v4998_v36 }
 0xf51   : > { %v2572_v34 = vpack.c.bf16 %v2563_v32, %v2563_v32  ;;  %v2571_v35 = vpack.c.bf16 %v2562_v33, %v2562_v33  ;;  %v2595_v59 = vsel %vm1394_vm5, %v2573_v39, 0 }
 0xf53   : > { %3199 = vmatprep.subr.msk.bf16.mxu0 %vm1394_vm5, %v2572_v34  ;;  %v2589_v40 = vsel %vm1394_vm5, %v2571_v35, 0 }
 0xf54   : > { %2602 = vmatpush1.bf16.msra.mxu0 %v2589_v40 }
 0xf55   : > { %3356 = vmatprep.subr.bf16.mxu0 %v4303_v25 }
 0xf57   : > { %3200 = vmatmul.mubr.msk.bf16.vlgmr.msra.gmra.mrb[32].mxu0 %vm1390_vm7, %v2574_v3 }
 0xf58   : > { %3357 = vmatpush3.bf16.msra.mxu0 %v2567_v42  ;;  %3362 = vmatprep.mubr.msk.bf16.mxu0 %vm4309_vm1, %v4303_v25  ;;  %v2579_v5 = vpop.permute.xlu1 %2578 }
 0xf59   : > { %3358 = vmatprep.subr.bf16.mxu0 %v4303_v25  ;;  %v2584_v37 = vrot.slane %v2579_v5, %v5045_v28 }
 0xf5c   : > { %3359 = vmatpush3.bf16.msra.mxu0 %v2570_v49 }
 0xf5d   : > { %3360 = vmatprep.subr.bf16.mxu0 %v4303_v25 }
 0xf60   : > { %3361 = vmatpush3.bf16.msra.mxu0 %v2595_v59 }
 0xf61   : > { %3548 = vmatprep.subr.bf16.mxu0 %v3547_v57 }
 0xf63   : > { %3363 = vmatmul.mubr.msk.bf16.vlgmr.msra.gmra.mrb[36].mxu0 %vm1390_vm7, %v2574_v3 }
 0xf64   : > { %2897 = vmatprep.mubr.f32.mxu0 %v4303_v25  ;;  %3550 = vmatpush1.bf16.msra.mxu0 %v3549_v2  ;;  %v2750_v25 = vld [vmem:[#allocation27 + $0x228] sm:$0xff] }
 0xf65   : > { %v3551_v45 = vpack.c.bf16 %v2752_v60, %v2750_v25 }
 0xf67   : > { %3553 = vmatprep.subr.msk.bf16.mxu0 %vm4905_vm14, %v3551_v45 }
 0xf68   : > { %3556 = vmatpush1.bf16.msk.msra.mxu0 %vm4905_vm14, %v3554_v0 }
0x102a   : > { %v2631_v6 = vpop.f32.mrb[32].mxu0 }
0x102b   : > { %v2632_v7 = vadd.f32 %v2631_v6, %v2584_v37  ;;  %v2633_v8 = vpop.f32.mrb[33].mxu0 }
0x102c   : > { %v2634_v9 = vadd.f32 %v2633_v8, %v2584_v37  ;;  %v2635_v10 = vpop.f32.mrb[34].mxu0 }
0x102d   : > { %v2636_v11 = vpop.f32.mrb[35].mxu0  ;;  %v2678_v12 = vmax.f32 %v2632_v7, 0.0 }
0x102e   : > { %v2679_v14 = vmax.f32 %v2634_v9, 0.0 }
0x1030   : > { %2826 = vmatprep.mubr.f32.mxu1 %v2679_v14 }
0x1031   : > { %2827 = vmatmul.mubr.f32.vlgmr.msra.gmra.mrb[6].mxu1 %v2678_v12 }
0x1036   : > { %v2672_v15 = vpop.f32.mrb[36].mxu0 }
0x1037   : > { %v2673_v16 = vadd.f32 %v2672_v15, %v2584_v37  ;;  %v3364_v17 = vpop.f32.mrb[37].mxu0 }
0x1038   : > { %v2675_v18 = vpop.f32.mrb[38].mxu0 }
0x1039   : > { %v2680_v63 = vmax.f32 %v2673_v16, 0.0  ;;  %v3365_v19 = vpop.f32.mrb[39].mxu0 }
0x103b   : > { %3204 = vmatmul.mubr.msk.f32.vlgmr.msra.gmra.mrb[30].mxu0 %vm1278_vm15, %v2680_v63 }
0x1104   : > { %v2828_v28 = vpop.f32.mrb[6].mxu1 }
0x1105   : > { %v2830_v20 = vpop.f32.mrb[7].mxu1 }
0x110e   : > { %v2899_v26 = vpop.f32.mrb[30].mxu0 }
0x110f   : > { %v2900_v27 = vadd.f32 %v2899_v26, %v2828_v28  ;;  %v2901_v29 = vpop.f32.mrb[31].mxu0 }
0x1110   : > { %v2902_v30 = vadd.f32 %v2901_v29, %v2830_v20 }
0x1112   : > { %v2906_v32 = vcombine.low %v2900_v27, %v2902_v30 }
0x1114   : > { %v2913_v33 = vrot.slane %v2906_v32, %v2912_v31 }
0x1116   : > { %v2920_v34 = vrot.slane %v2913_v33, %v2912_v31 }
0x1118   : > { %2924 = vst.msk [vmem:[%s972_s0] sm:$0x3] %vm2922_vm4, %v2920_v34 }
0x1119 PF: > { %s5376_s16 = sld [smem:[#allocation38_spill]] }
0x111f   : > { %s46_s6 = sadd.s32 1, %s5376_s16  }
0x1120   : > { %p43_p5 = scmp.ge.s32.totalorder %s46_s6, 4  }
0x1122   :  { %45 = sbr.rel (!%p43_p5) target bundleno = 28 (0x1c), region = 223 }
0x1129   :  { %2944 = vsyncpa [#allocation5], 1 }
0x112a   :  { %2946 = vsyncpa [#allocation5 + $0x1], 1 }
0x112b   :  { %2947 = vsyncpa [#allocation7], 1 }
0x112c   :  { %2948 = vsyncpa [#allocation10], 1 }
0x112d   :  { %2949 = vsyncpa [#allocation13], 1 }
0x112e   :  { %2950 = vsyncpa [#allocation16], 1 }
0x112f   :  { %2951 = vsyncpa [#allocation19], 1 }
0x1130   :  { %2952 = vsyncpa [#allocation22], 1 }
0x1131   :  { %2953 = vsyncpa [#allocation25], 1 }
0x1132   :  { %2954 = vsyncpa [#allocation28], 1 }

</bundles_post_ra>
